<compile_context>
chip_gen: v7x
topology: tpu7x:2x2x1
jax: 0.10.0
libtpu: 0.0.40
codegen_flags: <defaults>
</compile_context>

<pallas_src>
import functools

import jax
import jax.numpy as jnp
from jax.experimental import pallas as pl
from jax.experimental.pallas import tpu as pltpu

EPS = 1e-5


def _ceil_to(x, m):
    return ((x + m - 1) // m) * m


# ----------------------------------------------------------------------------
# Kernels
# ----------------------------------------------------------------------------
def _conv_taps(src_ref, w_ref, M, W):
    """3x3 VALID conv on a wide (rows, C) bf16 slab via 9 MXU dots (f32 acc).

    src_ref : Ref (rows, C)        -- flat (h, w) rows, channels on lanes
    w_ref   : Ref (9*C, C_out)     -- tap-major, channel-minor weights
    Returns an (M, C_out) f32 accumulator; rows whose column wraps past the
    valid output width (or that lie in the 8-row padding) are garbage.
    """
    c = src_ref.shape[1]
    c_out = w_ref.shape[1]
    acc = jnp.zeros((M, c_out), jnp.float32)
    for t in range(9):
        dy, dx = divmod(t, 3)
        base = dy * W + dx                       # static row shift per tap
        acc = acc + jnp.dot(
            src_ref[base:base + M, :],
            w_ref[t * c:(t + 1) * c, :],
            preferred_element_type=jnp.float32)
    return acc


def _valid_mask(M, W, M_valid, W_valid):
    """f32 (M,1) mask of non-wrapped, non-padding rows (built in-kernel)."""
    row = jax.lax.broadcasted_iota(jnp.int32, (M, 1), 0)
    return jnp.logical_and(row % W < W_valid, row < M_valid).astype(jnp.float32)


def conv1_stats_kernel(x_ref, w1_ref, b1_ref, y_ref, s_ref, ss_ref,
                       *, W, M_valid, W_valid):
    """Conv1 (+bias, stored bf16) and fused per-channel sum / sum-sq for BN1."""
    M = y_ref.shape[0]
    acc = _conv_taps(x_ref, w1_ref, M, W)                 # f32, pre-bias
    y_ref[...] = (acc + b1_ref[...]).astype(y_ref.dtype)  # bf16 HBM store

    am = acc * _valid_mask(M, W, M_valid, W_valid)

    @pl.when(pl.program_id(1) == 0)
    def _():
        s_ref[...] = jnp.zeros_like(s_ref)
        ss_ref[...] = jnp.zeros_like(ss_ref)

    s_ref[...] += jnp.sum(am, axis=0, keepdims=True)
    ss_ref[...] += jnp.sum(am * acc, axis=0, keepdims=True)


def bn1_conv2_stats_kernel(y1_ref, sc_ref, sh_ref, w2_ref, b2_ref,
                           y_ref, s_ref, ss_ref, a_ref,
                           *, W, M_valid, W_valid):
    """BN1(affine)+ReLU (f32 math), Conv2 (+bias, bf16 store), fused BN2 stats."""
    M = y_ref.shape[0]
    a = jnp.maximum(y1_ref[...].astype(jnp.float32) * sc_ref[...] + sh_ref[...],
                    0.0)
    a_ref[...] = a.astype(a_ref.dtype)                    # bf16 VMEM scratch

    acc = _conv_taps(a_ref, w2_ref, M, W)                 # f32, pre-bias
    y_ref[...] = (acc + b2_ref[...]).astype(y_ref.dtype)  # bf16 HBM store

    am = acc * _valid_mask(M, W, M_valid, W_valid)

    @pl.when(pl.program_id(1) == 0)
    def _():
        s_ref[...] = jnp.zeros_like(s_ref)
        ss_ref[...] = jnp.zeros_like(ss_ref)

    s_ref[...] += jnp.sum(am, axis=0, keepdims=True)
    ss_ref[...] += jnp.sum(am * acc, axis=0, keepdims=True)


def bn2_relu_unwiden_kernel(y_ref, sc_ref, sh_ref, o_ref, *, W, H2, W2):
    """Final BN2(affine)+ReLU fused with un-widening: wide slab -> (H2,W2,C)."""
    sc = sc_ref[...]
    sh = sh_ref[...]
    for h2 in range(H2):
        row = y_ref[h2 * W:h2 * W + W2, :].astype(jnp.float32)
        o_ref[h2, :, :] = jnp.maximum(row * sc + sh, 0.0).astype(o_ref.dtype)


# ----------------------------------------------------------------------------
# Wrapper
# ----------------------------------------------------------------------------
def _bn_affine(s, ss, count, bias, gamma, beta):
    """Fold batch mean/var (+gamma, beta) into per-channel scale/shift.

    s/ss were accumulated on the *pre-bias* conv output, so variance is
    computed around the bias shift (no catastrophic cancellation)."""
    mean_c = s / count
    var = jnp.maximum(ss / count - mean_c * mean_c, 0.0)
    mean = mean_c + bias
    inv = jax.lax.rsqrt(var + EPS)
    scale = gamma.reshape(1, -1).astype(jnp.float32) * inv
    shift = beta.reshape(1, -1).astype(jnp.float32) - mean * scale
    return scale, shift


def basic_conv2_nhwc(x_nhwc, params):
    """Core path: NHWC in, NHWC (f32) out. Transpose-free kernels."""
    N, H, W, c_in = x_nhwc.shape
    c_mid = params["w1"].shape[-1]
    c_out = params["w2"].shape[-1]
    H1, W1 = H - 2, W - 2            # after conv1 (3x3 VALID)
    H2, W2 = H1 - 2, W1 - 2          # after conv2

    halo = 2 * W + 2                 # max tap row-shift in the wide layout
    M1 = H1 * W - 2                  # logically-carried wide rows after conv1
    M2 = H2 * W - 4                  # ... after conv2
    M2p = _ceil_to(M2, 8)                          # 8-aligned row counts,
    M1p = _ceil_to(max(M1, M2p + halo), 8)         # sized so every tap slice
    P0 = _ceil_to(max(H * W, M1p + halo), 8)       # stays in-bounds.

    # bf16 activations / weights (HBM traffic + MXU bf16 path); f32 bias/stats.
    x2 = x_nhwc.reshape(N, H * W, c_in).astype(jnp.bfloat16)
    x2 = jnp.pad(x2, ((0, 0), (0, P0 - H * W), (0, 0)))
    w1 = params["w1"].reshape(9 * c_in, c_mid).astype(jnp.bfloat16)
    b1 = params["b1"].reshape(1, c_mid).astype(jnp.float32)
    w2 = params["w2"].reshape(9 * c_mid, c_out).astype(jnp.bfloat16)
    b2 = params["b2"].reshape(1, c_out).astype(jnp.float32)

    # Leading "parallel" axis (2-way when possible) so both v7x TensorCores
    # work on stages 1-2; the inner batch axis carries the stats accumulation.
    NP = 2 if (N % 2 == 0 and N >= 2) else 1
    NH = N // NP

    cp = pltpu.CompilerParams(
        dimension_semantics=("parallel", "arbitrary"),
        vmem_limit_bytes=48 * 1024 * 1024)

    def rep(shape):                      # broadcast (resident) parameter block
        return pl.BlockSpec(shape, lambda *_: (0,) * len(shape))

    def per_img(rows, ch):               # one image's wide slab per grid step
        return pl.BlockSpec((None, rows, ch), lambda p, n: (p * NH + n, 0, 0))

    def per_slot(ch):                    # per-parallel-slot stats accumulator
        return pl.BlockSpec((None, 1, ch), lambda p, n: (p, 0, 0))

    # ---- Stage 1: Conv1 + fused BN1 statistics ----
    y1w, s1p, ss1p = pl.pallas_call(
        functools.partial(conv1_stats_kernel, W=W, M_valid=M1, W_valid=W1),
        grid=(NP, NH),
        in_specs=[per_img(P0, c_in), rep((9 * c_in, c_mid)), rep((1, c_mid))],
        out_specs=(per_img(M1p, c_mid), per_slot(c_mid), per_slot(c_mid)),
        out_shape=(jax.ShapeDtypeStruct((N, M1p, c_mid), jnp.bfloat16),
                   jax.ShapeDtypeStruct((NP, 1, c_mid), jnp.float32),
                   jax.ShapeDtypeStruct((NP, 1, c_mid), jnp.float32)),
        compiler_params=cp,
    )(x2, w1, b1)

    sc1, sh1 = _bn_affine(jnp.sum(s1p, axis=0), jnp.sum(ss1p, axis=0),
                          float(N * H1 * W1), b1,
                          params["g1"], params["beta1"])

    # ---- Stage 2: BN1 + ReLU + Conv2 + fused BN2 statistics ----
    y2w, s2p, ss2p = pl.pallas_call(
        functools.partial(bn1_conv2_stats_kernel, W=W, M_valid=M2, W_valid=W2),
        grid=(NP, NH),
        in_specs=[per_img(M1p, c_mid), rep((1, c_mid)), rep((1, c_mid)),
                  rep((9 * c_mid, c_out)), rep((1, c_out))],
        out_specs=(per_img(M2p, c_out), per_slot(c_out), per_slot(c_out)),
        out_shape=(jax.ShapeDtypeStruct((N, M2p, c_out), jnp.bfloat16),
                   jax.ShapeDtypeStruct((NP, 1, c_out), jnp.float32),
                   jax.ShapeDtypeStruct((NP, 1, c_out), jnp.float32)),
        scratch_shapes=[pltpu.VMEM((M1p, c_mid), jnp.bfloat16)],
        compiler_params=cp,
    )(y1w, sc1, sh1, w2, b2)

    sc2, sh2 = _bn_affine(jnp.sum(s2p, axis=0), jnp.sum(ss2p, axis=0),
                          float(N * H2 * W2), b2,
                          params["g2"], params["beta2"])

    # ---- Stage 3: BN2 + ReLU fused with un-widening -> final layout ----
    y = pl.pallas_call(
        functools.partial(bn2_relu_unwiden_kernel, W=W, H2=H2, W2=W2),
        grid=(N,),
        in_specs=[pl.BlockSpec((None, M2p, c_out), lambda n: (n, 0, 0)),
                  pl.BlockSpec((1, c_out), lambda n: (0, 0)),
                  pl.BlockSpec((1, c_out), lambda n: (0, 0))],
        out_specs=pl.BlockSpec((None, H2, W2, c_out), lambda n: (n, 0, 0, 0)),
        out_shape=jax.ShapeDtypeStruct((N, H2, W2, c_out), jnp.float32),
        compiler_params=pltpu.CompilerParams(
            dimension_semantics=("parallel",),
            vmem_limit_bytes=48 * 1024 * 1024),
    )(y2w, sc2, sh2)

    return y                                         # (N, H2, W2, c_out) f32


def basic_conv2(x_nchw, params):
    """PyTorch-layout adapter (NCHW in / NCHW out); layout-critical callers
    should use basic_conv2_nhwc directly and skip these two HBM transposes."""
    x = jnp.transpose(x_nchw, (0, 2, 3, 1))
    y = basic_conv2_nhwc(x, params)
    return jnp.transpose(y, (0, 3, 1, 2))


basic_conv2_jit = jax.jit(basic_conv2)


# ----------------------------------------------------------------------------
# Params + pure-JAX f32 reference
# ----------------------------------------------------------------------------
def init_params(key, in_channels, out_channels):
    """Deterministic init mimicking PyTorch defaults (U(+/-1/sqrt(fan_in));
    BN gamma=1, beta=0)."""
    c_mid = in_channels // 2
    k1, k2, k3, k4 = jax.random.split(key, 4)
    bound1 = 1.0 / jnp.sqrt(9.0 * in_channels)
    bound2 = 1.0 / jnp.sqrt(9.0 * c_mid)
    return {
        "w1": jax.random.uniform(k1, (3, 3, in_channels, c_mid),
                                 minval=-bound1, maxval=bound1, dtype=jnp.float32),
        "b1": jax.random.uniform(k2, (c_mid,),
                                 minval=-bound1, maxval=bound1, dtype=jnp.float32),
        "g1": jnp.ones((c_mid,), jnp.float32),
        "beta1": jnp.zeros((c_mid,), jnp.float32),
        "w2": jax.random.uniform(k3, (3, 3, c_mid, out_channels),
                                 minval=-bound2, maxval=bound2, dtype=jnp.float32),
        "b2": jax.random.uniform(k4, (out_channels,),
                                 minval=-bound2, maxval=bound2, dtype=jnp.float32),
        "g2": jnp.ones((out_channels,), jnp.float32),
        "beta2": jnp.zeros((out_channels,), jnp.float32),
    }


def reference(x_nchw, params):
    """Pure-JAX f32 reference of the same forward pass (verification)."""
    x = jnp.transpose(x_nchw, (0, 2, 3, 1)).astype(jnp.float32)

    def conv(x, w, b):
        y = jax.lax.conv_general_dilated(
            x, w, window_strides=(1, 1), padding="VALID",
            dimension_numbers=("NHWC", "HWIO", "NHWC"))
        return y + b

    def bn(y, g, beta):
        m = jnp.mean(y, axis=(0, 1, 2), keepdims=True)
        v = jnp.mean((y - m) ** 2, axis=(0, 1, 2), keepdims=True)
        return (y - m) * jax.lax.rsqrt(v + EPS) * g + beta

    y = jnp.maximum(bn(conv(x, params["w1"], params["b1"]),
                       params["g1"], params["beta1"]), 0.0)
    y = jnp.maximum(bn(conv(y, params["w2"], params["b2"]),
                       params["g2"], params["beta2"]), 0.0)
    return jnp.transpose(y, (0, 3, 1, 2))


if __name__ == "__main__":
    key = jax.random.PRNGKey(0)
    kx, kp = jax.random.split(key)

    in_channels, out_channels = 4, 4
    x = jax.random.normal(kx, (2, in_channels, 16, 16), dtype=jnp.float32)
    params = init_params(kp, in_channels, out_channels)

    out = jax.block_until_ready(basic_conv2_jit(x, params))
    ref = jax.block_until_ready(reference(x, params))

    assert out.shape == (2, out_channels, 12, 12), out.shape
    # bf16 activation/weight path vs f32 reference -> loosened tolerance
    # (stats / accumulators stay f32, bounding the error).
    assert bool(jnp.allclose(out, ref, atol=5e-2, rtol=5e-2)), \
        float(jnp.max(jnp.abs(out - ref)))

    print("KERNEL_OK")
</pallas_src>

<mosaic_0001>
module attributes {stable_mosaic.version = 11 : i64} {
  func.func @conv1_stats_kernel(%arg0: i32, %arg1: i32, %arg2: memref<1x272x4xbf16, #tpu.memory_space<vmem>>, %arg3: memref<36x2xbf16, #tpu.memory_space<vmem>>, %arg4: memref<1x2xf32, #tpu.memory_space<vmem>>, %arg5: memref<1x232x2xbf16, #tpu.memory_space<vmem>>, %arg6: memref<1x1x2xf32, #tpu.memory_space<vmem>>, %arg7: memref<1x1x2xf32, #tpu.memory_space<vmem>>) attributes {dimension_semantics = [#tpu.dimension_semantics<parallel>, #tpu.dimension_semantics<arbitrary>], iteration_bounds = array<i64: 2, 1>, scalar_prefetch = 0 : i64, scratch_operands = 0 : i64, tpu.core_type = #tpu.core_type<tc>, window_params = [{transform_indices = @transform_0, window_bounds = array<i64: 1, 272, 4>}, {pipeline_mode = #tpu.pipeline_mode<synchronous>, transform_indices = @transform_1, window_bounds = array<i64: 36, 2>}, {pipeline_mode = #tpu.pipeline_mode<synchronous>, transform_indices = @transform_2, window_bounds = array<i64: 1, 2>}, {transform_indices = @transform_3, window_bounds = array<i64: 1, 232, 2>}, {transform_indices = @transform_4, window_bounds = array<i64: 1, 1, 2>}, {transform_indices = @transform_5, window_bounds = array<i64: 1, 1, 2>}]} {
    %cst = arith.constant 0.000000e+00 : f32
    %0 = vector.broadcast %cst : f32 to vector<232x2xf32>
    %c0 = arith.constant 0 : index
    %c0_0 = arith.constant 0 : index
    %c0_1 = arith.constant 0 : index
    %1 = vector.load %arg2[%c0, %c0_0, %c0_1] : memref<1x272x4xbf16, #tpu.memory_space<vmem>>, vector<1x232x4xbf16>
    %2 = vector.shape_cast %1 : vector<1x232x4xbf16> to vector<232x4xbf16>
    %c0_2 = arith.constant 0 : index
    %c0_3 = arith.constant 0 : index
    %3 = vector.load %arg3[%c0_2, %c0_3] : memref<36x2xbf16, #tpu.memory_space<vmem>>, vector<4x2xbf16>
    %cst_4 = arith.constant dense<0.000000e+00> : vector<232x2xf32>
    %4 = tpu.matmul %2, %3, %cst_4 {dimension_numbers = #tpu.dot_dimension_numbers<[1], [0], [0], [1], [0, 0, 1, 1], [], []>} : vector<232x4xbf16>, vector<4x2xbf16>, vector<232x2xf32> -> vector<232x2xf32>
    %5 = arith.addf %0, %4 : vector<232x2xf32>
    %c0_5 = arith.constant 0 : index
    %c1 = arith.constant 1 : index
    %c0_6 = arith.constant 0 : index
    %6 = vector.load %arg2[%c0_5, %c1, %c0_6] : memref<1x272x4xbf16, #tpu.memory_space<vmem>>, vector<1x232x4xbf16>
    %7 = vector.shape_cast %6 : vector<1x232x4xbf16> to vector<232x4xbf16>
    %c4 = arith.constant 4 : index
    %c0_7 = arith.constant 0 : index
    %8 = vector.load %arg3[%c4, %c0_7] : memref<36x2xbf16, #tpu.memory_space<vmem>>, vector<4x2xbf16>
    %cst_8 = arith.constant dense<0.000000e+00> : vector<232x2xf32>
    %9 = tpu.matmul %7, %8, %cst_8 {dimension_numbers = #tpu.dot_dimension_numbers<[1], [0], [0], [1], [0, 0, 1, 1], [], []>} : vector<232x4xbf16>, vector<4x2xbf16>, vector<232x2xf32> -> vector<232x2xf32>
    %10 = arith.addf %5, %9 : vector<232x2xf32>
    %c0_9 = arith.constant 0 : index
    %c2 = arith.constant 2 : index
    %c0_10 = arith.constant 0 : index
    %11 = vector.load %arg2[%c0_9, %c2, %c0_10] : memref<1x272x4xbf16, #tpu.memory_space<vmem>>, vector<1x232x4xbf16>
    %12 = vector.shape_cast %11 : vector<1x232x4xbf16> to vector<232x4xbf16>
    %c8 = arith.constant 8 : index
    %c0_11 = arith.constant 0 : index
    %13 = vector.load %arg3[%c8, %c0_11] : memref<36x2xbf16, #tpu.memory_space<vmem>>, vector<4x2xbf16>
    %cst_12 = arith.constant dense<0.000000e+00> : vector<232x2xf32>
    %14 = tpu.matmul %12, %13, %cst_12 {dimension_numbers = #tpu.dot_dimension_numbers<[1], [0], [0], [1], [0, 0, 1, 1], [], []>} : vector<232x4xbf16>, vector<4x2xbf16>, vector<232x2xf32> -> vector<232x2xf32>
    %15 = arith.addf %10, %14 : vector<232x2xf32>
    %c0_13 = arith.constant 0 : index
    %c16 = arith.constant 16 : index
    %c0_14 = arith.constant 0 : index
    %16 = vector.load %arg2[%c0_13, %c16, %c0_14] : memref<1x272x4xbf16, #tpu.memory_space<vmem>>, vector<1x232x4xbf16>
    %17 = vector.shape_cast %16 : vector<1x232x4xbf16> to vector<232x4xbf16>
    %c12 = arith.constant 12 : index
    %c0_15 = arith.constant 0 : index
    %18 = vector.load %arg3[%c12, %c0_15] : memref<36x2xbf16, #tpu.memory_space<vmem>>, vector<4x2xbf16>
    %cst_16 = arith.constant dense<0.000000e+00> : vector<232x2xf32>
    %19 = tpu.matmul %17, %18, %cst_16 {dimension_numbers = #tpu.dot_dimension_numbers<[1], [0], [0], [1], [0, 0, 1, 1], [], []>} : vector<232x4xbf16>, vector<4x2xbf16>, vector<232x2xf32> -> vector<232x2xf32>
    %20 = arith.addf %15, %19 : vector<232x2xf32>
    %c0_17 = arith.constant 0 : index
    %c17 = arith.constant 17 : index
    %c0_18 = arith.constant 0 : index
    %21 = vector.load %arg2[%c0_17, %c17, %c0_18] : memref<1x272x4xbf16, #tpu.memory_space<vmem>>, vector<1x232x4xbf16>
    %22 = vector.shape_cast %21 : vector<1x232x4xbf16> to vector<232x4xbf16>
    %c16_19 = arith.constant 16 : index
    %c0_20 = arith.constant 0 : index
    %23 = vector.load %arg3[%c16_19, %c0_20] : memref<36x2xbf16, #tpu.memory_space<vmem>>, vector<4x2xbf16>
    %cst_21 = arith.constant dense<0.000000e+00> : vector<232x2xf32>
    %24 = tpu.matmul %22, %23, %cst_21 {dimension_numbers = #tpu.dot_dimension_numbers<[1], [0], [0], [1], [0, 0, 1, 1], [], []>} : vector<232x4xbf16>, vector<4x2xbf16>, vector<232x2xf32> -> vector<232x2xf32>
    %25 = arith.addf %20, %24 : vector<232x2xf32>
    %c0_22 = arith.constant 0 : index
    %c18 = arith.constant 18 : index
    %c0_23 = arith.constant 0 : index
    %26 = vector.load %arg2[%c0_22, %c18, %c0_23] : memref<1x272x4xbf16, #tpu.memory_space<vmem>>, vector<1x232x4xbf16>
    %27 = vector.shape_cast %26 : vector<1x232x4xbf16> to vector<232x4xbf16>
    %c20 = arith.constant 20 : index
    %c0_24 = arith.constant 0 : index
    %28 = vector.load %arg3[%c20, %c0_24] : memref<36x2xbf16, #tpu.memory_space<vmem>>, vector<4x2xbf16>
    %cst_25 = arith.constant dense<0.000000e+00> : vector<232x2xf32>
    %29 = tpu.matmul %27, %28, %cst_25 {dimension_numbers = #tpu.dot_dimension_numbers<[1], [0], [0], [1], [0, 0, 1, 1], [], []>} : vector<232x4xbf16>, vector<4x2xbf16>, vector<232x2xf32> -> vector<232x2xf32>
    %30 = arith.addf %25, %29 : vector<232x2xf32>
    %c0_26 = arith.constant 0 : index
    %c32 = arith.constant 32 : index
    %c0_27 = arith.constant 0 : index
    %31 = vector.load %arg2[%c0_26, %c32, %c0_27] : memref<1x272x4xbf16, #tpu.memory_space<vmem>>, vector<1x232x4xbf16>
    %32 = vector.shape_cast %31 : vector<1x232x4xbf16> to vector<232x4xbf16>
    %c24 = arith.constant 24 : index
    %c0_28 = arith.constant 0 : index
    %33 = vector.load %arg3[%c24, %c0_28] : memref<36x2xbf16, #tpu.memory_space<vmem>>, vector<4x2xbf16>
    %cst_29 = arith.constant dense<0.000000e+00> : vector<232x2xf32>
    %34 = tpu.matmul %32, %33, %cst_29 {dimension_numbers = #tpu.dot_dimension_numbers<[1], [0], [0], [1], [0, 0, 1, 1], [], []>} : vector<232x4xbf16>, vector<4x2xbf16>, vector<232x2xf32> -> vector<232x2xf32>
    %35 = arith.addf %30, %34 : vector<232x2xf32>
    %c0_30 = arith.constant 0 : index
    %c33 = arith.constant 33 : index
    %c0_31 = arith.constant 0 : index
    %36 = vector.load %arg2[%c0_30, %c33, %c0_31] : memref<1x272x4xbf16, #tpu.memory_space<vmem>>, vector<1x232x4xbf16>
    %37 = vector.shape_cast %36 : vector<1x232x4xbf16> to vector<232x4xbf16>
    %c28 = arith.constant 28 : index
    %c0_32 = arith.constant 0 : index
    %38 = vector.load %arg3[%c28, %c0_32] : memref<36x2xbf16, #tpu.memory_space<vmem>>, vector<4x2xbf16>
    %cst_33 = arith.constant dense<0.000000e+00> : vector<232x2xf32>
    %39 = tpu.matmul %37, %38, %cst_33 {dimension_numbers = #tpu.dot_dimension_numbers<[1], [0], [0], [1], [0, 0, 1, 1], [], []>} : vector<232x4xbf16>, vector<4x2xbf16>, vector<232x2xf32> -> vector<232x2xf32>
    %40 = arith.addf %35, %39 : vector<232x2xf32>
    %c0_34 = arith.constant 0 : index
    %c34 = arith.constant 34 : index
    %c0_35 = arith.constant 0 : index
    %41 = vector.load %arg2[%c0_34, %c34, %c0_35] : memref<1x272x4xbf16, #tpu.memory_space<vmem>>, vector<1x232x4xbf16>
    %42 = vector.shape_cast %41 : vector<1x232x4xbf16> to vector<232x4xbf16>
    %c32_36 = arith.constant 32 : index
    %c0_37 = arith.constant 0 : index
    %43 = vector.load %arg3[%c32_36, %c0_37] : memref<36x2xbf16, #tpu.memory_space<vmem>>, vector<4x2xbf16>
    %cst_38 = arith.constant dense<0.000000e+00> : vector<232x2xf32>
    %44 = tpu.matmul %42, %43, %cst_38 {dimension_numbers = #tpu.dot_dimension_numbers<[1], [0], [0], [1], [0, 0, 1, 1], [], []>} : vector<232x4xbf16>, vector<4x2xbf16>, vector<232x2xf32> -> vector<232x2xf32>
    %45 = arith.addf %40, %44 : vector<232x2xf32>
    %c0_39 = arith.constant 0 : index
    %c0_40 = arith.constant 0 : index
    %46 = vector.load %arg4[%c0_39, %c0_40] : memref<1x2xf32, #tpu.memory_space<vmem>>, vector<1x2xf32>
    %47 = vector.broadcast %46 : vector<1x2xf32> to vector<232x2xf32>
    %48 = arith.addf %45, %47 : vector<232x2xf32>
    %49 = arith.truncf %48 : vector<232x2xf32> to vector<232x2xbf16>
    %c0_41 = arith.constant 0 : index
    %c0_42 = arith.constant 0 : index
    %c0_43 = arith.constant 0 : index
    %50 = vector.load %arg5[%c0_41, %c0_42, %c0_43] : memref<1x232x2xbf16, #tpu.memory_space<vmem>>, vector<1x232x2xbf16>
    %51 = vector.shape_cast %50 : vector<1x232x2xbf16> to vector<232x2xbf16>
    %52 = vector.shape_cast %49 : vector<232x2xbf16> to vector<1x232x2xbf16>
    tpu.vector_store %arg5[%c0_41, %c0_42, %c0_43], %52 {strides = array<i32>} : memref<1x232x2xbf16, #tpu.memory_space<vmem>>, vector<1x232x2xbf16>,
    %53 = tpu.iota {dimensions = array<i32: 0>} : vector<232x1xi32>
    %c16_i32 = arith.constant 16 : i32
    %c0_i32 = arith.constant 0 : i32
    %54 = arith.cmpi eq, %c16_i32, %c0_i32 : i32
    %c1_i32 = arith.constant 1 : i32
    %55 = arith.select %54, %c1_i32, %c16_i32 : i32
    %56 = vector.broadcast %55 : i32 to vector<232x1xi32>
    %57 = arith.remsi %53, %56 : vector<232x1xi32>
    %c0_i32_44 = arith.constant 0 : i32
    %58 = vector.broadcast %c0_i32_44 : i32 to vector<232x1xi32>
    %59 = arith.cmpi ne, %57, %58 : vector<232x1xi32>
    %c0_i32_45 = arith.constant 0 : i32
    %60 = vector.broadcast %c0_i32_45 : i32 to vector<232x1xi32>
    %61 = arith.cmpi slt, %57, %60 : vector<232x1xi32>
    %c0_i32_46 = arith.constant 0 : i32
    %62 = arith.cmpi slt, %55, %c0_i32_46 : i32
    %63 = vector.broadcast %62 : i1 to vector<232x1xi1>
    %64 = vector.broadcast %63 : vector<232x1xi1> to vector<232x1xi1>
    %65 = arith.xori %61, %64 : vector<232x1xi1>
    %66 = arith.andi %65, %59 : vector<232x1xi1>
    %67 = vector.broadcast %55 : i32 to vector<232x1xi32>
    %68 = arith.addi %57, %67 : vector<232x1xi32>
    %69 = arith.select %66, %68, %57 : vector<232x1xi1>, vector<232x1xi32>
    %c14_i32 = arith.constant 14 : i32
    %70 = vector.broadcast %c14_i32 : i32 to vector<232x1xi32>
    %71 = arith.cmpi slt, %69, %70 : vector<232x1xi32>
    %c222_i32 = arith.constant 222 : i32
    %72 = vector.broadcast %c222_i32 : i32 to vector<232x1xi32>
    %73 = arith.cmpi slt, %53, %72 : vector<232x1xi32>
    %74 = arith.andi %71, %73 : vector<232x1xi1>
    %75 = arith.extui %74 : vector<232x1xi1> to vector<232x1xi32>
    %76 = arith.sitofp %75 : vector<232x1xi32> to vector<232x1xf32>
    %77 = vector.broadcast %76 : vector<232x1xf32> to vector<232x2xf32>
    %78 = arith.mulf %45, %77 : vector<232x2xf32>
    %c0_i32_47 = arith.constant 0 : i32
    %79 = arith.cmpi eq, %arg1, %c0_i32_47 : i32
    %80 = arith.extui %79 : i1 to i32
    %c0_i32_48 = arith.constant 0 : i32
    %81 = arith.cmpi ne, %80, %c0_i32_48 : i32
    scf.if %81 {
      %cst_63 = arith.constant 0.000000e+00 : f32
      %99 = vector.broadcast %cst_63 : f32 to vector<1x2xf32>
      %c0_64 = arith.constant 0 : index
      %c0_65 = arith.constant 0 : index
      %c0_66 = arith.constant 0 : index
      %100 = vector.load %arg6[%c0_64, %c0_65, %c0_66] : memref<1x1x2xf32, #tpu.memory_space<vmem>>, vector<1x1x2xf32>
      %101 = vector.shape_cast %100 : vector<1x1x2xf32> to vector<1x2xf32>
      %102 = vector.shape_cast %99 : vector<1x2xf32> to vector<1x1x2xf32>
      tpu.vector_store %arg6[%c0_64, %c0_65, %c0_66], %102 {strides = array<i32>} : memref<1x1x2xf32, #tpu.memory_space<vmem>>, vector<1x1x2xf32>,
      %cst_67 = arith.constant 0.000000e+00 : f32
      %103 = vector.broadcast %cst_67 : f32 to vector<1x2xf32>
      %c0_68 = arith.constant 0 : index
      %c0_69 = arith.constant 0 : index
      %c0_70 = arith.constant 0 : index
      %104 = vector.load %arg7[%c0_68, %c0_69, %c0_70] : memref<1x1x2xf32, #tpu.memory_space<vmem>>, vector<1x1x2xf32>
      %105 = vector.shape_cast %104 : vector<1x1x2xf32> to vector<1x2xf32>
      %106 = vector.shape_cast %103 : vector<1x2xf32> to vector<1x1x2xf32>
      tpu.vector_store %arg7[%c0_68, %c0_69, %c0_70], %106 {strides = array<i32>} : memref<1x1x2xf32, #tpu.memory_space<vmem>>, vector<1x1x2xf32>,
    } else {
    }
    %c0_49 = arith.constant 0 : index
    %c0_50 = arith.constant 0 : index
    %c0_51 = arith.constant 0 : index
    %82 = vector.load %arg6[%c0_49, %c0_50, %c0_51] : memref<1x1x2xf32, #tpu.memory_space<vmem>>, vector<1x1x2xf32>
    %83 = vector.shape_cast %82 : vector<1x1x2xf32> to vector<1x2xf32>
    %cst_52 = arith.constant dense<0.000000e+00> : vector<2xf32>
    %84 = vector.multi_reduction <add>, %78, %cst_52 [0] : vector<232x2xf32> to vector<2xf32>
    %85 = vector.shape_cast %84 : vector<2xf32> to vector<1x2xf32>
    %86 = arith.addf %83, %85 : vector<1x2xf32>
    %c0_53 = arith.constant 0 : index
    %c0_54 = arith.constant 0 : index
    %c0_55 = arith.constant 0 : index
    %87 = vector.load %arg6[%c0_53, %c0_54, %c0_55] : memref<1x1x2xf32, #tpu.memory_space<vmem>>, vector<1x1x2xf32>
    %88 = vector.shape_cast %87 : vector<1x1x2xf32> to vector<1x2xf32>
    %89 = vector.shape_cast %86 : vector<1x2xf32> to vector<1x1x2xf32>
    tpu.vector_store %arg6[%c0_53, %c0_54, %c0_55], %89 {strides = array<i32>} : memref<1x1x2xf32, #tpu.memory_space<vmem>>, vector<1x1x2xf32>,
    %c0_56 = arith.constant 0 : index
    %c0_57 = arith.constant 0 : index
    %c0_58 = arith.constant 0 : index
    %90 = vector.load %arg7[%c0_56, %c0_57, %c0_58] : memref<1x1x2xf32, #tpu.memory_space<vmem>>, vector<1x1x2xf32>
    %91 = vector.shape_cast %90 : vector<1x1x2xf32> to vector<1x2xf32>
    %92 = arith.mulf %78, %45 : vector<232x2xf32>
    %cst_59 = arith.constant dense<0.000000e+00> : vector<2xf32>
    %93 = vector.multi_reduction <add>, %92, %cst_59 [0] : vector<232x2xf32> to vector<2xf32>
    %94 = vector.shape_cast %93 : vector<2xf32> to vector<1x2xf32>
    %95 = arith.addf %91, %94 : vector<1x2xf32>
    %c0_60 = arith.constant 0 : index
    %c0_61 = arith.constant 0 : index
    %c0_62 = arith.constant 0 : index
    %96 = vector.load %arg7[%c0_60, %c0_61, %c0_62] : memref<1x1x2xf32, #tpu.memory_space<vmem>>, vector<1x1x2xf32>
    %97 = vector.shape_cast %96 : vector<1x1x2xf32> to vector<1x2xf32>
    %98 = vector.shape_cast %95 : vector<1x2xf32> to vector<1x1x2xf32>
    tpu.vector_store %arg7[%c0_60, %c0_61, %c0_62], %98 {strides = array<i32>} : memref<1x1x2xf32, #tpu.memory_space<vmem>>, vector<1x1x2xf32>,
    return
  }
  func.func @transform_0(%arg0: i32, %arg1: i32) -> (i32, i32, i32) {
    %c1_i32 = arith.constant 1 : i32
    %0 = arith.muli %arg0, %c1_i32 : i32
    %1 = arith.addi %0, %arg1 : i32
    %c0_i32 = arith.constant 0 : i32
    %c0_i32_0 = arith.constant 0 : i32
    %c0_i32_1 = arith.constant 0 : i32
    return %1, %c0_i32, %c0_i32_0 : i32, i32, i32
  }
  func.func @transform_1(%arg0: i32, %arg1: i32) -> (i32, i32) {
    %c0_i32 = arith.constant 0 : i32
    %c0_i32_0 = arith.constant 0 : i32
    %c0_i32_1 = arith.constant 0 : i32
    return %c0_i32, %c0_i32_0 : i32, i32
  }
  func.func @transform_2(%arg0: i32, %arg1: i32) -> (i32, i32) {
    %c0_i32 = arith.constant 0 : i32
    %c0_i32_0 = arith.constant 0 : i32
    %c0_i32_1 = arith.constant 0 : i32
    return %c0_i32, %c0_i32_0 : i32, i32
  }
  func.func @transform_3(%arg0: i32, %arg1: i32) -> (i32, i32, i32) {
    %c1_i32 = arith.constant 1 : i32
    %0 = arith.muli %arg0, %c1_i32 : i32
    %1 = arith.addi %0, %arg1 : i32
    %c0_i32 = arith.constant 0 : i32
    %c0_i32_0 = arith.constant 0 : i32
    %c0_i32_1 = arith.constant 0 : i32
    return %1, %c0_i32, %c0_i32_0 : i32, i32, i32
  }
  func.func @transform_4(%arg0: i32, %arg1: i32) -> (i32, i32, i32) {
    %c0_i32 = arith.constant 0 : i32
    %c0_i32_0 = arith.constant 0 : i32
    %c0_i32_1 = arith.constant 0 : i32
    return %arg0, %c0_i32, %c0_i32_0 : i32, i32, i32
  }
  func.func @transform_5(%arg0: i32, %arg1: i32) -> (i32, i32, i32) {
    %c0_i32 = arith.constant 0 : i32
    %c0_i32_0 = arith.constant 0 : i32
    %c0_i32_1 = arith.constant 0 : i32
    return %arg0, %c0_i32, %c0_i32_0 : i32, i32, i32
  }
}

module attributes {stable_mosaic.version = 11 : i64} {
  func.func @bn1_conv2_stats_kernel(%arg0: i32, %arg1: i32, %arg2: memref<1x232x2xbf16, #tpu.memory_space<vmem>>, %arg3: memref<1x2xf32, #tpu.memory_space<vmem>>, %arg4: memref<1x2xf32, #tpu.memory_space<vmem>>, %arg5: memref<18x4xbf16, #tpu.memory_space<vmem>>, %arg6: memref<1x4xf32, #tpu.memory_space<vmem>>, %arg7: memref<1x192x4xbf16, #tpu.memory_space<vmem>>, %arg8: memref<1x1x4xf32, #tpu.memory_space<vmem>>, %arg9: memref<1x1x4xf32, #tpu.memory_space<vmem>>, %arg10: memref<232x2xbf16, #tpu.memory_space<vmem>>) attributes {dimension_semantics = [#tpu.dimension_semantics<parallel>, #tpu.dimension_semantics<arbitrary>], iteration_bounds = array<i64: 2, 1>, scalar_prefetch = 0 : i64, scratch_operands = 1 : i64, tpu.core_type = #tpu.core_type<tc>, window_params = [{transform_indices = @transform_0, window_bounds = array<i64: 1, 232, 2>}, {pipeline_mode = #tpu.pipeline_mode<synchronous>, transform_indices = @transform_1, window_bounds = array<i64: 1, 2>}, {pipeline_mode = #tpu.pipeline_mode<synchronous>, transform_indices = @transform_2, window_bounds = array<i64: 1, 2>}, {pipeline_mode = #tpu.pipeline_mode<synchronous>, transform_indices = @transform_3, window_bounds = array<i64: 18, 4>}, {pipeline_mode = #tpu.pipeline_mode<synchronous>, transform_indices = @transform_4, window_bounds = array<i64: 1, 4>}, {transform_indices = @transform_5, window_bounds = array<i64: 1, 192, 4>}, {transform_indices = @transform_6, window_bounds = array<i64: 1, 1, 4>}, {transform_indices = @transform_7, window_bounds = array<i64: 1, 1, 4>}]} {
    %c0 = arith.constant 0 : index
    %c0_0 = arith.constant 0 : index
    %c0_1 = arith.constant 0 : index
    %0 = vector.load %arg2[%c0, %c0_0, %c0_1] : memref<1x232x2xbf16, #tpu.memory_space<vmem>>, vector<1x232x2xbf16>
    %1 = vector.shape_cast %0 : vector<1x232x2xbf16> to vector<232x2xbf16>
    %2 = arith.extf %1 : vector<232x2xbf16> to vector<232x2xf32>
    %c0_2 = arith.constant 0 : index
    %c0_3 = arith.constant 0 : index
    %3 = vector.load %arg3[%c0_2, %c0_3] : memref<1x2xf32, #tpu.memory_space<vmem>>, vector<1x2xf32>
    %4 = vector.broadcast %3 : vector<1x2xf32> to vector<232x2xf32>
    %5 = arith.mulf %2, %4 : vector<232x2xf32>
    %c0_4 = arith.constant 0 : index
    %c0_5 = arith.constant 0 : index
    %6 = vector.load %arg4[%c0_4, %c0_5] : memref<1x2xf32, #tpu.memory_space<vmem>>, vector<1x2xf32>
    %7 = vector.broadcast %6 : vector<1x2xf32> to vector<232x2xf32>
    %8 = arith.addf %5, %7 : vector<232x2xf32>
    %cst = arith.constant 0.000000e+00 : f32
    %9 = vector.broadcast %cst : f32 to vector<232x2xf32>
    %10 = arith.maximumf %8, %9 : vector<232x2xf32>
    %11 = arith.truncf %10 : vector<232x2xf32> to vector<232x2xbf16>
    %c0_6 = arith.constant 0 : index
    %c0_7 = arith.constant 0 : index
    %12 = vector.load %arg10[%c0_6, %c0_7] : memref<232x2xbf16, #tpu.memory_space<vmem>>, vector<232x2xbf16>
    tpu.vector_store %arg10[%c0_6, %c0_7], %11 {strides = array<i32>} : memref<232x2xbf16, #tpu.memory_space<vmem>>, vector<232x2xbf16>,
    %cst_8 = arith.constant 0.000000e+00 : f32
    %13 = vector.broadcast %cst_8 : f32 to vector<192x4xf32>
    %c0_9 = arith.constant 0 : index
    %c0_10 = arith.constant 0 : index
    %14 = vector.load %arg10[%c0_9, %c0_10] : memref<232x2xbf16, #tpu.memory_space<vmem>>, vector<192x2xbf16>
    %c0_11 = arith.constant 0 : index
    %c0_12 = arith.constant 0 : index
    %15 = vector.load %arg5[%c0_11, %c0_12] : memref<18x4xbf16, #tpu.memory_space<vmem>>, vector<2x4xbf16>
    %cst_13 = arith.constant dense<0.000000e+00> : vector<192x4xf32>
    %16 = tpu.matmul %14, %15, %cst_13 {dimension_numbers = #tpu.dot_dimension_numbers<[1], [0], [0], [1], [0, 0, 1, 1], [], []>} : vector<192x2xbf16>, vector<2x4xbf16>, vector<192x4xf32> -> vector<192x4xf32>
    %17 = arith.addf %13, %16 : vector<192x4xf32>
    %c1 = arith.constant 1 : index
    %c0_14 = arith.constant 0 : index
    %18 = vector.load %arg10[%c1, %c0_14] : memref<232x2xbf16, #tpu.memory_space<vmem>>, vector<192x2xbf16>
    %c2 = arith.constant 2 : index
    %c0_15 = arith.constant 0 : index
    %19 = vector.load %arg5[%c2, %c0_15] : memref<18x4xbf16, #tpu.memory_space<vmem>>, vector<2x4xbf16>
    %cst_16 = arith.constant dense<0.000000e+00> : vector<192x4xf32>
    %20 = tpu.matmul %18, %19, %cst_16 {dimension_numbers = #tpu.dot_dimension_numbers<[1], [0], [0], [1], [0, 0, 1, 1], [], []>} : vector<192x2xbf16>, vector<2x4xbf16>, vector<192x4xf32> -> vector<192x4xf32>
    %21 = arith.addf %17, %20 : vector<192x4xf32>
    %c2_17 = arith.constant 2 : index
    %c0_18 = arith.constant 0 : index
    %22 = vector.load %arg10[%c2_17, %c0_18] : memref<232x2xbf16, #tpu.memory_space<vmem>>, vector<192x2xbf16>
    %c4 = arith.constant 4 : index
    %c0_19 = arith.constant 0 : index
    %23 = vector.load %arg5[%c4, %c0_19] : memref<18x4xbf16, #tpu.memory_space<vmem>>, vector<2x4xbf16>
    %cst_20 = arith.constant dense<0.000000e+00> : vector<192x4xf32>
    %24 = tpu.matmul %22, %23, %cst_20 {dimension_numbers = #tpu.dot_dimension_numbers<[1], [0], [0], [1], [0, 0, 1, 1], [], []>} : vector<192x2xbf16>, vector<2x4xbf16>, vector<192x4xf32> -> vector<192x4xf32>
    %25 = arith.addf %21, %24 : vector<192x4xf32>
    %c16 = arith.constant 16 : index
    %c0_21 = arith.constant 0 : index
    %26 = vector.load %arg10[%c16, %c0_21] : memref<232x2xbf16, #tpu.memory_space<vmem>>, vector<192x2xbf16>
    %c6 = arith.constant 6 : index
    %c0_22 = arith.constant 0 : index
    %27 = vector.load %arg5[%c6, %c0_22] : memref<18x4xbf16, #tpu.memory_space<vmem>>, vector<2x4xbf16>
    %cst_23 = arith.constant dense<0.000000e+00> : vector<192x4xf32>
    %28 = tpu.matmul %26, %27, %cst_23 {dimension_numbers = #tpu.dot_dimension_numbers<[1], [0], [0], [1], [0, 0, 1, 1], [], []>} : vector<192x2xbf16>, vector<2x4xbf16>, vector<192x4xf32> -> vector<192x4xf32>
    %29 = arith.addf %25, %28 : vector<192x4xf32>
    %c17 = arith.constant 17 : index
    %c0_24 = arith.constant 0 : index
    %30 = vector.load %arg10[%c17, %c0_24] : memref<232x2xbf16, #tpu.memory_space<vmem>>, vector<192x2xbf16>
    %c8 = arith.constant 8 : index
    %c0_25 = arith.constant 0 : index
    %31 = vector.load %arg5[%c8, %c0_25] : memref<18x4xbf16, #tpu.memory_space<vmem>>, vector<2x4xbf16>
    %cst_26 = arith.constant dense<0.000000e+00> : vector<192x4xf32>
    %32 = tpu.matmul %30, %31, %cst_26 {dimension_numbers = #tpu.dot_dimension_numbers<[1], [0], [0], [1], [0, 0, 1, 1], [], []>} : vector<192x2xbf16>, vector<2x4xbf16>, vector<192x4xf32> -> vector<192x4xf32>
    %33 = arith.addf %29, %32 : vector<192x4xf32>
    %c18 = arith.constant 18 : index
    %c0_27 = arith.constant 0 : index
    %34 = vector.load %arg10[%c18, %c0_27] : memref<232x2xbf16, #tpu.memory_space<vmem>>, vector<192x2xbf16>
    %c10 = arith.constant 10 : index
    %c0_28 = arith.constant 0 : index
    %35 = vector.load %arg5[%c10, %c0_28] : memref<18x4xbf16, #tpu.memory_space<vmem>>, vector<2x4xbf16>
    %cst_29 = arith.constant dense<0.000000e+00> : vector<192x4xf32>
    %36 = tpu.matmul %34, %35, %cst_29 {dimension_numbers = #tpu.dot_dimension_numbers<[1], [0], [0], [1], [0, 0, 1, 1], [], []>} : vector<192x2xbf16>, vector<2x4xbf16>, vector<192x4xf32> -> vector<192x4xf32>
    %37 = arith.addf %33, %36 : vector<192x4xf32>
    %c32 = arith.constant 32 : index
    %c0_30 = arith.constant 0 : index
    %38 = vector.load %arg10[%c32, %c0_30] : memref<232x2xbf16, #tpu.memory_space<vmem>>, vector<192x2xbf16>
    %c12 = arith.constant 12 : index
    %c0_31 = arith.constant 0 : index
    %39 = vector.load %arg5[%c12, %c0_31] : memref<18x4xbf16, #tpu.memory_space<vmem>>, vector<2x4xbf16>
    %cst_32 = arith.constant dense<0.000000e+00> : vector<192x4xf32>
    %40 = tpu.matmul %38, %39, %cst_32 {dimension_numbers = #tpu.dot_dimension_numbers<[1], [0], [0], [1], [0, 0, 1, 1], [], []>} : vector<192x2xbf16>, vector<2x4xbf16>, vector<192x4xf32> -> vector<192x4xf32>
    %41 = arith.addf %37, %40 : vector<192x4xf32>
    %c33 = arith.constant 33 : index
    %c0_33 = arith.constant 0 : index
    %42 = vector.load %arg10[%c33, %c0_33] : memref<232x2xbf16, #tpu.memory_space<vmem>>, vector<192x2xbf16>
    %c14 = arith.constant 14 : index
    %c0_34 = arith.constant 0 : index
    %43 = vector.load %arg5[%c14, %c0_34] : memref<18x4xbf16, #tpu.memory_space<vmem>>, vector<2x4xbf16>
    %cst_35 = arith.constant dense<0.000000e+00> : vector<192x4xf32>
    %44 = tpu.matmul %42, %43, %cst_35 {dimension_numbers = #tpu.dot_dimension_numbers<[1], [0], [0], [1], [0, 0, 1, 1], [], []>} : vector<192x2xbf16>, vector<2x4xbf16>, vector<192x4xf32> -> vector<192x4xf32>
    %45 = arith.addf %41, %44 : vector<192x4xf32>
    %c34 = arith.constant 34 : index
    %c0_36 = arith.constant 0 : index
    %46 = vector.load %arg10[%c34, %c0_36] : memref<232x2xbf16, #tpu.memory_space<vmem>>, vector<192x2xbf16>
    %c16_37 = arith.constant 16 : index
    %c0_38 = arith.constant 0 : index
    %47 = vector.load %arg5[%c16_37, %c0_38] : memref<18x4xbf16, #tpu.memory_space<vmem>>, vector<2x4xbf16>
    %cst_39 = arith.constant dense<0.000000e+00> : vector<192x4xf32>
    %48 = tpu.matmul %46, %47, %cst_39 {dimension_numbers = #tpu.dot_dimension_numbers<[1], [0], [0], [1], [0, 0, 1, 1], [], []>} : vector<192x2xbf16>, vector<2x4xbf16>, vector<192x4xf32> -> vector<192x4xf32>
    %49 = arith.addf %45, %48 : vector<192x4xf32>
    %c0_40 = arith.constant 0 : index
    %c0_41 = arith.constant 0 : index
    %50 = vector.load %arg6[%c0_40, %c0_41] : memref<1x4xf32, #tpu.memory_space<vmem>>, vector<1x4xf32>
    %51 = vector.broadcast %50 : vector<1x4xf32> to vector<192x4xf32>
    %52 = arith.addf %49, %51 : vector<192x4xf32>
    %53 = arith.truncf %52 : vector<192x4xf32> to vector<192x4xbf16>
    %c0_42 = arith.constant 0 : index
    %c0_43 = arith.constant 0 : index
    %c0_44 = arith.constant 0 : index
    %54 = vector.load %arg7[%c0_42, %c0_43, %c0_44] : memref<1x192x4xbf16, #tpu.memory_space<vmem>>, vector<1x192x4xbf16>
    %55 = vector.shape_cast %54 : vector<1x192x4xbf16> to vector<192x4xbf16>
    %56 = vector.shape_cast %53 : vector<192x4xbf16> to vector<1x192x4xbf16>
    tpu.vector_store %arg7[%c0_42, %c0_43, %c0_44], %56 {strides = array<i32>} : memref<1x192x4xbf16, #tpu.memory_space<vmem>>, vector<1x192x4xbf16>,
    %57 = tpu.iota {dimensions = array<i32: 0>} : vector<192x1xi32>
    %c16_i32 = arith.constant 16 : i32
    %c0_i32 = arith.constant 0 : i32
    %58 = arith.cmpi eq, %c16_i32, %c0_i32 : i32
    %c1_i32 = arith.constant 1 : i32
    %59 = arith.select %58, %c1_i32, %c16_i32 : i32
    %60 = vector.broadcast %59 : i32 to vector<192x1xi32>
    %61 = arith.remsi %57, %60 : vector<192x1xi32>
    %c0_i32_45 = arith.constant 0 : i32
    %62 = vector.broadcast %c0_i32_45 : i32 to vector<192x1xi32>
    %63 = arith.cmpi ne, %61, %62 : vector<192x1xi32>
    %c0_i32_46 = arith.constant 0 : i32
    %64 = vector.broadcast %c0_i32_46 : i32 to vector<192x1xi32>
    %65 = arith.cmpi slt, %61, %64 : vector<192x1xi32>
    %c0_i32_47 = arith.constant 0 : i32
    %66 = arith.cmpi slt, %59, %c0_i32_47 : i32
    %67 = vector.broadcast %66 : i1 to vector<192x1xi1>
    %68 = vector.broadcast %67 : vector<192x1xi1> to vector<192x1xi1>
    %69 = arith.xori %65, %68 : vector<192x1xi1>
    %70 = arith.andi %69, %63 : vector<192x1xi1>
    %71 = vector.broadcast %59 : i32 to vector<192x1xi32>
    %72 = arith.addi %61, %71 : vector<192x1xi32>
    %73 = arith.select %70, %72, %61 : vector<192x1xi1>, vector<192x1xi32>
    %c12_i32 = arith.constant 12 : i32
    %74 = vector.broadcast %c12_i32 : i32 to vector<192x1xi32>
    %75 = arith.cmpi slt, %73, %74 : vector<192x1xi32>
    %c188_i32 = arith.constant 188 : i32
    %76 = vector.broadcast %c188_i32 : i32 to vector<192x1xi32>
    %77 = arith.cmpi slt, %57, %76 : vector<192x1xi32>
    %78 = arith.andi %75, %77 : vector<192x1xi1>
    %79 = arith.extui %78 : vector<192x1xi1> to vector<192x1xi32>
    %80 = arith.sitofp %79 : vector<192x1xi32> to vector<192x1xf32>
    %81 = vector.broadcast %80 : vector<192x1xf32> to vector<192x4xf32>
    %82 = arith.mulf %49, %81 : vector<192x4xf32>
    %c0_i32_48 = arith.constant 0 : i32
    %83 = arith.cmpi eq, %arg1, %c0_i32_48 : i32
    %84 = arith.extui %83 : i1 to i32
    %c0_i32_49 = arith.constant 0 : i32
    %85 = arith.cmpi ne, %84, %c0_i32_49 : i32
    scf.if %85 {
      %cst_64 = arith.constant 0.000000e+00 : f32
      %103 = vector.broadcast %cst_64 : f32 to vector<1x4xf32>
      %c0_65 = arith.constant 0 : index
      %c0_66 = arith.constant 0 : index
      %c0_67 = arith.constant 0 : index
      %104 = vector.load %arg8[%c0_65, %c0_66, %c0_67] : memref<1x1x4xf32, #tpu.memory_space<vmem>>, vector<1x1x4xf32>
      %105 = vector.shape_cast %104 : vector<1x1x4xf32> to vector<1x4xf32>
      %106 = vector.shape_cast %103 : vector<1x4xf32> to vector<1x1x4xf32>
      tpu.vector_store %arg8[%c0_65, %c0_66, %c0_67], %106 {strides = array<i32>} : memref<1x1x4xf32, #tpu.memory_space<vmem>>, vector<1x1x4xf32>,
      %cst_68 = arith.constant 0.000000e+00 : f32
      %107 = vector.broadcast %cst_68 : f32 to vector<1x4xf32>
      %c0_69 = arith.constant 0 : index
      %c0_70 = arith.constant 0 : index
      %c0_71 = arith.constant 0 : index
      %108 = vector.load %arg9[%c0_69, %c0_70, %c0_71] : memref<1x1x4xf32, #tpu.memory_space<vmem>>, vector<1x1x4xf32>
      %109 = vector.shape_cast %108 : vector<1x1x4xf32> to vector<1x4xf32>
      %110 = vector.shape_cast %107 : vector<1x4xf32> to vector<1x1x4xf32>
      tpu.vector_store %arg9[%c0_69, %c0_70, %c0_71], %110 {strides = array<i32>} : memref<1x1x4xf32, #tpu.memory_space<vmem>>, vector<1x1x4xf32>,
    } else {
    }
    %c0_50 = arith.constant 0 : index
    %c0_51 = arith.constant 0 : index
    %c0_52 = arith.constant 0 : index
    %86 = vector.load %arg8[%c0_50, %c0_51, %c0_52] : memref<1x1x4xf32, #tpu.memory_space<vmem>>, vector<1x1x4xf32>
    %87 = vector.shape_cast %86 : vector<1x1x4xf32> to vector<1x4xf32>
    %cst_53 = arith.constant dense<0.000000e+00> : vector<4xf32>
    %88 = vector.multi_reduction <add>, %82, %cst_53 [0] : vector<192x4xf32> to vector<4xf32>
    %89 = vector.shape_cast %88 : vector<4xf32> to vector<1x4xf32>
    %90 = arith.addf %87, %89 : vector<1x4xf32>
    %c0_54 = arith.constant 0 : index
    %c0_55 = arith.constant 0 : index
    %c0_56 = arith.constant 0 : index
    %91 = vector.load %arg8[%c0_54, %c0_55, %c0_56] : memref<1x1x4xf32, #tpu.memory_space<vmem>>, vector<1x1x4xf32>
    %92 = vector.shape_cast %91 : vector<1x1x4xf32> to vector<1x4xf32>
    %93 = vector.shape_cast %90 : vector<1x4xf32> to vector<1x1x4xf32>
    tpu.vector_store %arg8[%c0_54, %c0_55, %c0_56], %93 {strides = array<i32>} : memref<1x1x4xf32, #tpu.memory_space<vmem>>, vector<1x1x4xf32>,
    %c0_57 = arith.constant 0 : index
    %c0_58 = arith.constant 0 : index
    %c0_59 = arith.constant 0 : index
    %94 = vector.load %arg9[%c0_57, %c0_58, %c0_59] : memref<1x1x4xf32, #tpu.memory_space<vmem>>, vector<1x1x4xf32>
    %95 = vector.shape_cast %94 : vector<1x1x4xf32> to vector<1x4xf32>
    %96 = arith.mulf %82, %49 : vector<192x4xf32>
    %cst_60 = arith.constant dense<0.000000e+00> : vector<4xf32>
    %97 = vector.multi_reduction <add>, %96, %cst_60 [0] : vector<192x4xf32> to vector<4xf32>
    %98 = vector.shape_cast %97 : vector<4xf32> to vector<1x4xf32>
    %99 = arith.addf %95, %98 : vector<1x4xf32>
    %c0_61 = arith.constant 0 : index
    %c0_62 = arith.constant 0 : index
    %c0_63 = arith.constant 0 : index
    %100 = vector.load %arg9[%c0_61, %c0_62, %c0_63] : memref<1x1x4xf32, #tpu.memory_space<vmem>>, vector<1x1x4xf32>
    %101 = vector.shape_cast %100 : vector<1x1x4xf32> to vector<1x4xf32>
    %102 = vector.shape_cast %99 : vector<1x4xf32> to vector<1x1x4xf32>
    tpu.vector_store %arg9[%c0_61, %c0_62, %c0_63], %102 {strides = array<i32>} : memref<1x1x4xf32, #tpu.memory_space<vmem>>, vector<1x1x4xf32>,
    return
  }
  func.func @transform_0(%arg0: i32, %arg1: i32) -> (i32, i32, i32) {
    %c1_i32 = arith.constant 1 : i32
    %0 = arith.muli %arg0, %c1_i32 : i32
    %1 = arith.addi %0, %arg1 : i32
    %c0_i32 = arith.constant 0 : i32
    %c0_i32_0 = arith.constant 0 : i32
    %c0_i32_1 = arith.constant 0 : i32
    return %1, %c0_i32, %c0_i32_0 : i32, i32, i32
  }
  func.func @transform_1(%arg0: i32, %arg1: i32) -> (i32, i32) {
    %c0_i32 = arith.constant 0 : i32
    %c0_i32_0 = arith.constant 0 : i32
    %c0_i32_1 = arith.constant 0 : i32
    return %c0_i32, %c0_i32_0 : i32, i32
  }
  func.func @transform_2(%arg0: i32, %arg1: i32) -> (i32, i32) {
    %c0_i32 = arith.constant 0 : i32
    %c0_i32_0 = arith.constant 0 : i32
    %c0_i32_1 = arith.constant 0 : i32
    return %c0_i32, %c0_i32_0 : i32, i32
  }
  func.func @transform_3(%arg0: i32, %arg1: i32) -> (i32, i32) {
    %c0_i32 = arith.constant 0 : i32
    %c0_i32_0 = arith.constant 0 : i32
    %c0_i32_1 = arith.constant 0 : i32
    return %c0_i32, %c0_i32_0 : i32, i32
  }
  func.func @transform_4(%arg0: i32, %arg1: i32) -> (i32, i32) {
    %c0_i32 = arith.constant 0 : i32
    %c0_i32_0 = arith.constant 0 : i32
    %c0_i32_1 = arith.constant 0 : i32
    return %c0_i32, %c0_i32_0 : i32, i32
  }
  func.func @transform_5(%arg0: i32, %arg1: i32) -> (i32, i32, i32) {
    %c1_i32 = arith.constant 1 : i32
    %0 = arith.muli %arg0, %c1_i32 : i32
    %1 = arith.addi %0, %arg1 : i32
    %c0_i32 = arith.constant 0 : i32
    %c0_i32_0 = arith.constant 0 : i32
    %c0_i32_1 = arith.constant 0 : i32
    return %1, %c0_i32, %c0_i32_0 : i32, i32, i32
  }
  func.func @transform_6(%arg0: i32, %arg1: i32) -> (i32, i32, i32) {
    %c0_i32 = arith.constant 0 : i32
    %c0_i32_0 = arith.constant 0 : i32
    %c0_i32_1 = arith.constant 0 : i32
    return %arg0, %c0_i32, %c0_i32_0 : i32, i32, i32
  }
  func.func @transform_7(%arg0: i32, %arg1: i32) -> (i32, i32, i32) {
    %c0_i32 = arith.constant 0 : i32
    %c0_i32_0 = arith.constant 0 : i32
    %c0_i32_1 = arith.constant 0 : i32
    return %arg0, %c0_i32, %c0_i32_0 : i32, i32, i32
  }
}

module attributes {stable_mosaic.version = 11 : i64} {
  func.func @bn2_relu_unwiden_kernel(%arg0: i32, %arg1: memref<1x192x4xbf16, #tpu.memory_space<vmem>>, %arg2: memref<1x4xf32, #tpu.memory_space<vmem>>, %arg3: memref<1x4xf32, #tpu.memory_space<vmem>>, %arg4: memref<1x12x12x4xf32, #tpu.memory_space<vmem>>) attributes {dimension_semantics = [#tpu.dimension_semantics<parallel>], iteration_bounds = array<i64: 2>, scalar_prefetch = 0 : i64, scratch_operands = 0 : i64, tpu.core_type = #tpu.core_type<tc>, window_params = [{transform_indices = @transform_0, window_bounds = array<i64: 1, 192, 4>}, {pipeline_mode = #tpu.pipeline_mode<synchronous>, transform_indices = @transform_1, window_bounds = array<i64: 1, 4>}, {pipeline_mode = #tpu.pipeline_mode<synchronous>, transform_indices = @transform_2, window_bounds = array<i64: 1, 4>}, {transform_indices = @transform_3, window_bounds = array<i64: 1, 12, 12, 4>}]} {
    %c0 = arith.constant 0 : index
    %c0_0 = arith.constant 0 : index
    %0 = vector.load %arg2[%c0, %c0_0] : memref<1x4xf32, #tpu.memory_space<vmem>>, vector<1x4xf32>
    %c0_1 = arith.constant 0 : index
    %c0_2 = arith.constant 0 : index
    %1 = vector.load %arg3[%c0_1, %c0_2] : memref<1x4xf32, #tpu.memory_space<vmem>>, vector<1x4xf32>
    %c0_3 = arith.constant 0 : index
    %c0_4 = arith.constant 0 : index
    %c0_5 = arith.constant 0 : index
    %2 = vector.load %arg1[%c0_3, %c0_4, %c0_5] : memref<1x192x4xbf16, #tpu.memory_space<vmem>>, vector<1x12x4xbf16>
    %3 = vector.shape_cast %2 : vector<1x12x4xbf16> to vector<12x4xbf16>
    %4 = arith.extf %3 : vector<12x4xbf16> to vector<12x4xf32>
    %5 = vector.broadcast %0 : vector<1x4xf32> to vector<12x4xf32>
    %6 = arith.mulf %4, %5 : vector<12x4xf32>
    %7 = vector.broadcast %1 : vector<1x4xf32> to vector<12x4xf32>
    %8 = arith.addf %6, %7 : vector<12x4xf32>
    %cst = arith.constant 0.000000e+00 : f32
    %9 = vector.broadcast %cst : f32 to vector<12x4xf32>
    %10 = arith.maximumf %8, %9 : vector<12x4xf32>
    %c0_6 = arith.constant 0 : index
    %c0_7 = arith.constant 0 : index
    %c0_8 = arith.constant 0 : index
    %c0_9 = arith.constant 0 : index
    %11 = vector.load %arg4[%c0_6, %c0_7, %c0_8, %c0_9] : memref<1x12x12x4xf32, #tpu.memory_space<vmem>>, vector<1x1x12x4xf32>
    %12 = vector.shape_cast %11 : vector<1x1x12x4xf32> to vector<12x4xf32>
    %13 = vector.shape_cast %10 : vector<12x4xf32> to vector<1x1x12x4xf32>
    tpu.vector_store %arg4[%c0_6, %c0_7, %c0_8, %c0_9], %13 {strides = array<i32>} : memref<1x12x12x4xf32, #tpu.memory_space<vmem>>, vector<1x1x12x4xf32>,
    %c0_10 = arith.constant 0 : index
    %c16 = arith.constant 16 : index
    %c0_11 = arith.constant 0 : index
    %14 = vector.load %arg1[%c0_10, %c16, %c0_11] : memref<1x192x4xbf16, #tpu.memory_space<vmem>>, vector<1x12x4xbf16>
    %15 = vector.shape_cast %14 : vector<1x12x4xbf16> to vector<12x4xbf16>
    %16 = arith.extf %15 : vector<12x4xbf16> to vector<12x4xf32>
    %17 = vector.broadcast %0 : vector<1x4xf32> to vector<12x4xf32>
    %18 = arith.mulf %16, %17 : vector<12x4xf32>
    %19 = vector.broadcast %1 : vector<1x4xf32> to vector<12x4xf32>
    %20 = arith.addf %18, %19 : vector<12x4xf32>
    %cst_12 = arith.constant 0.000000e+00 : f32
    %21 = vector.broadcast %cst_12 : f32 to vector<12x4xf32>
    %22 = arith.maximumf %20, %21 : vector<12x4xf32>
    %c0_13 = arith.constant 0 : index
    %c1 = arith.constant 1 : index
    %c0_14 = arith.constant 0 : index
    %c0_15 = arith.constant 0 : index
    %23 = vector.load %arg4[%c0_13, %c1, %c0_14, %c0_15] : memref<1x12x12x4xf32, #tpu.memory_space<vmem>>, vector<1x1x12x4xf32>
    %24 = vector.shape_cast %23 : vector<1x1x12x4xf32> to vector<12x4xf32>
    %25 = vector.shape_cast %22 : vector<12x4xf32> to vector<1x1x12x4xf32>
    tpu.vector_store %arg4[%c0_13, %c1, %c0_14, %c0_15], %25 {strides = array<i32>} : memref<1x12x12x4xf32, #tpu.memory_space<vmem>>, vector<1x1x12x4xf32>,
    %c0_16 = arith.constant 0 : index
    %c32 = arith.constant 32 : index
    %c0_17 = arith.constant 0 : index
    %26 = vector.load %arg1[%c0_16, %c32, %c0_17] : memref<1x192x4xbf16, #tpu.memory_space<vmem>>, vector<1x12x4xbf16>
    %27 = vector.shape_cast %26 : vector<1x12x4xbf16> to vector<12x4xbf16>
    %28 = arith.extf %27 : vector<12x4xbf16> to vector<12x4xf32>
    %29 = vector.broadcast %0 : vector<1x4xf32> to vector<12x4xf32>
    %30 = arith.mulf %28, %29 : vector<12x4xf32>
    %31 = vector.broadcast %1 : vector<1x4xf32> to vector<12x4xf32>
    %32 = arith.addf %30, %31 : vector<12x4xf32>
    %cst_18 = arith.constant 0.000000e+00 : f32
    %33 = vector.broadcast %cst_18 : f32 to vector<12x4xf32>
    %34 = arith.maximumf %32, %33 : vector<12x4xf32>
    %c0_19 = arith.constant 0 : index
    %c2 = arith.constant 2 : index
    %c0_20 = arith.constant 0 : index
    %c0_21 = arith.constant 0 : index
    %35 = vector.load %arg4[%c0_19, %c2, %c0_20, %c0_21] : memref<1x12x12x4xf32, #tpu.memory_space<vmem>>, vector<1x1x12x4xf32>
    %36 = vector.shape_cast %35 : vector<1x1x12x4xf32> to vector<12x4xf32>
    %37 = vector.shape_cast %34 : vector<12x4xf32> to vector<1x1x12x4xf32>
    tpu.vector_store %arg4[%c0_19, %c2, %c0_20, %c0_21], %37 {strides = array<i32>} : memref<1x12x12x4xf32, #tpu.memory_space<vmem>>, vector<1x1x12x4xf32>,
    %c0_22 = arith.constant 0 : index
    %c48 = arith.constant 48 : index
    %c0_23 = arith.constant 0 : index
    %38 = vector.load %arg1[%c0_22, %c48, %c0_23] : memref<1x192x4xbf16, #tpu.memory_space<vmem>>, vector<1x12x4xbf16>
    %39 = vector.shape_cast %38 : vector<1x12x4xbf16> to vector<12x4xbf16>
    %40 = arith.extf %39 : vector<12x4xbf16> to vector<12x4xf32>
    %41 = vector.broadcast %0 : vector<1x4xf32> to vector<12x4xf32>
    %42 = arith.mulf %40, %41 : vector<12x4xf32>
    %43 = vector.broadcast %1 : vector<1x4xf32> to vector<12x4xf32>
    %44 = arith.addf %42, %43 : vector<12x4xf32>
    %cst_24 = arith.constant 0.000000e+00 : f32
    %45 = vector.broadcast %cst_24 : f32 to vector<12x4xf32>
    %46 = arith.maximumf %44, %45 : vector<12x4xf32>
    %c0_25 = arith.constant 0 : index
    %c3 = arith.constant 3 : index
    %c0_26 = arith.constant 0 : index
    %c0_27 = arith.constant 0 : index
    %47 = vector.load %arg4[%c0_25, %c3, %c0_26, %c0_27] : memref<1x12x12x4xf32, #tpu.memory_space<vmem>>, vector<1x1x12x4xf32>
    %48 = vector.shape_cast %47 : vector<1x1x12x4xf32> to vector<12x4xf32>
    %49 = vector.shape_cast %46 : vector<12x4xf32> to vector<1x1x12x4xf32>
    tpu.vector_store %arg4[%c0_25, %c3, %c0_26, %c0_27], %49 {strides = array<i32>} : memref<1x12x12x4xf32, #tpu.memory_space<vmem>>, vector<1x1x12x4xf32>,
    %c0_28 = arith.constant 0 : index
    %c64 = arith.constant 64 : index
    %c0_29 = arith.constant 0 : index
    %50 = vector.load %arg1[%c0_28, %c64, %c0_29] : memref<1x192x4xbf16, #tpu.memory_space<vmem>>, vector<1x12x4xbf16>
    %51 = vector.shape_cast %50 : vector<1x12x4xbf16> to vector<12x4xbf16>
    %52 = arith.extf %51 : vector<12x4xbf16> to vector<12x4xf32>
    %53 = vector.broadcast %0 : vector<1x4xf32> to vector<12x4xf32>
    %54 = arith.mulf %52, %53 : vector<12x4xf32>
    %55 = vector.broadcast %1 : vector<1x4xf32> to vector<12x4xf32>
    %56 = arith.addf %54, %55 : vector<12x4xf32>
    %cst_30 = arith.constant 0.000000e+00 : f32
    %57 = vector.broadcast %cst_30 : f32 to vector<12x4xf32>
    %58 = arith.maximumf %56, %57 : vector<12x4xf32>
    %c0_31 = arith.constant 0 : index
    %c4 = arith.constant 4 : index
    %c0_32 = arith.constant 0 : index
    %c0_33 = arith.constant 0 : index
    %59 = vector.load %arg4[%c0_31, %c4, %c0_32, %c0_33] : memref<1x12x12x4xf32, #tpu.memory_space<vmem>>, vector<1x1x12x4xf32>
    %60 = vector.shape_cast %59 : vector<1x1x12x4xf32> to vector<12x4xf32>
    %61 = vector.shape_cast %58 : vector<12x4xf32> to vector<1x1x12x4xf32>
    tpu.vector_store %arg4[%c0_31, %c4, %c0_32, %c0_33], %61 {strides = array<i32>} : memref<1x12x12x4xf32, #tpu.memory_space<vmem>>, vector<1x1x12x4xf32>,
    %c0_34 = arith.constant 0 : index
    %c80 = arith.constant 80 : index
    %c0_35 = arith.constant 0 : index
    %62 = vector.load %arg1[%c0_34, %c80, %c0_35] : memref<1x192x4xbf16, #tpu.memory_space<vmem>>, vector<1x12x4xbf16>
    %63 = vector.shape_cast %62 : vector<1x12x4xbf16> to vector<12x4xbf16>
    %64 = arith.extf %63 : vector<12x4xbf16> to vector<12x4xf32>
    %65 = vector.broadcast %0 : vector<1x4xf32> to vector<12x4xf32>
    %66 = arith.mulf %64, %65 : vector<12x4xf32>
    %67 = vector.broadcast %1 : vector<1x4xf32> to vector<12x4xf32>
    %68 = arith.addf %66, %67 : vector<12x4xf32>
    %cst_36 = arith.constant 0.000000e+00 : f32
    %69 = vector.broadcast %cst_36 : f32 to vector<12x4xf32>
    %70 = arith.maximumf %68, %69 : vector<12x4xf32>
    %c0_37 = arith.constant 0 : index
    %c5 = arith.constant 5 : index
    %c0_38 = arith.constant 0 : index
    %c0_39 = arith.constant 0 : index
    %71 = vector.load %arg4[%c0_37, %c5, %c0_38, %c0_39] : memref<1x12x12x4xf32, #tpu.memory_space<vmem>>, vector<1x1x12x4xf32>
    %72 = vector.shape_cast %71 : vector<1x1x12x4xf32> to vector<12x4xf32>
    %73 = vector.shape_cast %70 : vector<12x4xf32> to vector<1x1x12x4xf32>
    tpu.vector_store %arg4[%c0_37, %c5, %c0_38, %c0_39], %73 {strides = array<i32>} : memref<1x12x12x4xf32, #tpu.memory_space<vmem>>, vector<1x1x12x4xf32>,
    %c0_40 = arith.constant 0 : index
    %c96 = arith.constant 96 : index
    %c0_41 = arith.constant 0 : index
    %74 = vector.load %arg1[%c0_40, %c96, %c0_41] : memref<1x192x4xbf16, #tpu.memory_space<vmem>>, vector<1x12x4xbf16>
    %75 = vector.shape_cast %74 : vector<1x12x4xbf16> to vector<12x4xbf16>
    %76 = arith.extf %75 : vector<12x4xbf16> to vector<12x4xf32>
    %77 = vector.broadcast %0 : vector<1x4xf32> to vector<12x4xf32>
    %78 = arith.mulf %76, %77 : vector<12x4xf32>
    %79 = vector.broadcast %1 : vector<1x4xf32> to vector<12x4xf32>
    %80 = arith.addf %78, %79 : vector<12x4xf32>
    %cst_42 = arith.constant 0.000000e+00 : f32
    %81 = vector.broadcast %cst_42 : f32 to vector<12x4xf32>
    %82 = arith.maximumf %80, %81 : vector<12x4xf32>
    %c0_43 = arith.constant 0 : index
    %c6 = arith.constant 6 : index
    %c0_44 = arith.constant 0 : index
    %c0_45 = arith.constant 0 : index
    %83 = vector.load %arg4[%c0_43, %c6, %c0_44, %c0_45] : memref<1x12x12x4xf32, #tpu.memory_space<vmem>>, vector<1x1x12x4xf32>
    %84 = vector.shape_cast %83 : vector<1x1x12x4xf32> to vector<12x4xf32>
    %85 = vector.shape_cast %82 : vector<12x4xf32> to vector<1x1x12x4xf32>
    tpu.vector_store %arg4[%c0_43, %c6, %c0_44, %c0_45], %85 {strides = array<i32>} : memref<1x12x12x4xf32, #tpu.memory_space<vmem>>, vector<1x1x12x4xf32>,
    %c0_46 = arith.constant 0 : index
    %c112 = arith.constant 112 : index
    %c0_47 = arith.constant 0 : index
    %86 = vector.load %arg1[%c0_46, %c112, %c0_47] : memref<1x192x4xbf16, #tpu.memory_space<vmem>>, vector<1x12x4xbf16>
    %87 = vector.shape_cast %86 : vector<1x12x4xbf16> to vector<12x4xbf16>
    %88 = arith.extf %87 : vector<12x4xbf16> to vector<12x4xf32>
    %89 = vector.broadcast %0 : vector<1x4xf32> to vector<12x4xf32>
    %90 = arith.mulf %88, %89 : vector<12x4xf32>
    %91 = vector.broadcast %1 : vector<1x4xf32> to vector<12x4xf32>
    %92 = arith.addf %90, %91 : vector<12x4xf32>
    %cst_48 = arith.constant 0.000000e+00 : f32
    %93 = vector.broadcast %cst_48 : f32 to vector<12x4xf32>
    %94 = arith.maximumf %92, %93 : vector<12x4xf32>
    %c0_49 = arith.constant 0 : index
    %c7 = arith.constant 7 : index
    %c0_50 = arith.constant 0 : index
    %c0_51 = arith.constant 0 : index
    %95 = vector.load %arg4[%c0_49, %c7, %c0_50, %c0_51] : memref<1x12x12x4xf32, #tpu.memory_space<vmem>>, vector<1x1x12x4xf32>
    %96 = vector.shape_cast %95 : vector<1x1x12x4xf32> to vector<12x4xf32>
    %97 = vector.shape_cast %94 : vector<12x4xf32> to vector<1x1x12x4xf32>
    tpu.vector_store %arg4[%c0_49, %c7, %c0_50, %c0_51], %97 {strides = array<i32>} : memref<1x12x12x4xf32, #tpu.memory_space<vmem>>, vector<1x1x12x4xf32>,
    %c0_52 = arith.constant 0 : index
    %c128 = arith.constant 128 : index
    %c0_53 = arith.constant 0 : index
    %98 = vector.load %arg1[%c0_52, %c128, %c0_53] : memref<1x192x4xbf16, #tpu.memory_space<vmem>>, vector<1x12x4xbf16>
    %99 = vector.shape_cast %98 : vector<1x12x4xbf16> to vector<12x4xbf16>
    %100 = arith.extf %99 : vector<12x4xbf16> to vector<12x4xf32>
    %101 = vector.broadcast %0 : vector<1x4xf32> to vector<12x4xf32>
    %102 = arith.mulf %100, %101 : vector<12x4xf32>
    %103 = vector.broadcast %1 : vector<1x4xf32> to vector<12x4xf32>
    %104 = arith.addf %102, %103 : vector<12x4xf32>
    %cst_54 = arith.constant 0.000000e+00 : f32
    %105 = vector.broadcast %cst_54 : f32 to vector<12x4xf32>
    %106 = arith.maximumf %104, %105 : vector<12x4xf32>
    %c0_55 = arith.constant 0 : index
    %c8 = arith.constant 8 : index
    %c0_56 = arith.constant 0 : index
    %c0_57 = arith.constant 0 : index
    %107 = vector.load %arg4[%c0_55, %c8, %c0_56, %c0_57] : memref<1x12x12x4xf32, #tpu.memory_space<vmem>>, vector<1x1x12x4xf32>
    %108 = vector.shape_cast %107 : vector<1x1x12x4xf32> to vector<12x4xf32>
    %109 = vector.shape_cast %106 : vector<12x4xf32> to vector<1x1x12x4xf32>
    tpu.vector_store %arg4[%c0_55, %c8, %c0_56, %c0_57], %109 {strides = array<i32>} : memref<1x12x12x4xf32, #tpu.memory_space<vmem>>, vector<1x1x12x4xf32>,
    %c0_58 = arith.constant 0 : index
    %c144 = arith.constant 144 : index
    %c0_59 = arith.constant 0 : index
    %110 = vector.load %arg1[%c0_58, %c144, %c0_59] : memref<1x192x4xbf16, #tpu.memory_space<vmem>>, vector<1x12x4xbf16>
    %111 = vector.shape_cast %110 : vector<1x12x4xbf16> to vector<12x4xbf16>
    %112 = arith.extf %111 : vector<12x4xbf16> to vector<12x4xf32>
    %113 = vector.broadcast %0 : vector<1x4xf32> to vector<12x4xf32>
    %114 = arith.mulf %112, %113 : vector<12x4xf32>
    %115 = vector.broadcast %1 : vector<1x4xf32> to vector<12x4xf32>
    %116 = arith.addf %114, %115 : vector<12x4xf32>
    %cst_60 = arith.constant 0.000000e+00 : f32
    %117 = vector.broadcast %cst_60 : f32 to vector<12x4xf32>
    %118 = arith.maximumf %116, %117 : vector<12x4xf32>
    %c0_61 = arith.constant 0 : index
    %c9 = arith.constant 9 : index
    %c0_62 = arith.constant 0 : index
    %c0_63 = arith.constant 0 : index
    %119 = vector.load %arg4[%c0_61, %c9, %c0_62, %c0_63] : memref<1x12x12x4xf32, #tpu.memory_space<vmem>>, vector<1x1x12x4xf32>
    %120 = vector.shape_cast %119 : vector<1x1x12x4xf32> to vector<12x4xf32>
    %121 = vector.shape_cast %118 : vector<12x4xf32> to vector<1x1x12x4xf32>
    tpu.vector_store %arg4[%c0_61, %c9, %c0_62, %c0_63], %121 {strides = array<i32>} : memref<1x12x12x4xf32, #tpu.memory_space<vmem>>, vector<1x1x12x4xf32>,
    %c0_64 = arith.constant 0 : index
    %c160 = arith.constant 160 : index
    %c0_65 = arith.constant 0 : index
    %122 = vector.load %arg1[%c0_64, %c160, %c0_65] : memref<1x192x4xbf16, #tpu.memory_space<vmem>>, vector<1x12x4xbf16>
    %123 = vector.shape_cast %122 : vector<1x12x4xbf16> to vector<12x4xbf16>
    %124 = arith.extf %123 : vector<12x4xbf16> to vector<12x4xf32>
    %125 = vector.broadcast %0 : vector<1x4xf32> to vector<12x4xf32>
    %126 = arith.mulf %124, %125 : vector<12x4xf32>
    %127 = vector.broadcast %1 : vector<1x4xf32> to vector<12x4xf32>
    %128 = arith.addf %126, %127 : vector<12x4xf32>
    %cst_66 = arith.constant 0.000000e+00 : f32
    %129 = vector.broadcast %cst_66 : f32 to vector<12x4xf32>
    %130 = arith.maximumf %128, %129 : vector<12x4xf32>
    %c0_67 = arith.constant 0 : index
    %c10 = arith.constant 10 : index
    %c0_68 = arith.constant 0 : index
    %c0_69 = arith.constant 0 : index
    %131 = vector.load %arg4[%c0_67, %c10, %c0_68, %c0_69] : memref<1x12x12x4xf32, #tpu.memory_space<vmem>>, vector<1x1x12x4xf32>
    %132 = vector.shape_cast %131 : vector<1x1x12x4xf32> to vector<12x4xf32>
    %133 = vector.shape_cast %130 : vector<12x4xf32> to vector<1x1x12x4xf32>
    tpu.vector_store %arg4[%c0_67, %c10, %c0_68, %c0_69], %133 {strides = array<i32>} : memref<1x12x12x4xf32, #tpu.memory_space<vmem>>, vector<1x1x12x4xf32>,
    %c0_70 = arith.constant 0 : index
    %c176 = arith.constant 176 : index
    %c0_71 = arith.constant 0 : index
    %134 = vector.load %arg1[%c0_70, %c176, %c0_71] : memref<1x192x4xbf16, #tpu.memory_space<vmem>>, vector<1x12x4xbf16>
    %135 = vector.shape_cast %134 : vector<1x12x4xbf16> to vector<12x4xbf16>
    %136 = arith.extf %135 : vector<12x4xbf16> to vector<12x4xf32>
    %137 = vector.broadcast %0 : vector<1x4xf32> to vector<12x4xf32>
    %138 = arith.mulf %136, %137 : vector<12x4xf32>
    %139 = vector.broadcast %1 : vector<1x4xf32> to vector<12x4xf32>
    %140 = arith.addf %138, %139 : vector<12x4xf32>
    %cst_72 = arith.constant 0.000000e+00 : f32
    %141 = vector.broadcast %cst_72 : f32 to vector<12x4xf32>
    %142 = arith.maximumf %140, %141 : vector<12x4xf32>
    %c0_73 = arith.constant 0 : index
    %c11 = arith.constant 11 : index
    %c0_74 = arith.constant 0 : index
    %c0_75 = arith.constant 0 : index
    %143 = vector.load %arg4[%c0_73, %c11, %c0_74, %c0_75] : memref<1x12x12x4xf32, #tpu.memory_space<vmem>>, vector<1x1x12x4xf32>
    %144 = vector.shape_cast %143 : vector<1x1x12x4xf32> to vector<12x4xf32>
    %145 = vector.shape_cast %142 : vector<12x4xf32> to vector<1x1x12x4xf32>
    tpu.vector_store %arg4[%c0_73, %c11, %c0_74, %c0_75], %145 {strides = array<i32>} : memref<1x12x12x4xf32, #tpu.memory_space<vmem>>, vector<1x1x12x4xf32>,
    return
  }
  func.func @transform_0(%arg0: i32) -> (i32, i32, i32) {
    %c0_i32 = arith.constant 0 : i32
    %c0_i32_0 = arith.constant 0 : i32
    %c0_i32_1 = arith.constant 0 : i32
    return %arg0, %c0_i32, %c0_i32_0 : i32, i32, i32
  }
  func.func @transform_1(%arg0: i32) -> (i32, i32) {
    %c0_i32 = arith.constant 0 : i32
    %c0_i32_0 = arith.constant 0 : i32
    %c0_i32_1 = arith.constant 0 : i32
    return %c0_i32, %c0_i32_0 : i32, i32
  }
  func.func @transform_2(%arg0: i32) -> (i32, i32) {
    %c0_i32 = arith.constant 0 : i32
    %c0_i32_0 = arith.constant 0 : i32
    %c0_i32_1 = arith.constant 0 : i32
    return %c0_i32, %c0_i32_0 : i32, i32
  }
  func.func @transform_3(%arg0: i32) -> (i32, i32, i32, i32) {
    %c0_i32 = arith.constant 0 : i32
    %c0_i32_0 = arith.constant 0 : i32
    %c0_i32_1 = arith.constant 0 : i32
    %c0_i32_2 = arith.constant 0 : i32
    return %arg0, %c0_i32, %c0_i32_0, %c0_i32_1 : i32, i32, i32, i32
  }
}

</mosaic_0001>

<bundles_post_ra>
// kernel: basic_conv2.5
= control target key start
LH: loop header
LB: loop body
LE: loop exit
PB: predicated region body
PF: predicated region fallthrough
CT: control target
= control target key end

     0   :  { %s468_s12 = smov 0   ;;  %s617_s0 = inlined_call_operand.vmem [shape: bf16[2,192,4], index: 0, kind: input, shape index: {}]   ;;  %s618_s1 = inlined_call_operand.vmem [shape: f32[1,4], index: 1, kind: input, shape index: {}]   ;;  %s619_s2 = inlined_call_operand.vmem [shape: f32[1,4], index: 2, kind: input, shape index: {}]   ;;  %s620_s3 = inlined_call_operand.vmem [shape: f32[2,12,12,4], index: 3, kind: output, shape index: {}]  }
   0x1 LB: > { %s397_s13 = sadd.s32 4294967295, %s446_s12   ;;  %p401_p0 = scmp.ge.s32.totalorder %s446_s12, 1  ;;  %s446_s12 = sphi %s468_s12, %s13_s12  }
   0x2   : > { %p137_p1 = scmp.lt.s32.totalorder %s446_s12, 3 }
   0x4   : > { %p138_p2 = pnand %p401_p0, %p137_p1 }
   0x5   : > { %p161_p3 = scmp.lt.s32.totalorder (!%p138_p2), %s397_s13, 1  ;;  %v487_v0 = vld [vmem:[%s618_s1] ss:$0 sm:$0xff] (!%p138_p2)  ;;  %vm195_vm0 = vcmask (!%p138_p2), 31744   ;;  %vm197_vm1 = vcmask (!%p138_p2), 27648  }
   0x6   : > { %141 = sbr.rel (%p138_p2) target bundleno = 47 (0x2f), region = 32  ;;  %v499_v11 = vld [vmem:[%s619_s2] ss:$0 sm:$0xff] (!%p138_p2) }
   0xd   : > { %s622_s13 = smov (!%p161_p3, %s397_s13), 1 }
   0xe   : > { %s430_s14 = smul.u32 96, %s622_s13 }
   0xf   : > { %s431_s20 = smul.u32 192, %s622_s13 }
  0x10   : > { %s482_s17 = scalar_lea.vmem %s617_s0, %s430_s14 }
  0x11   : > { %v173_v1 = vld [vmem:[%s482_s17] ss:$8 sps:$4 sm:$0xff]   ;;  %v174_v2 = vld [vmem:[%s482_s17 + $0x4] sm:$0x3]  ;;  %v200_v3 = vld [vmem:[%s482_s17 + $0xc] sm:$0x3]  ;;  %s518_s25 = scalar_lea.vmem %s620_s3, %s431_s20 }
  0x12   : > { %v175_v4 = vunpack.c.l.bf16 %v173_v1  ;;  %v176_v5 = vunpack.c.l.bf16 %v174_v2  ;;  %v201_v6 = vunpack.c.h.bf16 %v173_v1  ;;  %v202_v7 = vunpack.c.l.bf16 %v200_v3  ;;  %v212_v8 = vld [vmem:[%s482_s17 + $0x10] ss:$8 sps:$4 sm:$0xff]   ;;  %v213_v9 = vld [vmem:[%s482_s17 + $0x14] sm:$0x3]  ;;  %v226_v10 = vld [vmem:[%s482_s17 + $0x1c] sm:$0x3] }
  0x13   : > { %v214_v12 = vunpack.c.l.bf16 %v212_v8  ;;  %v215_v13 = vunpack.c.l.bf16 %v213_v9  ;;  %v227_v14 = vunpack.c.h.bf16 %v212_v8  ;;  %v228_v15 = vunpack.c.l.bf16 %v226_v10  ;;  %v238_v28 = vld [vmem:[%s482_s17 + $0x20] ss:$8 sps:$4 sm:$0xff]   ;;  %v239_v29 = vld [vmem:[%s482_s17 + $0x24] sm:$0x3]  ;;  %v252_v34 = vld [vmem:[%s482_s17 + $0x2c] sm:$0x3] }
  0x14   : > { %v183_v16 = vmul.f32 %v487_v0, %v175_v4  ;;  %v184_v17 = vmul.f32 %v487_v0, %v176_v5  ;;  %v203_v18 = vmul.f32 %v487_v0, %v201_v6  ;;  %v204_v19 = vmul.f32 %v487_v0, %v202_v7  ;;  %v264_v35 = vld [vmem:[%s482_s17 + $0x30] ss:$8 sps:$4 sm:$0xff]   ;;  %v265_v36 = vld [vmem:[%s482_s17 + $0x34] sm:$0x3]  ;;  %v278_v41 = vld [vmem:[%s482_s17 + $0x3c] sm:$0x3] }
  0x15   : > { %v216_v20 = vmul.f32 %v487_v0, %v214_v12  ;;  %v217_v21 = vmul.f32 %v487_v0, %v215_v13  ;;  %v229_v22 = vmul.f32 %v487_v0, %v227_v14  ;;  %v230_v23 = vmul.f32 %v487_v0, %v228_v15  ;;  %v290_v3 = vld [vmem:[%s482_s17 + $0x40] ss:$8 sps:$4 sm:$0xff]   ;;  %v291_v4 = vld [vmem:[%s482_s17 + $0x44] sm:$0x3]  ;;  %v304_v9 = vld [vmem:[%s482_s17 + $0x4c] sm:$0x3] }
  0x16   : > { %v191_v24 = vadd.f32 %v499_v11, %v183_v16  ;;  %v192_v25 = vadd.f32 %v499_v11, %v184_v17  ;;  %v205_v26 = vadd.f32 %v499_v11, %v203_v18  ;;  %v206_v27 = vadd.f32 %v499_v11, %v204_v19  ;;  %v316_v10 = vld [vmem:[%s482_s17 + $0x50] ss:$8 sps:$4 sm:$0xff]   ;;  %v317_v12 = vld [vmem:[%s482_s17 + $0x54] sm:$0x3]  ;;  %v330_v17 = vld [vmem:[%s482_s17 + $0x5c] sm:$0x3] }
  0x17   : > { %v218_v30 = vadd.f32 %v499_v11, %v216_v20  ;;  %v219_v31 = vadd.f32 %v499_v11, %v217_v21  ;;  %v231_v32 = vadd.f32 %v499_v11, %v229_v22  ;;  %v232_v33 = vadd.f32 %v499_v11, %v230_v23 }
  0x18   : > { %v193_v37 = vmax.f32 %v191_v24, 0.0  ;;  %v194_v38 = vmax.f32 %v192_v25, 0.0  ;;  %v207_v39 = vmax.f32 %v205_v26, 0.0  ;;  %v208_v40 = vmax.f32 %v206_v27, 0.0 }
  0x19   : > { %v220_v42 = vmax.f32 %v218_v30, 0.0  ;;  %v221_v43 = vmax.f32 %v219_v31, 0.0  ;;  %v233_v44 = vmax.f32 %v231_v32, 0.0  ;;  %v234_v45 = vmax.f32 %v232_v33, 0.0 }
  0x1a   : > { %196 = vst.msk [vmem:[%s518_s25] sm:$0xff] %vm195_vm0, %v193_v37  ;;  %406 = vst.msk [vmem:[%s518_s25 + $0x10] sm:$0xff] %vm195_vm0, %v207_v39  ;;  %v240_v46 = vunpack.c.l.bf16 %v238_v28  ;;  %v241_v47 = vunpack.c.l.bf16 %v239_v29  ;;  %v253_v48 = vunpack.c.h.bf16 %v238_v28  ;;  %v254_v49 = vunpack.c.l.bf16 %v252_v34 }
  0x1b   : > { %198 = vst.msk [vmem:[%s518_s25 + $0x8] sm:$0xf] %vm197_vm1, %v194_v38  ;;  %407 = vst.msk [vmem:[%s518_s25 + $0x18] sm:$0xf] %vm197_vm1, %v208_v40  ;;  %v266_v50 = vunpack.c.l.bf16 %v264_v35  ;;  %v267_v51 = vunpack.c.l.bf16 %v265_v36  ;;  %v279_v52 = vunpack.c.h.bf16 %v264_v35  ;;  %v280_v53 = vunpack.c.l.bf16 %v278_v41 }
  0x1c   : > { %408 = vst.msk [vmem:[%s518_s25 + $0x20] sm:$0xff] %vm195_vm0, %v220_v42  ;;  %410 = vst.msk [vmem:[%s518_s25 + $0x30] sm:$0xff] %vm195_vm0, %v233_v44  ;;  %v242_v54 = vmul.f32 %v487_v0, %v240_v46  ;;  %v243_v55 = vmul.f32 %v487_v0, %v241_v47  ;;  %v255_v56 = vmul.f32 %v487_v0, %v253_v48  ;;  %v292_v22 = vunpack.c.l.bf16 %v290_v3 }
  0x1d   : > { %409 = vst.msk [vmem:[%s518_s25 + $0x28] sm:$0xf] %vm197_vm1, %v221_v43  ;;  %411 = vst.msk [vmem:[%s518_s25 + $0x38] sm:$0xf] %vm197_vm1, %v234_v45  ;;  %v256_v57 = vmul.f32 %v487_v0, %v254_v49  ;;  %v268_v58 = vmul.f32 %v487_v0, %v266_v50  ;;  %v269_v59 = vmul.f32 %v487_v0, %v267_v51  ;;  %v293_v23 = vunpack.c.l.bf16 %v291_v4 }
  0x1e   : > { %v281_v60 = vmul.f32 %v487_v0, %v279_v52  ;;  %v282_v61 = vmul.f32 %v487_v0, %v280_v53  ;;  %v244_v62 = vadd.f32 %v499_v11, %v242_v54  ;;  %v245_v63 = vadd.f32 %v499_v11, %v243_v55 }
  0x1f   : > { %v257_v1 = vadd.f32 %v499_v11, %v255_v56  ;;  %v258_v2 = vadd.f32 %v499_v11, %v256_v57  ;;  %v270_v5 = vadd.f32 %v499_v11, %v268_v58  ;;  %v271_v6 = vadd.f32 %v499_v11, %v269_v59 }
  0x20   : > { %v283_v7 = vadd.f32 %v499_v11, %v281_v60  ;;  %v284_v8 = vadd.f32 %v499_v11, %v282_v61  ;;  %v246_v13 = vmax.f32 %v244_v62, 0.0  ;;  %v247_v14 = vmax.f32 %v245_v63, 0.0 }
  0x21   : > { %v259_v15 = vmax.f32 %v257_v1, 0.0  ;;  %v260_v16 = vmax.f32 %v258_v2, 0.0  ;;  %v272_v18 = vmax.f32 %v270_v5, 0.0  ;;  %v273_v19 = vmax.f32 %v271_v6, 0.0 }
  0x22   : > { %v285_v20 = vmax.f32 %v283_v7, 0.0  ;;  %v286_v21 = vmax.f32 %v284_v8, 0.0  ;;  %412 = vst.msk [vmem:[%s518_s25 + $0x40] sm:$0xff] %vm195_vm0, %v246_v13  ;;  %v305_v24 = vunpack.c.h.bf16 %v290_v3  ;;  %v306_v25 = vunpack.c.l.bf16 %v304_v9 }
  0x23   : > { %413 = vst.msk [vmem:[%s518_s25 + $0x48] sm:$0xf] %vm197_vm1, %v247_v14  ;;  %415 = vst.msk [vmem:[%s518_s25 + $0x58] sm:$0xf] %vm197_vm1, %v260_v16  ;;  %v318_v26 = vunpack.c.l.bf16 %v316_v10  ;;  %v319_v27 = vunpack.c.l.bf16 %v317_v12  ;;  %v331_v28 = vunpack.c.h.bf16 %v316_v10  ;;  %v332_v29 = vunpack.c.l.bf16 %v330_v17 }
  0x24   : > { %414 = vst.msk [vmem:[%s518_s25 + $0x50] sm:$0xff] %vm195_vm0, %v259_v15  ;;  %416 = vst.msk [vmem:[%s518_s25 + $0x60] sm:$0xff] %vm195_vm0, %v272_v18  ;;  %v294_v30 = vmul.f32 %v487_v0, %v292_v22  ;;  %v295_v31 = vmul.f32 %v487_v0, %v293_v23  ;;  %v307_v32 = vmul.f32 %v487_v0, %v305_v24 }
  0x25   : > { %417 = vst.msk [vmem:[%s518_s25 + $0x68] sm:$0xf] %vm197_vm1, %v273_v19  ;;  %419 = vst.msk [vmem:[%s518_s25 + $0x78] sm:$0xf] %vm197_vm1, %v286_v21  ;;  %v308_v33 = vmul.f32 %v487_v0, %v306_v25  ;;  %v320_v34 = vmul.f32 %v487_v0, %v318_v26  ;;  %v321_v35 = vmul.f32 %v487_v0, %v319_v27 }
  0x26   : > { %418 = vst.msk [vmem:[%s518_s25 + $0x70] sm:$0xff] %vm195_vm0, %v285_v20  ;;  %v333_v36 = vmul.f32 %v487_v0, %v331_v28  ;;  %v334_v37 = vmul.f32 %v487_v0, %v332_v29  ;;  %v296_v38 = vadd.f32 %v499_v11, %v294_v30  ;;  %v297_v39 = vadd.f32 %v499_v11, %v295_v31 }
  0x27   : > { %v309_v40 = vadd.f32 %v499_v11, %v307_v32  ;;  %v310_v41 = vadd.f32 %v499_v11, %v308_v33  ;;  %v322_v42 = vadd.f32 %v499_v11, %v320_v34  ;;  %v323_v43 = vadd.f32 %v499_v11, %v321_v35 }
  0x28   : > { %v335_v0 = vadd.f32 %v499_v11, %v333_v36  ;;  %v336_v44 = vadd.f32 %v499_v11, %v334_v37  ;;  %v298_v45 = vmax.f32 %v296_v38, 0.0  ;;  %v299_v46 = vmax.f32 %v297_v39, 0.0 }
  0x29   : > { %v311_v47 = vmax.f32 %v309_v40, 0.0  ;;  %v312_v48 = vmax.f32 %v310_v41, 0.0  ;;  %v324_v49 = vmax.f32 %v322_v42, 0.0  ;;  %v325_v50 = vmax.f32 %v323_v43, 0.0 }
  0x2a   : > { %v337_v51 = vmax.f32 %v335_v0, 0.0  ;;  %v338_v52 = vmax.f32 %v336_v44, 0.0  ;;  %420 = vst.msk [vmem:[%s518_s25 + $0x80] sm:$0xff] %vm195_vm0, %v298_v45 }
  0x2b   : > { %421 = vst.msk [vmem:[%s518_s25 + $0x88] sm:$0xf] %vm197_vm1, %v299_v46  ;;  %423 = vst.msk [vmem:[%s518_s25 + $0x98] sm:$0xf] %vm197_vm1, %v312_v48 }
  0x2c   : > { %422 = vst.msk [vmem:[%s518_s25 + $0x90] sm:$0xff] %vm195_vm0, %v311_v47  ;;  %424 = vst.msk [vmem:[%s518_s25 + $0xa0] sm:$0xff] %vm195_vm0, %v324_v49 }
  0x2d   : > { %425 = vst.msk [vmem:[%s518_s25 + $0xa8] sm:$0xf] %vm197_vm1, %v325_v50  ;;  %427 = vst.msk [vmem:[%s518_s25 + $0xb8] sm:$0xf] %vm197_vm1, %v338_v52 }
  0x2e   : > { %426 = vst.msk [vmem:[%s518_s25 + $0xb0] sm:$0xff] %vm195_vm0, %v337_v51 }
  0x2f PF: > { %s13_s12 = sadd.s32 1, %s446_s12  }
  0x30   : > { %p10_p4 = scmp.ge.s32.totalorder %s13_s12, 4  }
  0x32   :  { %12 = sbr.rel (!%p10_p4) target bundleno = 1 (0x1), region = 73 }

// kernel: basic_conv2.4
= control target key start
LH: loop header
LB: loop body
LE: loop exit
PB: predicated region body
PF: predicated region fallthrough
CT: control target
= control target key end

     0   :  { %s5120_s24 = smov 0   ;;  %s5122_s25 = smov 0   ;;  %s6138_s0 = inlined_call_operand.vmem [shape: bf16[2,232,2], index: 0, kind: input, shape index: {}]   ;;  %s6139_s1 = inlined_call_operand.vmem [shape: f32[1,2], index: 1, kind: input, shape index: {}]   ;;  %s6140_s2 = inlined_call_operand.vmem [shape: f32[1,2], index: 2, kind: input, shape index: {}]   ;;  %s6141_s3 = inlined_call_operand.vmem [shape: bf16[18,4], index: 3, kind: input, shape index: {}]   ;;  %s6142_s4 = inlined_call_operand.vmem [shape: f32[1,4], index: 4, kind: input, shape index: {}]   ;;  %s6143_s5 = inlined_call_operand.vmem [shape: bf16[2,192,4], index: 5, kind: output, shape index: {0}]   ;;  %s6144_s6 = inlined_call_operand.vmem [shape: f32[2,1,4], index: 6, kind: output, shape index: {1}]   ;;  %s6145_s7 = inlined_call_operand.vmem [shape: f32[2,1,4], index: 7, kind: output, shape index: {2}]  }
   0x1   :  { %s5124_s26 = smov 0  }
   0x2 LB: > { %s30_s27 = sadd.s32 1, %s5073_s25  ;;  %p4026_p0 = scmp.ge.s32.totalorder %s5077_s26, 1  ;;  %s5077_s26 = sphi %s5124_s26, %s18_s26   ;;  %s5073_s25 = sphi %s5122_s25, %s6163_s25   ;;  %s5069_s24 = sphi %s5120_s24, %s6162_s24  }
   0x3   : > { %p32_p1 = scmp.ge.s32.totalorder %s30_s27, 2  ;;  %p260_p2 = scmp.lt.s32.totalorder %s5077_s26, 3 }
   0x5   : > { %s6165_s27 = smov (%p32_p1, %s30_s27), 0  ;;  %p261_p3 = pnand %p4026_p0, %p260_p2 }
   0x6   : > { %v4983_v0 = vld [vmem:[%s6141_s3] ss:$0 sps:$4 sm:$0x22] (!%p261_p3)   ;;  %vm859_vm0 = vcmask (!%p261_p3), 1040384   ;;  %v1681_v1 = vld [vmem:[%s6141_s3 + $0x4] sm:$0x1] (!%p261_p3) }
   0x7   : > { %264 = sbr.rel (%p261_p3) target bundleno = 511 (0x1ff), region = 40  ;;  %p301_p4 = scmp.lt.s32.totalorder (!%p261_p3), %s5069_s24, 1  ;;  %v821_v2 = vrot.slane (!%p261_p3), %v4983_v0, 1  ;;  %4950 = vmatprep.subr.msk.bf16.mxu0 (!%p261_p3), %vm859_vm0, %v1681_v1  ;;  %v5146_v3 = vsel (!%p261_p3), %vm859_vm0, %v1681_v1, 0  ;;  %v5154_v4 = vld [vmem:[%s6141_s3] sm:$0x1] (!%p261_p3) }
   0x8   : > { %4623 = vmatpush3.bf16.msra.mxu0 (!%p261_p3), %v5146_v3  ;;  %v5161_v6 = vld [vmem:[%s6141_s3 + $0x4] ss:$0 sps:$4 sm:$0x22] (!%p261_p3)   ;;  %v5175_v8 = vld [vmem:[%s6139_s1] ss:$0 sm:$0xff] (!%p261_p3)  ;;  %vm597_vm1 = vcmask (!%p261_p3), 11264  }
   0x9   : > { %4946 = vmatprep.subr.msk.bf16.mxu1 (!%p261_p3), %vm859_vm0, %v821_v2  ;;  %v861_v5 = vsel (!%p261_p3), %vm859_vm0, %v821_v2, 0  ;;  %v2070_v7 = vrot.slane (!%p261_p3), %v5161_v6, 1  ;;  %v5187_v17 = vld [vmem:[%s6140_s2] ss:$0 sm:$0xff] (!%p261_p3)  ;;  %vm717_vm2 = vsmask.f32 (!%p261_p3), 7424 }
   0xa   : > { %4519 = vmatpush3.bf16.msra.mxu1 (!%p261_p3), %v861_v5  ;;  %v5220_v2 = vld [vmem:[%s6141_s3 + $0x4] ss:$0 sps:$4 sm:$0x44] (!%p261_p3)   ;;  %vm822_vm3 = vcmask (!%p261_p3), 15360   ;;  %vm1153_vm4 = vcmask (!%p261_p3), 1046528   ;;  %vm3764_vm5 = vcmask (!%p261_p3), 24576  }
   0xb   : > { %4947 = vmatprep.subr.msk.bf16.mxu1 (!%p261_p3), %vm859_vm0, %v5154_v4  ;;  %4952 = vmatprep.subr.msk.bf16.mxu0 (!%p261_p3), %vm859_vm0, %v2070_v7  ;;  %vm3768_vm7 = vcmask (!%p261_p3), 31744   ;;  %vm3278_vm12 = vcmask (!%p261_p3), 27648  }
   0xe   : > { %s6167_s24 = smov (!%p301_p4, %s5069_s24), 1 }
   0xf   : > { %s4956_s13 = smul.u32 116, %s6167_s24  ;;  %s5835_s20 = scalar_lea.vmem %s6144_s6, %s6167_s24 }
  0x10   : > { %s5841_s23 = scalar_lea.vmem %s6145_s7, %s6167_s24  ;;  %s4957_s30 = smul.u32 96, %s6167_s24 }
  0x11   : > { %s5170_s16 = scalar_lea.vmem %s6138_s0, %s4956_s13 }
  0x12   : > { %v4333_v9 = vld [vmem:[%s5170_s16] sm:$0xff]   ;;  %v4388_v10 = vld [vmem:[%s5170_s16 + $0x8] sm:$0xff]   ;;  %v4389_v11 = vld [vmem:[%s5170_s16 + $0x10] sm:$0xff]   ;;  %s5934_s9 = scalar_lea.vmem %s6143_s5, %s4957_s30 }
  0x13   : > { %v4334_v12 = vunpack.c.l.bf16 %v4333_v9  ;;  %v4335_v13 = vunpack.c.h.bf16 %v4333_v9  ;;  %v4338_v14 = vunpack.c.l.bf16 %v4388_v10  ;;  %v4339_v15 = vunpack.c.h.bf16 %v4388_v10  ;;  %v4390_v16 = vld [vmem:[%s5170_s16 + $0x18] sm:$0xff]   ;;  %v4391_v46 = vld [vmem:[%s5170_s16 + $0x20] sm:$0xff]   ;;  %v4392_v47 = vld [vmem:[%s5170_s16 + $0x28] sm:$0xff]  }
  0x14   : > { %v4342_v18 = vunpack.c.l.bf16 %v4389_v11  ;;  %v4343_v19 = vunpack.c.h.bf16 %v4389_v11  ;;  %v4346_v20 = vunpack.c.l.bf16 %v4390_v16  ;;  %v4347_v21 = vunpack.c.h.bf16 %v4390_v16  ;;  %v4393_v52 = vld [vmem:[%s5170_s16 + $0x30] sm:$0xff]   ;;  %v4394_v53 = vld [vmem:[%s5170_s16 + $0x38] sm:$0xff]  }
  0x15   : > { %v386_v22 = vmul.f32 %v4334_v12, %v5175_v8  ;;  %v387_v23 = vmul.f32 %v4335_v13, %v5175_v8  ;;  %v388_v24 = vmul.f32 %v4338_v14, %v5175_v8  ;;  %v389_v25 = vmul.f32 %v4339_v15, %v5175_v8 }
  0x16   : > { %v390_v26 = vmul.f32 %v4342_v18, %v5175_v8  ;;  %v391_v27 = vmul.f32 %v4343_v19, %v5175_v8  ;;  %v392_v28 = vmul.f32 %v4346_v20, %v5175_v8  ;;  %v393_v29 = vmul.f32 %v4347_v21, %v5175_v8  ;;  %v4395_v20 = vld [vmem:[%s5170_s16 + $0x40] sm:$0xff]  }
  0x17   : > { %v422_v30 = vadd.f32 %v5187_v17, %v386_v22  ;;  %v423_v31 = vadd.f32 %v5187_v17, %v387_v23  ;;  %v424_v32 = vadd.f32 %v5187_v17, %v388_v24  ;;  %v425_v33 = vadd.f32 %v5187_v17, %v389_v25 }
  0x18   : > { %v426_v34 = vadd.f32 %v5187_v17, %v390_v26  ;;  %v427_v35 = vadd.f32 %v5187_v17, %v391_v27  ;;  %v428_v36 = vadd.f32 %v5187_v17, %v392_v28  ;;  %v429_v37 = vadd.f32 %v5187_v17, %v393_v29  ;;  %v5246_v28 = vld [vmem:[%s5170_s16 + $0x48] sm:$0xff]  }
  0x19   : > { %v451_v38 = vmax.f32 %v422_v30, 0.0  ;;  %v452_v39 = vmax.f32 %v423_v31, 0.0  ;;  %v453_v40 = vmax.f32 %v424_v32, 0.0  ;;  %v454_v41 = vmax.f32 %v425_v33, 0.0 }
  0x1a   : > { %v455_v42 = vmax.f32 %v426_v34, 0.0  ;;  %v456_v43 = vmax.f32 %v427_v35, 0.0  ;;  %v457_v44 = vmax.f32 %v428_v36, 0.0  ;;  %v458_v45 = vmax.f32 %v429_v37, 0.0 }
  0x1b   : > { %v4279_v48 = vpack.c.bf16 %v451_v38, %v451_v38  ;;  %v4280_v49 = vpack.c.bf16 %v452_v39, %v452_v39  ;;  %v4281_v50 = vpack.c.bf16 %v453_v40, %v453_v40  ;;  %v4282_v51 = vpack.c.bf16 %v454_v41, %v454_v41 }
  0x1c   : > { %v4283_v54 = vpack.c.bf16 %v455_v42, %v455_v42  ;;  %v4284_v55 = vpack.c.bf16 %v456_v43, %v456_v43  ;;  %v4285_v56 = vpack.c.bf16 %v457_v44, %v457_v44  ;;  %v4286_v57 = vpack.c.bf16 %v458_v45, %v458_v45 }
  0x1d   : > { %598 = vst.msk [vmem:[#allocation2] sm:$0xf] %vm597_vm1, %v4279_v48  ;;  %599 = vst.msk [vmem:[#allocation2 + $0x4] sm:$0xf] %vm597_vm1, %v4280_v49  ;;  %v4350_v58 = vunpack.c.l.bf16 %v4391_v46  ;;  %v4351_v59 = vunpack.c.h.bf16 %v4391_v46  ;;  %v4354_v60 = vunpack.c.l.bf16 %v4392_v47  ;;  %v4355_v61 = vunpack.c.h.bf16 %v4392_v47 }
  0x1e   : > { %600 = vst.msk [vmem:[#allocation2 + $0x8] sm:$0xf] %vm597_vm1, %v4281_v50  ;;  %601 = vst.msk [vmem:[#allocation2 + $0xc] sm:$0xf] %vm597_vm1, %v4282_v51  ;;  %v4358_v62 = vunpack.c.l.bf16 %v4393_v52  ;;  %v4359_v63 = vunpack.c.h.bf16 %v4393_v52  ;;  %v4362_v0 = vunpack.c.l.bf16 %v4394_v53  ;;  %v4363_v1 = vunpack.c.h.bf16 %v4394_v53 }
  0x1f   : > { %602 = vst.msk [vmem:[#allocation2 + $0x10] sm:$0xf] %vm597_vm1, %v4283_v54  ;;  %603 = vst.msk [vmem:[#allocation2 + $0x14] sm:$0xf] %vm597_vm1, %v4284_v55  ;;  %v394_v5 = vmul.f32 %v4350_v58, %v5175_v8  ;;  %v395_v9 = vmul.f32 %v4351_v59, %v5175_v8  ;;  %v396_v10 = vmul.f32 %v4354_v60, %v5175_v8  ;;  %v5228_v12 = vsel %vm859_vm0, %v5154_v4, 0 }
  0x20   : > { %604 = vst.msk [vmem:[#allocation2 + $0x18] sm:$0xf] %vm597_vm1, %v4285_v56  ;;  %605 = vst.msk [vmem:[#allocation2 + $0x1c] sm:$0xf] %vm597_vm1, %v4286_v57  ;;  %v397_v11 = vmul.f32 %v4355_v61, %v5175_v8  ;;  %v398_v13 = vmul.f32 %v4358_v62, %v5175_v8  ;;  %v399_v14 = vmul.f32 %v4359_v63, %v5175_v8  ;;  %v5240_v4 = vsel %vm859_vm0, %v2070_v7, 0 }
  0x21   : > { %v430_v15 = vadd.f32 %v5187_v17, %v394_v5  ;;  %v431_v16 = vadd.f32 %v5187_v17, %v395_v9  ;;  %v432_v18 = vadd.f32 %v5187_v17, %v396_v10  ;;  %v400_v21 = vmul.f32 %v4362_v0, %v5175_v8 }
  0x22   : > { %v433_v19 = vadd.f32 %v5187_v17, %v397_v11  ;;  %v401_v22 = vmul.f32 %v4363_v1, %v5175_v8  ;;  %v2351_v23 = vrot.slane %v5220_v2, 2  ;;  %v5251_v6 = vadd.f32 %v5187_v17, %v398_v13 }
  0x23   : > { %v459_v24 = vmax.f32 %v430_v15, 0.0  ;;  %v460_v25 = vmax.f32 %v431_v16, 0.0  ;;  %v461_v26 = vmax.f32 %v432_v18, 0.0  ;;  %v5254_v7 = vadd.f32 %v5187_v17, %v399_v14 }
  0x24   : > { %v462_v27 = vmax.f32 %v433_v19, 0.0  ;;  %v627_v29 = vld [vmem:[#allocation2] sm:$0xf]  ;;  %v5248_v30 = vld [vmem:[#allocation2 + $0x4] sm:$0xf]  ;;  %v4366_v31 = vunpack.c.l.bf16 %v4395_v20  ;;  %v5264_v40 = vadd.f32 %v5187_v17, %v400_v21  ;;  %v5267_v41 = vadd.f32 %v5187_v17, %v401_v22 }
  0x25   : > { %v5257_v32 = vcombine.low %v627_v29, %v5248_v30  ;;  %v5259_v33 = vld [vmem:[#allocation2 + $0x8] sm:$0xff]   ;;  %v4287_v35 = vpack.c.bf16 %v459_v24, %v459_v24  ;;  %v4288_v36 = vpack.c.bf16 %v460_v25, %v460_v25  ;;  %v4289_v37 = vpack.c.bf16 %v461_v26, %v461_v26 }
  0x26   : > { %v1656_v34 = vld [vmem:[#allocation2 + $0x8] sm:$0xf]  ;;  %v5261_v38 = vld [vmem:[#allocation2 + $0xc] sm:$0xf]  ;;  %v4290_v39 = vpack.c.bf16 %v462_v27, %v462_v27  ;;  %v4367_v42 = vunpack.c.h.bf16 %v4395_v20  ;;  %v726_v45 = vshll.u32 %v5259_v33, 16  ;;  %v730_v46 = vshrl.u32 %v5259_v33, 16 }
  0x27   : > { %v719_v43 = vshrl.u32 %v5257_v32, 16  ;;  %v721_v44 = vshll.u32 %v5257_v32, 16  ;;  %v5273_v47 = vld [vmem:[#allocation2 + $0x10] sm:$0xff]   ;;  %606 = vst.msk [vmem:[#allocation2 + $0x20] sm:$0xf] %vm597_vm1, %v4287_v35  ;;  %v4137_v49 = vcombine.low %v1656_v34, %v5261_v38  ;;  %v402_v50 = vmul.f32 %v4366_v31, %v5175_v8  ;;  %v5288_v60 = vld [vmem:[#allocation2 + $0x18] sm:$0xff]  }
  0x28   : > { %v5275_v48 = vld [vmem:[#allocation2 + $0x10] sm:$0xff]   ;;  %607 = vst.msk [vmem:[#allocation2 + $0x24] sm:$0xf] %vm597_vm1, %v4288_v36  ;;  %608 = vst.msk [vmem:[#allocation2 + $0x28] sm:$0xf] %vm597_vm1, %v4289_v37  ;;  %v4370_v51 = vunpack.c.l.bf16 %v5246_v28  ;;  %v4371_v52 = vunpack.c.h.bf16 %v5246_v28  ;;  %v728_v54 = vrot.slane %v726_v45, 1  ;;  %v403_v61 = vmul.f32 %v4367_v42, %v5175_v8 }
  0x29   : > { %609 = vst.msk [vmem:[#allocation2 + $0x2c] sm:$0xf] %vm597_vm1, %v4290_v39  ;;  %v723_v53 = vrot.slane %v721_v44, 1  ;;  %v1753_v55 = vshll.u32 %v5273_v47, 16  ;;  %v1757_v56 = vshrl.u32 %v5273_v47, 16  ;;  %v1746_v57 = vshrl.u32 %v4137_v49, 16 }
  0x2a   : > { %v1748_v58 = vshll.u32 %v4137_v49, 16  ;;  %v734_v59 = vshll.u32 %v5275_v48, 16  ;;  %v732_v63 = vor.u32 %v730_v46, %v728_v54  ;;  %v5291_v1 = vld [vmem:[#allocation2 + $0x18] sm:$0xff]   ;;  %v738_v5 = vshrl.u32 %v5275_v48, 16  ;;  %v2037_v45 = vld [vmem:[#allocation2 + $0x8] sm:$0xe] }
  0x2b   : > { %v724_v62 = vor.u32 %v723_v53, %v719_v43  ;;  %v1755_v0 = vrot.slane %v1753_v55, 1  ;;  %v1761_v11 = vshll.u32 %v5288_v60, 16  ;;  %v1765_v13 = vshrl.u32 %v5288_v60, 16 }
  0x2c   : > { %v1750_v9 = vrot.slane %v1748_v58, 1  ;;  %v736_v10 = vrot.slane %v734_v59, 1  ;;  %v742_v16 = vshll.u32 %v5291_v1, 16  ;;  %v746_v18 = vshrl.u32 %v5291_v1, 16 }
  0x2d   : > { %v729_v14 = vsel %vm717_vm2, %v724_v62, %v728_v54  ;;  %v1759_v15 = vor.u32 %v1757_v56, %v1755_v0  ;;  %v1763_v21 = vrot.slane %v1761_v11, 1  ;;  %v438_v27 = vadd.f32 %v5187_v17, %v402_v50  ;;  %v4397_v56 = vld [vmem:[%s5170_s16 + $0x50] sm:$0xff]  }
  0x2e   : > { %4520 = vmatprep.mubr.msk.bf16.mxu1 %vm822_vm3, %v729_v14  ;;  %v1751_v19 = vor.u32 %v1750_v9, %v1746_v57  ;;  %v737_v20 = vsel %vm717_vm2, %v732_v63, %v736_v10  ;;  %v740_v22 = vor.u32 %v738_v5, %v736_v10  ;;  %v744_v25 = vrot.slane %v742_v16, 1 }
  0x2f   : > { %v5301_v24 = vld [vmem:[#allocation2 + $0x20] sm:$0xff]   ;;  %4521 = vmatmul.mubr.msk.bf16.vlgmr.msra.gmra.mrb[0].mxu1 %vm822_vm3, %v737_v20  ;;  %v404_v28 = vmul.f32 %v4370_v51, %v5175_v8  ;;  %v405_v29 = vmul.f32 %v4371_v52, %v5175_v8  ;;  %v1764_v34 = vsel %vm717_vm2, %v1759_v15, %v1763_v21  ;;  %v1767_v35 = vor.u32 %v1765_v13, %v1763_v21 }
  0x30   : > { %v5304_v26 = vld [vmem:[#allocation2 + $0x20] sm:$0xff]   ;;  %v1756_v31 = vsel %vm717_vm2, %v1751_v19, %v1755_v0  ;;  %4545 = vmatpush3.bf16.msra.mxu1 %v5228_v12  ;;  %v1769_v36 = vshll.u32 %v5301_v24, 16  ;;  %v5313_v37 = vld [vmem:[#allocation2 + $0x28] sm:$0xff]   ;;  %v745_v39 = vsel %vm717_vm2, %v740_v22, %v744_v25  ;;  %v748_v42 = vor.u32 %v746_v18, %v744_v25  ;;  %v4398_v19 = vld [vmem:[%s5170_s16 + $0x58] sm:$0xff]  }
  0x31   : > { %4624 = vmatprep.mubr.msk.bf16.mxu0 %vm822_vm3, %v1756_v31  ;;  %v750_v43 = vshll.u32 %v5304_v26, 16  ;;  %v1773_v44 = vshrl.u32 %v5301_v24, 16  ;;  %4524 = vmatprep.mubr.msk.bf16.mxu1 %vm822_vm3, %v745_v39  ;;  %v1777_v46 = vshll.u32 %v5313_v37, 16  ;;  %v5322_v49 = vld [vmem:[#allocation2 + $0x28] sm:$0xff]   ;;  %v754_v50 = vshrl.u32 %v5304_v26, 16  ;;  %v5353_v25 = vld [vmem:[%s5170_s16 + $0x60] sm:$0xff]  }
  0x32   : > { %4625 = vmatmul.mubr.msk.bf16.vlgmr.msra.gmra.mrb[0].mxu0 %vm822_vm3, %v1764_v34  ;;  %v1771_v12 = vrot.slane %v1769_v36, 1  ;;  %v463_v51 = vmax.f32 %v5251_v6, 0.0  ;;  %v464_v53 = vmax.f32 %v5254_v7, 0.0  ;;  %v465_v54 = vmax.f32 %v5264_v40, 0.0 }
  0x33   : > { %4649 = vmatpush3.bf16.msra.mxu0 %v5240_v4  ;;  %v752_v52 = vrot.slane %v750_v43, 1  ;;  %v439_v55 = vadd.f32 %v5187_v17, %v403_v61  ;;  %v1779_v59 = vrot.slane %v1777_v46, 1  ;;  %v758_v62 = vshll.u32 %v5322_v49, 16 }
  0x34   : > { %v1772_v57 = vsel %vm717_vm2, %v1767_v35, %v1771_v12  ;;  %v1775_v58 = vor.u32 %v1773_v44, %v1771_v12  ;;  %4953 = vmatprep.subr.msk.bf16.mxu0 %vm859_vm0, %v2351_v23  ;;  %v4291_v7 = vpack.c.bf16 %v463_v51, %v463_v51  ;;  %v4292_v40 = vpack.c.bf16 %v464_v53, %v464_v53 }
  0x35   : > { %4628 = vmatprep.mubr.msk.bf16.mxu0 %vm822_vm3, %v1772_v57  ;;  %v753_v4 = vsel %vm717_vm2, %v748_v42, %v752_v52  ;;  %v756_v6 = vor.u32 %v754_v50, %v752_v52  ;;  %v760_v63 = vrot.slane %v758_v62, 1  ;;  %v4162_v61 = vcombine.low %v2037_v45, %v5261_v38  ;;  %v5371_v52 = vld [vmem:[%s5170_s16 + $0x68] sm:$0xff]  }
  0x36   : > { %v440_v0 = vadd.f32 %v5187_v17, %v404_v28  ;;  %v441_v5 = vadd.f32 %v5187_v17, %v405_v29  ;;  %v1780_v9 = vsel %vm717_vm2, %v1775_v58, %v1779_v59  ;;  %610 = vst.msk [vmem:[#allocation2 + $0x30] sm:$0xf] %vm597_vm1, %v4291_v7  ;;  %611 = vst.msk [vmem:[#allocation2 + $0x34] sm:$0xf] %vm597_vm1, %v4292_v40  ;;  %v466_v10 = vmax.f32 %v5267_v41, 0.0 }
  0x37   : > { %4525 = vmatmul.mubr.msk.bf16.gmra.mrb[4].mxu1 %vm822_vm3, %v753_v4  ;;  %v4293_v11 = vpack.c.bf16 %v465_v54, %v465_v54  ;;  %v4374_v13 = vunpack.c.l.bf16 %v4397_v56  ;;  %v761_v38 = vsel %vm717_vm2, %v756_v6, %v760_v63  ;;  %v467_v14 = vmax.f32 %v438_v27, 0.0 }
  0x38   : > { %v468_v15 = vmax.f32 %v439_v55, 0.0  ;;  %4528 = vmatprep.mubr.msk.bf16.mxu1 %vm822_vm3, %v761_v38  ;;  %v1781_v16 = vshrl.u32 %v5313_v37, 16  ;;  %v4294_v18 = vpack.c.bf16 %v466_v10, %v466_v10  ;;  %v469_v21 = vmax.f32 %v440_v0, 0.0 }
  0x39   : > { %612 = vst.msk [vmem:[#allocation2 + $0x38] sm:$0xf] %vm597_vm1, %v4293_v11  ;;  %v4295_v20 = vpack.c.bf16 %v467_v14, %v467_v14  ;;  %v470_v22 = vmax.f32 %v441_v5, 0.0  ;;  %v762_v28 = vshrl.u32 %v5322_v49, 16  ;;  %v2042_v27 = vrot.slane %v4162_v61, 1 }
  0x3a   : > { %4629 = vmatmul.mubr.msk.bf16.gmra.mrb[4].mxu0 %vm822_vm3, %v1780_v9  ;;  %v4296_v41 = vpack.c.bf16 %v468_v15, %v468_v15  ;;  %613 = vst.msk [vmem:[#allocation2 + $0x3c] sm:$0xf] %vm597_vm1, %v4294_v18  ;;  %v4375_v29 = vunpack.c.h.bf16 %v4397_v56  ;;  %v406_v31 = vmul.f32 %v4374_v13, %v5175_v8  ;;  %v2043_v34 = vrot.slane %v5273_v47, 1 }
  0x3b   : > { %614 = vst.msk [vmem:[#allocation2 + $0x40] sm:$0xf] %vm597_vm1, %v4295_v20  ;;  %v4297_v35 = vpack.c.bf16 %v469_v21, %v469_v21  ;;  %v4298_v36 = vpack.c.bf16 %v470_v22, %v470_v22  ;;  %v4378_v39 = vunpack.c.l.bf16 %v4398_v19  ;;  %v4379_v44 = vunpack.c.h.bf16 %v4398_v19 }
  0x3c   : > { %615 = vst.msk [vmem:[#allocation2 + $0x44] sm:$0xf] %vm597_vm1, %v4296_v41  ;;  %v407_v42 = vmul.f32 %v4375_v29, %v5175_v8  ;;  %v442_v43 = vadd.f32 %v5187_v17, %v406_v31  ;;  %v1783_v12 = vor.u32 %v1781_v16, %v1779_v59  ;;  %v2045_v46 = vrot.slane %v5288_v60, 1 }
  0x3d   : > { %v5363_v45 = vld [vmem:[#allocation2 + $0x30] sm:$0xff]   ;;  %616 = vst.msk [vmem:[#allocation2 + $0x48] sm:$0xf] %vm597_vm1, %v4297_v35  ;;  %617 = vst.msk [vmem:[#allocation2 + $0x4c] sm:$0xf] %vm597_vm1, %v4298_v36  ;;  %v408_v50 = vmul.f32 %v4378_v39, %v5175_v8  ;;  %v4382_v51 = vunpack.c.l.bf16 %v5353_v25  ;;  %v764_v54 = vor.u32 %v762_v28, %v760_v63  ;;  %v409_v57 = vmul.f32 %v4379_v44, %v5175_v8 }
  0x3e   : > { %v5373_v53 = vld [vmem:[#allocation2 + $0x30] sm:$0xff]   ;;  %v443_v55 = vadd.f32 %v5187_v17, %v407_v42  ;;  %v471_v56 = vmax.f32 %v442_v43, 0.0  ;;  %v1785_v58 = vshll.u32 %v5363_v45, 16  ;;  %v1789_v59 = vshrl.u32 %v5363_v45, 16 }
  0x3f   : > { %v444_v62 = vadd.f32 %v5187_v17, %v408_v50  ;;  %v410_v4 = vmul.f32 %v4382_v51, %v5175_v8  ;;  %v766_v6 = vshll.u32 %v5373_v53, 16  ;;  %v770_v7 = vshrl.u32 %v5373_v53, 16 }
  0x40   : > { %v472_v40 = vmax.f32 %v443_v55, 0.0  ;;  %v4299_v61 = vpack.c.bf16 %v471_v56, %v471_v56  ;;  %v1787_v63 = vrot.slane %v1785_v58, 1  ;;  %v2044_v5 = vsel %vm1153_vm4, %v2042_v27, %v2043_v34  ;;  %v5407_v27 = vld [vmem:[%s6141_s3] ss:$0 sps:$4 sm:$0x44]  }
  0x41   : > { %v5383_v0 = vld [vmem:[#allocation2 + $0x38] sm:$0xff]   ;;  %v445_v9 = vadd.f32 %v5187_v17, %v409_v57  ;;  %v4383_v10 = vunpack.c.h.bf16 %v5353_v25  ;;  %v768_v11 = vrot.slane %v766_v6, 1  ;;  %v446_v14 = vadd.f32 %v5187_v17, %v410_v4  ;;  %v1148_v56 = vld [vmem:[#allocation2] sm:$0xe] }
  0x42   : > { %v5390_v13 = vld [vmem:[#allocation2 + $0x38] sm:$0xff]   ;;  %v4300_v38 = vpack.c.bf16 %v472_v40, %v472_v40  ;;  %618 = vst.msk [vmem:[#allocation2 + $0x50] sm:$0xf] %vm597_vm1, %v4299_v61  ;;  %v4386_v15 = vunpack.c.l.bf16 %v5371_v52  ;;  %v1788_v16 = vsel %vm717_vm2, %v1783_v12, %v1787_v63  ;;  %v1791_v18 = vor.u32 %v1789_v59, %v1787_v63 }
  0x43   : > { %v1793_v19 = vshll.u32 %v5383_v0, 16  ;;  %v5397_v20 = vld [vmem:[#allocation2 + $0x40] sm:$0xff]   ;;  %v473_v41 = vmax.f32 %v444_v62, 0.0  ;;  %4632 = vmatprep.mubr.msk.bf16.mxu0 %vm822_vm3, %v1788_v16  ;;  %v769_v21 = vsel %vm717_vm2, %v764_v54, %v768_v11  ;;  %v772_v22 = vor.u32 %v770_v7, %v768_v11 }
  0x44   : > { %v774_v25 = vshll.u32 %v5390_v13, 16  ;;  %v778_v28 = vshrl.u32 %v5390_v13, 16  ;;  %619 = vst.msk [vmem:[#allocation2 + $0x54] sm:$0xf] %vm597_vm1, %v4300_v38  ;;  %4529 = vmatmul.mubr.msk.bf16.gmra.mrb[8].mxu1 %vm822_vm3, %v769_v21  ;;  %v782_v31 = vshll.u32 %v5397_v20, 16  ;;  %v5413_v35 = vld [vmem:[#allocation2 + $0x48] sm:$0xff]   ;;  %v411_v55 = vmul.f32 %v4383_v10, %v5175_v8 }
  0x45   : > { %v5410_v29 = vrot.slane %v1793_v19, 1  ;;  %v786_v36 = vshrl.u32 %v5397_v20, 16  ;;  %v474_v39 = vmax.f32 %v445_v9, 0.0  ;;  %v2047_v43 = vrot.slane %v5301_v24, 1 }
  0x46   : > { %v776_v42 = vrot.slane %v774_v25, 1  ;;  %v4301_v44 = vpack.c.bf16 %v473_v41, %v473_v41  ;;  %v475_v12 = vmax.f32 %v446_v14, 0.0  ;;  %v784_v51 = vrot.slane %v782_v31, 1  ;;  %v5434_v9 = vld [vmem:[%s6141_s3 + $0x4] ss:$0 sps:$4 sm:$0x88]  }
  0x47   : > { %v1796_v50 = vsel %vm717_vm2, %v1791_v18, %v5410_v29  ;;  %v790_v54 = vshll.u32 %v5413_v35, 16  ;;  %v4302_v59 = vpack.c.bf16 %v474_v39, %v474_v39  ;;  %v412_v62 = vmul.f32 %v4386_v15, %v5175_v8 }
  0x48   : > { %4633 = vmatmul.mubr.msk.bf16.gmra.mrb[8].mxu0 %vm822_vm3, %v1796_v50  ;;  %v777_v57 = vsel %vm717_vm2, %v772_v22, %v776_v42  ;;  %v780_v58 = vor.u32 %v778_v28, %v776_v42  ;;  %620 = vst.msk [vmem:[#allocation2 + $0x58] sm:$0xf] %vm597_vm1, %v4301_v44  ;;  %v788_v4 = vor.u32 %v786_v36, %v784_v51  ;;  %v794_v7 = vshrl.u32 %v5413_v35, 16 }
  0x49   : > { %4532 = vmatprep.mubr.msk.bf16.mxu1 %vm822_vm3, %v777_v57  ;;  %4650 = vmatprep.mubr.msk.bf16.mxu0 %vm822_vm3, %v2044_v5  ;;  %v792_v6 = vrot.slane %v790_v54, 1  ;;  %v4303_v40 = vpack.c.bf16 %v475_v12, %v475_v12  ;;  %621 = vst.msk [vmem:[#allocation2 + $0x5c] sm:$0xf] %vm597_vm1, %v4302_v59  ;;  %v1182_v63 = vrot.slane %v5407_v27, 2  ;;  %v4098_v10 = vcombine.low %v1148_v56, %v5248_v30  ;;  %v5494_v56 = vld [vmem:[#allocation2 + $0x40] sm:$0xff]  }
  0x4a   : > { %v785_v61 = vsel %vm717_vm2, %v780_v58, %v784_v51  ;;  %v447_v38 = vadd.f32 %v5187_v17, %v411_v55  ;;  %v2046_v14 = vsel %vm1153_vm4, %v2043_v34, %v2045_v46  ;;  %v2389_v15 = vsel %vm859_vm0, %v2351_v23, 0 }
  0x4b   : > { %v793_v5 = vsel %vm717_vm2, %v788_v4, %v792_v6  ;;  %v5438_v11 = vld [vmem:[#allocation2 + $0x50] sm:$0xff]   ;;  %622 = vst.msk [vmem:[#allocation2 + $0x60] sm:$0xf] %vm597_vm1, %v4303_v40  ;;  %4948 = vmatprep.subr.msk.bf16.mxu1 %vm859_vm0, %v1182_v63  ;;  %v448_v30 = vadd.f32 %v5187_v17, %v412_v62  ;;  %v2048_v47 = vsel %vm1153_vm4, %v2045_v46, %v2047_v43  ;;  %v2736_v18 = vrot.slane %v5434_v9, 3 }
  0x4c   : > { %4533 = vmatmul.mubr.msk.bf16.gmra.mrb[12].mxu1 %vm822_vm3, %v785_v61  ;;  %v796_v16 = vor.u32 %v794_v7, %v792_v6  ;;  %v798_v34 = vshll.u32 %v5438_v11, 16  ;;  %v476_v2 = vmax.f32 %v447_v38, 0.0  ;;  %v1154_v19 = vrot.slane %v4098_v10, 1 }
  0x4d   : > { %4536 = vmatprep.mubr.msk.bf16.mxu1 %vm822_vm3, %v793_v5  ;;  %v477_v23 = vmax.f32 %v448_v30, 0.0  ;;  %v1155_v41 = vrot.slane %v5259_v33, 1  ;;  %v802_v22 = vshrl.u32 %v5438_v11, 16  ;;  %v4387_v60 = vunpack.c.h.bf16 %v5371_v52 }
  0x4e   : > { %v800_v21 = vrot.slane %v798_v34, 1  ;;  %v4304_v25 = vpack.c.bf16 %v476_v2, %v476_v2  ;;  %v2049_v46 = vrot.slane %v5313_v37, 1  ;;  %v1157_v39 = vrot.slane %v5275_v48, 1 }
  0x4f   : > { %v4305_v28 = vpack.c.bf16 %v477_v23, %v477_v23  ;;  %v5469_v31 = vsel %vm1153_vm4, %v1154_v19, %v1155_v41  ;;  %v413_v42 = vmul.f32 %v4387_v60, %v5175_v8  ;;  %v2051_v44 = vrot.slane %v5363_v45, 1 }
  0x50   : > { %4651 = vmatmul.mubr.msk.bf16.vlgmr.msra.gmra.mrb[0].mxu0 %vm822_vm3, %v2046_v14  ;;  %v5472_v36 = vld [vmem:[#allocation2 + $0x58] sm:$0xff]   ;;  %623 = vst.msk [vmem:[#allocation2 + $0x64] sm:$0xf] %vm597_vm1, %v4304_v25  ;;  %v801_v52 = vsel %vm717_vm2, %v796_v16, %v800_v21  ;;  %v804_v12 = vor.u32 %v802_v22, %v800_v21  ;;  %v5488_v8 = vsel %vm1153_vm4, %v1155_v41, %v1157_v39  ;;  %v2053_v24 = vrot.slane %v5383_v0, 1  ;;  %v5516_v14 = vld [vmem:[#allocation2 + $0x48] sm:$0xff]  }
  0x51   : > { %4675 = vmatpush3.bf16.msra.mxu0 %v2389_v15  ;;  %4654 = vmatprep.mubr.msk.bf16.mxu0 %vm822_vm3, %v2048_v47  ;;  %624 = vst.msk [vmem:[#allocation2 + $0x68] sm:$0xf] %vm597_vm1, %v4305_v28  ;;  %v806_v50 = vshll.u32 %v5472_v36, 16  ;;  %v810_v51 = vshrl.u32 %v5472_v36, 16  ;;  %v2050_v45 = vsel %vm1153_vm4, %v2047_v43, %v2049_v46  ;;  %v449_v57 = vadd.f32 %v5187_v17, %v413_v42  ;;  %v5526_v47 = vld [vmem:[#allocation2 + $0x50] sm:$0xff]   ;;  %v5554_v42 = vld [vmem:[#allocation2 + $0x58] sm:$0xff]  }
  0x52   : > { %v5005_v37 = vld [vmem:[#allocation2 + $0x60] ss:$0 sps:$4 sm:$0x11]   ;;  %4954 = vmatprep.subr.msk.bf16.mxu0 %vm859_vm0, %v2736_v18  ;;  %v2052_v58 = vsel %vm1153_vm4, %v2049_v46, %v2051_v44  ;;  %v2055_v43 = vrot.slane %v5494_v56, 1  ;;  %v1165_v17 = vrot.slane %v5373_v53, 1  ;;  %v1167_v61 = vrot.slane %v5390_v13, 1 }
  0x53   : > { %v814_v54 = vshll.u32 %v5005_v37, 16  ;;  %v808_v55 = vrot.slane %v806_v50, 1  ;;  %v478_v6 = vmax.f32 %v449_v57, 0.0  ;;  %v1169_v5 = vrot.slane %v5397_v20, 1  ;;  %v5053_v57 = vld [vmem:[%s6140_s2] ss:$0 sm:$0xff] }
  0x54   : > { %4537 = vmatmul.mubr.msk.bf16.gmra.mrb[16].mxu1 %vm822_vm3, %v801_v52  ;;  %v5511_v10 = vsel %vm1153_vm4, %v1165_v17, %v1167_v61  ;;  %v2054_v38 = vsel %vm1153_vm4, %v2051_v44, %v2053_v24  ;;  %v5521_v15 = vld [vmem:[%s6141_s3] ss:$0 sps:$4 sm:$0x88]   ;;  %v2056_v30 = vsel %vm1153_vm4, %v2053_v24, %v2055_v43  ;;  %v1171_v34 = vrot.slane %v5413_v35, 1 }
  0x55   : > { %v816_v59 = vrot.slane %v814_v54, 1  ;;  %v809_v62 = vsel %vm717_vm2, %v804_v12, %v808_v55  ;;  %v812_v4 = vor.u32 %v810_v51, %v808_v55  ;;  %v4306_v40 = vpack.c.bf16 %v478_v6, %v478_v6  ;;  %v5052_v54 = vld [vmem:[%s6139_s1] ss:$0 sm:$0xff] }
  0x56   : > { %4540 = vmatprep.mubr.msk.bf16.mxu1 %vm822_vm3, %v809_v62  ;;  %v5529_v16 = vsel %vm1153_vm4, %v1167_v61, %v1169_v5  ;;  %v1173_v2 = vrot.slane %v5438_v11, 1  ;;  %v5535_v23 = vsel %vm1153_vm4, %v1169_v5, %v1171_v34  ;;  %v2059_v41 = vrot.slane %v5526_v47, 1 }
  0x57   : > { %v817_v7 = vsel %vm717_vm2, %v812_v4, %v816_v59  ;;  %625 = vst.msk [vmem:[#allocation2 + $0x6c] sm:$0xf] %vm597_vm1, %v4306_v40  ;;  %v1175_v21 = vrot.slane %v5472_v36, 1  ;;  %v1220_v22 = vsel %vm859_vm0, %v1182_v63, 0  ;;  %v1463_v25 = vrot.slane %v5521_v15, 3  ;;  %v5562_v63 = vld [vmem:[#allocation2 + $0x60] sm:$0xff]  }
  0x58   : > { %4655 = vmatmul.mubr.msk.bf16.gmra.mrb[4].mxu0 %vm822_vm3, %v2050_v45  ;;  %v5540_v19 = vsel %vm1153_vm4, %v1171_v34, %v1173_v2  ;;  %v1177_v60 = vrot.slane %v5005_v37, 1  ;;  %v2063_v44 = vrot.slane %v5562_v63, 1  ;;  %v349_v37 = vld [vmem:[%s5170_s16 + $0x70] sm:$0xf]  ;;  %v1797_v4 = vshrl.u32 %v5383_v0, 16 }
  0x59   : > { %4658 = vmatprep.mubr.msk.bf16.mxu0 %vm822_vm3, %v2052_v58  ;;  %v5549_v46 = vsel %vm1153_vm4, %v1173_v2, %v1175_v21  ;;  %v378_v12 = vunpack.c.l.bf16 %v349_v37  ;;  %v5012_v50 = vld [vmem:[#allocation2 + $0x68] ss:$0 sps:$4 sm:$0x11]   ;;  %v1801_v6 = vshll.u32 %v5494_v56, 16  ;;  %v1813_v34 = vshrl.u32 %v5516_v14, 16 }
  0x5a   : > { %v5557_v52 = vsel %vm1153_vm4, %v1175_v21, %v1177_v60  ;;  %v2065_v59 = vrot.slane %v5012_v50, 1  ;;  %v1799_v40 = vor.u32 %v1797_v4, %v5410_v29  ;;  %v1817_v2 = vshll.u32 %v5526_v47, 16  ;;  %v5625_v37 = vld [vmem:[%s6141_s3 + $0x8] sm:$0x1] }
  0x5b   : > { %v414_v45 = vmul.f32 %v5052_v54, %v378_v12  ;;  %v1803_v61 = vrot.slane %v1801_v6, 1  ;;  %v1833_v12 = vshll.u32 %v5562_v63, 16  ;;  %v1837_v9 = vshrl.u32 %v5562_v63, 16  ;;  %v5022_v4 = vld [vmem:[#allocation2 + $0x48] sm:$0xff]  }
  0x5c   : > { %4541 = vmatmul.mubr.msk.bf16.gmra.mrb[20].mxu1 %vm822_vm3, %v817_v7  ;;  %v1809_v7 = vshll.u32 %v5516_v14, 16  ;;  %v2066_v5 = vsel %vm1153_vm4, %v2063_v44, %v2065_v59 }
  0x5d   : > { %4546 = vmatprep.mubr.msk.bf16.mxu1 %vm822_vm3, %v5257_v32  ;;  %v2057_v32 = vrot.slane %v5516_v14, 1  ;;  %v450_v58 = vadd.f32 %v5053_v57, %v414_v45  ;;  %v5598_v0 = vsel %vm717_vm2, %v1799_v40, %v1803_v61  ;;  %v5016_v14 = vld [vmem:[#allocation2 + $0x20] sm:$0xff]   ;;  %v5017_v45 = vld [vmem:[#allocation2 + $0x28] sm:$0xff]  }
  0x5f   : > { %v2058_v28 = vsel %vm1153_vm4, %v2055_v43, %v2057_v32  ;;  %v2060_v27 = vsel %vm1153_vm4, %v2057_v32, %v2059_v41  ;;  %v479_v62 = vmax.f32 %v450_v58, 0.0  ;;  %v1805_v43 = vshrl.u32 %v5494_v56, 16  ;;  %v5021_v58 = vld [vmem:[#allocation2 + $0x40] sm:$0xff]  }
  0x60   : > { %4659 = vmatmul.mubr.msk.bf16.gmra.mrb[8].mxu0 %vm822_vm3, %v2054_v38  ;;  %v5013_v38 = vld [vmem:[#allocation2 + $0x10] sm:$0xff]   ;;  %v1821_v32 = vshrl.u32 %v5526_v47, 16 }
  0x61   : > { %4662 = vmatprep.mubr.msk.bf16.mxu0 %vm822_vm3, %v2056_v30  ;;  %v4307_v24 = vpack.c.bf16 %v479_v62, %v479_v62  ;;  %v1811_v30 = vrot.slane %v1809_v7, 1  ;;  %v1807_v56 = vor.u32 %v1805_v43, %v1803_v61  ;;  %v2544_v62 = vld [vmem:[#allocation2 + $0x10] sm:$0xf]  ;;  %v5681_v61 = vld [vmem:[#allocation2 + $0x20] sm:$0xff]  }
  0x63   : > { %626 = vst.msk [vmem:[#allocation2 + $0x70] sm:$0xf] %vm597_vm1, %v4307_v24  ;;  %v5602_v29 = vsel %vm717_vm2, %v1807_v56, %v1811_v30  ;;  %v1815_v21 = vor.u32 %v1813_v34, %v1811_v30  ;;  %v5024_v24 = vld [vmem:[#allocation2 + $0x58] sm:$0xff]   ;;  %v5687_v56 = vld [vmem:[#allocation2 + $0x28] sm:$0xff]  }
  0x64   : > { %4547 = vmatmul.mubr.msk.bf16.vlgmr.msra.gmra.mrb[0].mxu1 %vm822_vm3, %v5259_v33  ;;  %v2061_v33 = vrot.slane %v5554_v42, 1  ;;  %v5026_v34 = vld [vmem:[#allocation2 + $0x68] sm:$0xff]  }
  0x65   : > { %4571 = vmatpush3.bf16.msra.mxu1 %v1220_v22  ;;  %4550 = vmatprep.mubr.msk.bf16.mxu1 %vm822_vm3, %v5275_v48  ;;  %v1819_v22 = vrot.slane %v1817_v2, 1  ;;  %v5054_v48 = vld [vmem:[%s6141_s3 + $0x4] sm:$0x1]  ;;  %v2649_v2 = vshll.u32 %v5681_v61, 16 }
  0x66   : > { %4949 = vmatprep.subr.msk.bf16.mxu1 %vm859_vm0, %v1463_v25  ;;  %v2062_v51 = vsel %vm1153_vm4, %v2059_v41, %v2061_v33  ;;  %v2064_v55 = vsel %vm1153_vm4, %v2061_v33, %v2063_v44  ;;  %v1825_v41 = vshll.u32 %v5554_v42, 16  ;;  %v2774_v44 = vsel %vm859_vm0, %v2736_v18, 0 }
  0x67   : > { %v1823_v33 = vor.u32 %v1821_v32, %v1819_v22 }
  0x68   : > { %4663 = vmatmul.mubr.msk.bf16.gmra.mrb[12].mxu0 %vm822_vm3, %v2058_v28  ;;  %v1827_v60 = vrot.slane %v1825_v41, 1  ;;  %v5015_v28 = vld [vmem:[#allocation2 + $0x18] sm:$0xff]  }
  0x69   : > { %4666 = vmatprep.mubr.msk.bf16.mxu0 %vm822_vm3, %v2060_v27  ;;  %v5610_v27 = vsel %vm717_vm2, %v1815_v21, %v1819_v22  ;;  %v2651_v21 = vrot.slane %v2649_v2, 1  ;;  %v5698_v22 = vld [vmem:[#allocation2 + $0x30] sm:$0xff]  }
  0x6a   : > { %v5620_v47 = vsel %vm717_vm2, %v1823_v33, %v1827_v60 }
  0x6c   : > { %4551 = vmatmul.mubr.msk.bf16.gmra.mrb[4].mxu1 %vm822_vm3, %v5291_v1 }
  0x6d   : > { %4554 = vmatprep.mubr.msk.bf16.mxu1 %vm822_vm3, %v5304_v26 }
  0x70   : > { %4667 = vmatmul.mubr.msk.bf16.gmra.mrb[16].mxu0 %vm822_vm3, %v2062_v51  ;;  %v1835_v51 = vrot.slane %v1833_v12, 1  ;;  %v2996_v12 = vsel %vm859_vm0, %v5625_v37, 0 }
  0x71   : > { %4670 = vmatprep.mubr.msk.bf16.mxu0 %vm822_vm3, %v2064_v55 }
  0x72   : > { %v1839_v57 = vor.u32 %v1837_v9, %v1835_v51 }
  0x74   : > { %4555 = vmatmul.mubr.msk.bf16.gmra.mrb[8].mxu1 %vm822_vm3, %v5322_v49 }
  0x75   : > { %4558 = vmatprep.mubr.msk.bf16.mxu1 %vm822_vm3, %v5373_v53  ;;  %v2653_v53 = vshrl.u32 %v5681_v61, 16 }
  0x78   : > { %4671 = vmatmul.mubr.msk.bf16.gmra.mrb[20].mxu0 %vm822_vm3, %v2066_v5 }
  0x79   : > { %4676 = vmatprep.mubr.msk.bf16.mxu0 %vm822_vm3, %v5013_v38 }
  0x7c   : > { %4559 = vmatmul.mubr.msk.bf16.gmra.mrb[12].mxu1 %vm822_vm3, %v5390_v13  ;;  %v1829_v13 = vshrl.u32 %v5554_v42, 16  ;;  %v5018_v42 = vld [vmem:[#allocation2 + $0x30] sm:$0xff]  }
  0x7d   : > { %4562 = vmatprep.mubr.msk.bf16.mxu1 %vm822_vm3, %v5397_v20  ;;  %v1841_v20 = vshll.u32 %v5012_v50, 16  ;;  %v5019_v50 = vld [vmem:[#allocation2 + $0x38] sm:$0xff]  }
  0x7e   : > { %v1831_v18 = vor.u32 %v1829_v13, %v1827_v60  ;;  %v2661_v13 = vshrl.u32 %v5687_v56, 16 }
  0x7f   : > { %v1843_v54 = vrot.slane %v1841_v20, 1  ;;  %v2669_v20 = vshrl.u32 %v5698_v22, 16 }
  0x80   : > { %4677 = vmatmul.mubr.msk.bf16.vlgmr.msra.gmra.mrb[0].mxu0 %vm822_vm3, %v5015_v28  ;;  %v5635_v55 = vsel %vm717_vm2, %v1831_v18, %v1835_v51  ;;  %v2655_v28 = vor.u32 %v2653_v53, %v2651_v21 }
  0x81   : > { %4701 = vmatpush3.bf16.msra.mxu0 %v2774_v44  ;;  %4680 = vmatprep.mubr.msk.bf16.mxu0 %vm822_vm3, %v5016_v14  ;;  %v5642_v63 = vsel %vm717_vm2, %v1839_v57, %v1843_v54  ;;  %v5701_v14 = vld [vmem:[#allocation2 + $0x38] sm:$0xff]   ;;  %v5719_v57 = vld [vmem:[#allocation2 + $0x48] sm:$0xff]  }
  0x82   : > { %4955 = vmatprep.subr.msk.bf16.mxu0 %vm859_vm0, %v5625_v37  ;;  %v2673_v18 = vshll.u32 %v5701_v14, 16 }
  0x84   : > { %4563 = vmatmul.mubr.msk.bf16.gmra.mrb[16].mxu1 %vm822_vm3, %v5413_v35  ;;  %v1159_v35 = vrot.slane %v5291_v1, 1  ;;  %v5023_v1 = vld [vmem:[#allocation2 + $0x50] sm:$0xff]   ;;  %v2675_v37 = vrot.slane %v2673_v18, 1 }
  0x85   : > { %4566 = vmatprep.mubr.msk.bf16.mxu1 %vm822_vm3, %v5438_v11  ;;  %v1501_v11 = vsel %vm859_vm0, %v1463_v25, 0  ;;  %v1163_v25 = vrot.slane %v5322_v49, 1  ;;  %v5025_v49 = vld [vmem:[#allocation2 + $0x60] sm:$0xff]  }
  0x86   : > { %v1160_v59 = vsel %vm1153_vm4, %v1157_v39, %v1159_v35 }
  0x87   : > { %v1166_v5 = vsel %vm1153_vm4, %v1163_v25, %v1165_v17  ;;  %v2657_v17 = vshll.u32 %v5687_v56, 16 }
  0x88   : > { %4681 = vmatmul.mubr.msk.bf16.gmra.mrb[4].mxu0 %vm822_vm3, %v5017_v45 }
  0x89   : > { %4684 = vmatprep.mubr.msk.bf16.mxu0 %vm822_vm3, %v5018_v42  ;;  %v2659_v33 = vrot.slane %v2657_v17, 1 }
  0x8b   : > { %v2660_v9 = vsel %vm717_vm2, %v2655_v28, %v2659_v33  ;;  %v2663_v54 = vor.u32 %v2661_v13, %v2659_v33  ;;  %v5763_v28 = vld [vmem:[#allocation2 + $0x70] ss:$0 sps:$4 sm:$0x11]   ;;  %v5042_v33 = vld [vmem:[#allocation2 + $0x28] sm:$0xff]  }
  0x8c   : > { %4567 = vmatmul.mubr.msk.bf16.gmra.mrb[20].mxu1 %vm822_vm3, %v5472_v36  ;;  %v5659_v36 = vld [vmem:[#allocation2 + $0x14] sm:$0xf] }
  0x8d   : > { %4572 = vmatprep.mubr.msk.bf16.mxu1 %vm822_vm3, %v5469_v31  ;;  %v1161_v31 = vrot.slane %v5304_v26, 1  ;;  %v4201_v15 = vcombine.low %v2544_v62, %v5659_v36  ;;  %v5732_v62 = vld [vmem:[#allocation2 + $0x50] sm:$0xff]  }
  0x8f   : > { %v1162_v39 = vsel %vm1153_vm4, %v1159_v35, %v1161_v31  ;;  %v2636_v6 = vshll.u32 %v4201_v15, 16  ;;  %v1164_v26 = vsel %vm1153_vm4, %v1161_v31, %v1163_v25  ;;  %v2634_v43 = vshrl.u32 %v4201_v15, 16  ;;  %v5735_v15 = vld [vmem:[#allocation2 + $0x58] sm:$0xff]  }
  0x90   : > { %4685 = vmatmul.mubr.msk.bf16.gmra.mrb[8].mxu0 %vm822_vm3, %v5019_v50  ;;  %v2677_v50 = vshrl.u32 %v5701_v14, 16  ;;  %v2709_v2 = vshrl.u32 %v5735_v15, 16 }
  0x91   : > { %4688 = vmatprep.mubr.msk.bf16.mxu0 %vm822_vm3, %v5021_v58  ;;  %v2638_v7 = vrot.slane %v2636_v6, 1  ;;  %v2701_v6 = vshrl.u32 %v5732_v62, 16 }
  0x93   : > { %v2639_v38 = vor.u32 %v2638_v7, %v2634_v43  ;;  %v5038_v7 = vld [vmem:[#allocation2 + $0x18] sm:$0xff]  }
  0x94   : > { %4573 = vmatmul.mubr.msk.bf16.vlgmr.msra.gmra.mrb[0].mxu1 %vm822_vm3, %v5488_v8  ;;  %v5674_v8 = vld [vmem:[#allocation2 + $0x18] sm:$0xff]  }
  0x95   : > { %4597 = vmatpush3.bf16.msra.mxu1 %v1501_v11  ;;  %4576 = vmatprep.mubr.msk.bf16.mxu1 %vm822_vm3, %v1160_v59  ;;  %v2641_v40 = vshll.u32 %v5674_v8, 16  ;;  %v2645_v32 = vshrl.u32 %v5674_v8, 16  ;;  %v2689_v11 = vshll.u32 %v5719_v57, 16 }
  0x96   : > { %4951 = vmatprep.subr.msk.bf16.mxu1 %vm859_vm0, %v5054_v48  ;;  %v2693_v48 = vshrl.u32 %v5719_v57, 16 }
  0x97   : > { %v2643_v30 = vrot.slane %v2641_v40, 1  ;;  %v2691_v31 = vrot.slane %v2689_v11, 1  ;;  %v5048_v11 = vld [vmem:[#allocation2 + $0x48] sm:$0xff]  }
  0x98   : > { %4689 = vmatmul.mubr.msk.bf16.gmra.mrb[12].mxu0 %vm822_vm3, %v5022_v4  ;;  %v5034_v4 = vld [vmem:[#allocation2 + $0x8] sm:$0xff]  }
  0x99   : > { %4692 = vmatprep.mubr.msk.bf16.mxu0 %vm822_vm3, %v5023_v1  ;;  %v2644_v41 = vsel %vm717_vm2, %v2639_v38, %v2643_v30  ;;  %v2647_v60 = vor.u32 %v2645_v32, %v2643_v30  ;;  %v2695_v43 = vor.u32 %v2693_v48, %v2691_v31  ;;  %v5750_v38 = vld [vmem:[#allocation2 + $0x68] sm:$0xff]  }
  0x9a   : > { %v2721_v53 = vshll.u32 %v5750_v38, 16 }
  0x9b   : > { %v2652_v44 = vsel %vm717_vm2, %v2647_v60, %v2651_v21  ;;  %v5040_v21 = vld [vmem:[#allocation2 + $0x20] sm:$0xff]  }
  0x9c   : > { %4577 = vmatmul.mubr.msk.bf16.gmra.mrb[4].mxu1 %vm822_vm3, %v1162_v39 }
  0x9d   : > { %4580 = vmatprep.mubr.msk.bf16.mxu1 %vm822_vm3, %v1164_v26  ;;  %v2705_v26 = vshll.u32 %v5735_v15, 16 }
  0xa0   : > { %4693 = vmatmul.mubr.msk.bf16.gmra.mrb[16].mxu0 %vm822_vm3, %v5024_v24 }
  0xa1   : > { %4696 = vmatprep.mubr.msk.bf16.mxu0 %vm822_vm3, %v5025_v49  ;;  %v5747_v49 = vld [vmem:[#allocation2 + $0x60] sm:$0xff]  }
  0xa2   : > { %v2713_v30 = vshll.u32 %v5747_v49, 16 }
  0xa4   : > { %4581 = vmatmul.mubr.msk.bf16.gmra.mrb[8].mxu1 %vm822_vm3, %v1166_v5  ;;  %v2707_v5 = vrot.slane %v2705_v26, 1  ;;  %v2715_v17 = vrot.slane %v2713_v30, 1  ;;  %v2951_v26 = vrot.slane %v5735_v15, 1  ;;  %v2957_v15 = vrot.slane %v5763_v28, 1 }
  0xa5   : > { %4584 = vmatprep.mubr.msk.bf16.mxu1 %vm822_vm3, %v5511_v10  ;;  %v2665_v10 = vshll.u32 %v5698_v22, 16 }
  0xa6   : > { %v2711_v60 = vor.u32 %v2709_v2, %v2707_v5 }
  0xa7   : > { %v2667_v51 = vrot.slane %v2665_v10, 1 }
  0xa8   : > { %4697 = vmatmul.mubr.msk.bf16.gmra.mrb[20].mxu0 %vm822_vm3, %v5026_v34  ;;  %v2716_v13 = vsel %vm717_vm2, %v2711_v60, %v2715_v17 }
  0xa9   : > { %4702 = vmatprep.mubr.msk.bf16.mxu0 %vm822_vm3, %v2644_v41  ;;  %v2671_v45 = vor.u32 %v2669_v20, %v2667_v51  ;;  %v2668_v42 = vsel %vm717_vm2, %v2663_v54, %v2667_v51  ;;  %v2717_v41 = vshrl.u32 %v5747_v49, 16  ;;  %v5044_v51 = vld [vmem:[#allocation2 + $0x30] sm:$0xff]  }
  0xab   : > { %v2676_v58 = vsel %vm717_vm2, %v2671_v45, %v2675_v37  ;;  %v2719_v10 = vor.u32 %v2717_v41, %v2715_v17 }
  0xac   : > { %4585 = vmatmul.mubr.msk.bf16.gmra.mrb[12].mxu1 %vm822_vm3, %v5529_v16  ;;  %v5716_v16 = vld [vmem:[#allocation2 + $0x40] sm:$0xff]  }
  0xad   : > { %4588 = vmatprep.mubr.msk.bf16.mxu1 %vm822_vm3, %v5535_v23  ;;  %v2681_v23 = vshll.u32 %v5716_v16, 16  ;;  %v2685_v35 = vshrl.u32 %v5716_v16, 16  ;;  %v2945_v48 = vrot.slane %v5716_v16, 1 }
  0xaf   : > { %v2683_v59 = vrot.slane %v2681_v23, 1 }
  0xb0   : > { %4703 = vmatmul.mubr.msk.bf16.vlgmr.msra.gmra.mrb[0].mxu0 %vm822_vm3, %v2652_v44  ;;  %v2929_v44 = vld [vmem:[#allocation2 + $0x10] sm:$0xe] }
  0xb1   : > { %4727 = vmatpush3.bf16.msra.mxu0 %v2996_v12  ;;  %4706 = vmatprep.mubr.msk.bf16.mxu0 %vm822_vm3, %v2660_v9  ;;  %v2687_v1 = vor.u32 %v2685_v35, %v2683_v59  ;;  %v2725_v12 = vshrl.u32 %v5750_v38, 16  ;;  %v2729_v9 = vshll.u32 %v5763_v28, 16  ;;  %v4227_v18 = vcombine.low %v2929_v44, %v5659_v36  ;;  %v5047_v36 = vld [vmem:[#allocation2 + $0x40] sm:$0xff]  }
  0xb2   : > { %v2937_v35 = vrot.slane %v5681_v61, 1  ;;  %v2943_v61 = vrot.slane %v5701_v14, 1 }
  0xb3   : > { %v2692_v39 = vsel %vm717_vm2, %v2687_v1, %v2691_v31  ;;  %v2731_v45 = vrot.slane %v2729_v9, 1  ;;  %v2934_v23 = vrot.slane %v4227_v18, 1  ;;  %v2941_v1 = vrot.slane %v5698_v22, 1  ;;  %v5050_v31 = vld [vmem:[#allocation2 + $0x58] sm:$0xff]  }
  0xb4   : > { %4589 = vmatmul.mubr.msk.bf16.gmra.mrb[16].mxu1 %vm822_vm3, %v5540_v19  ;;  %v2679_v19 = vor.u32 %v2677_v50, %v2675_v37  ;;  %v5046_v37 = vld [vmem:[#allocation2 + $0x38] sm:$0xff]   ;;  %v2947_v22 = vrot.slane %v5719_v57, 1  ;;  %v2946_v14 = vsel %vm1153_vm4, %v2943_v61, %v2945_v48  ;;  %v2953_v57 = vrot.slane %v5747_v49, 1 }
  0xb5   : > { %4592 = vmatprep.mubr.msk.bf16.mxu1 %vm822_vm3, %v5549_v46  ;;  %v2697_v46 = vshll.u32 %v5732_v62, 16 }
  0xb6   : > { %v2684_v25 = vsel %vm717_vm2, %v2679_v19, %v2683_v59  ;;  %v2939_v59 = vrot.slane %v5687_v56, 1 }
  0xb7   : > { %v2699_v24 = vrot.slane %v2697_v46, 1  ;;  %v2944_v46 = vsel %vm1153_vm4, %v2941_v1, %v2943_v61 }
  0xb8   : > { %4707 = vmatmul.mubr.msk.bf16.gmra.mrb[4].mxu0 %vm822_vm3, %v2668_v42  ;;  %v2935_v42 = vrot.slane %v5674_v8, 1  ;;  %v2940_v19 = vsel %vm1153_vm4, %v2937_v35, %v2939_v59  ;;  %v2942_v56 = vsel %vm1153_vm4, %v2939_v59, %v2941_v1 }
  0xb9   : > { %4710 = vmatprep.mubr.msk.bf16.mxu0 %vm822_vm3, %v2676_v58  ;;  %v2703_v40 = vor.u32 %v2701_v6, %v2699_v24  ;;  %v2700_v34 = vsel %vm717_vm2, %v2695_v43, %v2699_v24  ;;  %v2949_v6 = vrot.slane %v5732_v62, 1  ;;  %v2955_v62 = vrot.slane %v5750_v38, 1 }
  0xba   : > { %v2936_v58 = vsel %vm1153_vm4, %v2934_v23, %v2935_v42  ;;  %v2938_v8 = vsel %vm1153_vm4, %v2935_v42, %v2937_v35  ;;  %v3303_v43 = vlaneseq  ;;  %v5880_v23 = vld [vmem:[%s6142_s4] ss:$0 sm:$0xff] }
  0xbb   : > { %v2708_v32 = vsel %vm717_vm2, %v2703_v40, %v2707_v5  ;;  %v2950_v16 = vsel %vm1153_vm4, %v2947_v22, %v2949_v6  ;;  %v2958_v24 = vsel %vm1153_vm4, %v2955_v62, %v2957_v15 }
  0xbc   : > { %4593 = vmatmul.mubr.msk.bf16.gmra.mrb[20].mxu1 %vm822_vm3, %v5557_v52  ;;  %v5036_v52 = vld [vmem:[#allocation2 + $0x10] sm:$0xff]   ;;  %v5857_v30 = vshrl.u32 %v3303_v43, 7 }
  0xbd   : > { %4598 = vmatprep.mubr.msk.bf16.mxu1 %vm822_vm3, %v5034_v4  ;;  %v5049_v4 = vld [vmem:[#allocation2 + $0x50] sm:$0xff]  }
  0xbe   : > { %v3305_v41 = vadd.s32 8, %v5857_v30  ;;  %v3311_v17 = vadd.s32 56, %v5857_v30  ;;  %v3315_v60 = vadd.s32 88, %v5857_v30  ;;  %v3317_v44 = vadd.s32 104, %v5857_v30 }
  0xc0   : > { %4711 = vmatmul.mubr.msk.bf16.gmra.mrb[8].mxu0 %vm822_vm3, %v2684_v25  ;;  %v5051_v25 = vld [vmem:[#allocation2 + $0x60] sm:$0xff]  }
  0xc1   : > { %4714 = vmatprep.mubr.msk.bf16.mxu0 %vm822_vm3, %v2692_v39  ;;  %v2948_v39 = vsel %vm1153_vm4, %v2945_v48, %v2947_v22 }
  0xc4   : > { %4599 = vmatmul.mubr.msk.bf16.vlgmr.msra.gmra.mrb[0].mxu1 %vm822_vm3, %v5036_v52 }
  0xc5   : > { %4753 = vmatpush3.bf16.msra.mxu1 %v5146_v3  ;;  %4602 = vmatprep.mubr.msk.bf16.mxu1 %vm822_vm3, %v5038_v7  ;;  %v2723_v3 = vrot.slane %v2721_v53, 1 }
  0xc7   : > { %v2724_v20 = vsel %vm717_vm2, %v2719_v10, %v2723_v3  ;;  %v2727_v54 = vor.u32 %v2725_v12, %v2723_v3  ;;  %v3313_v10 = vadd.s32 72, %v5857_v30  ;;  %v3319_v3 = vadd.s32 120, %v5857_v30 }
  0xc8   : > { %4715 = vmatmul.mubr.msk.bf16.gmra.mrb[12].mxu0 %vm822_vm3, %v2700_v34  ;;  %v3307_v34 = vadd.s32 24, %v5857_v30  ;;  %v3381_v12 = vand.u32 15, %v3311_v17 }
  0xc9   : > { %4718 = vmatprep.mubr.msk.bf16.mxu0 %vm822_vm3, %v2708_v32  ;;  %v2732_v50 = vsel %vm717_vm2, %v2727_v54, %v2731_v45  ;;  %v3395_v18 = vand.u32 15, %v3313_v10  ;;  %v3323_v54 = vadd.s32 152, %v5857_v30  ;;  %v3423_v45 = vand.u32 15, %v3317_v44 }
  0xca   : > { %vm5883_vm9 = vcmp.lt.s32.totalorder %v3381_v12, 12 }
  0xcb   : > { %vm5896_vm13 = vcmp.lt.s32.totalorder %v3395_v18, 12  ;;  %vm3629_vm15 = vcmp.lt.s32.totalorder %v3423_v45, 12 }
  0xcc   : > { %4603 = vmatmul.mubr.msk.bf16.gmra.mrb[4].mxu1 %vm822_vm3, %v5040_v21  ;;  %v3309_v21 = vadd.s32 40, %v5857_v30 }
  0xcd   : > { %4606 = vmatprep.mubr.msk.bf16.mxu1 %vm822_vm3, %v5042_v33  ;;  %v3353_v33 = vand.u32 15, %v3307_v34 }
  0xce   : > { %v3367_v9 = vand.u32 15, %v3309_v21 }
  0xcf   : > { %vm3619_vm6 = vcmp.lt.s32.totalorder %v3353_v33, 12 }
  0xd0   : > { %4719 = vmatmul.mubr.msk.bf16.gmra.mrb[16].mxu0 %vm822_vm3, %v2716_v13  ;;  %v3339_v13 = vand.u32 15, %v3305_v41  ;;  %vm5887_vm10 = vcmp.lt.s32.totalorder %v3367_v9, 12  ;;  %v5964_v9 = vadd.s32 184, %v5857_v30 }
  0xd1   : > { %4722 = vmatprep.mubr.msk.bf16.mxu0 %vm822_vm3, %v2724_v20  ;;  %v3409_v20 = vand.u32 15, %v3315_v60 }
  0xd2   : > { %vm3617_vm8 = vcmp.lt.s32.totalorder %v3339_v13, 12 }
  0xd3   : > { %vm5891_vm11 = vcmp.lt.s32.totalorder %v3409_v20, 12 }
  0xd4   : > { %4607 = vmatmul.mubr.msk.bf16.gmra.mrb[8].mxu1 %vm822_vm3, %v5044_v51  ;;  %v3437_v51 = vand.u32 15, %v3319_v3 }
  0xd5   : > { %4610 = vmatprep.mubr.msk.bf16.mxu1 %vm822_vm3, %v5046_v37  ;;  %v3321_v37 = vadd.s32 136, %v5857_v30 }
  0xd6   : > { %vm5900_vm14 = vcmp.lt.s32.totalorder %v3437_v51, 12 }
  0xd8   : > { %4723 = vmatmul.mubr.msk.bf16.gmra.mrb[20].mxu0 %vm822_vm3, %v2732_v50 }
  0xd9   : > { %4728 = vmatprep.mubr.msk.bf16.mxu0 %vm822_vm3, %v2936_v58 }
  0xdc   : > { %4611 = vmatmul.mubr.msk.bf16.gmra.mrb[12].mxu1 %vm822_vm3, %v5047_v36 }
  0xdd   : > { %4614 = vmatprep.mubr.msk.bf16.mxu1 %vm822_vm3, %v5048_v11 }
  0xe0   : > { %4729 = vmatmul.mubr.msk.bf16.vlgmr.msra.gmra.mrb[0].mxu0 %vm822_vm3, %v2938_v8  ;;  %v3465_v8 = vand.u32 15, %v3323_v54 }
  0xe1   : > { %4732 = vmatprep.mubr.msk.bf16.mxu0 %vm822_vm3, %v2940_v19 }
  0xe2   : > { %vm3635_vm0 = vcmp.lt.s32.totalorder %v3465_v8, 12 }
  0xe4   : > { %4615 = vmatmul.mubr.msk.bf16.gmra.mrb[16].mxu1 %vm822_vm3, %v5049_v4 }
  0xe5   : > { %4618 = vmatprep.mubr.msk.bf16.mxu1 %vm822_vm3, %v5050_v31  ;;  %v3451_v31 = vand.u32 15, %v3321_v37 }
  0xe7   : > { %vm5941_vm1 = vcmp.lt.s32.totalorder %v3451_v31, 12 }
  0xe8   : > { %4733 = vmatmul.mubr.msk.bf16.gmra.mrb[4].mxu0 %vm822_vm3, %v2942_v56 }
  0xe9   : > { %4736 = vmatprep.mubr.msk.bf16.mxu0 %vm822_vm3, %v2944_v46 }
  0xec   : > { %4619 = vmatmul.mubr.msk.bf16.gmra.mrb[20].mxu1 %vm822_vm3, %v5051_v25 }
  0xed   : > { %4636 = vmatprep.mubr.msk.bf16.mxu1 %vm822_vm3, %v5598_v0  ;;  %v2952_v0 = vsel %vm1153_vm4, %v2949_v6, %v2951_v26 }
  0xf0   : > { %4737 = vmatmul.mubr.msk.bf16.gmra.mrb[8].mxu0 %vm822_vm3, %v2946_v14 }
  0xf1   : > { %4740 = vmatprep.mubr.msk.bf16.mxu0 %vm822_vm3, %v2948_v39 }
  0xf4   : > { %4637 = vmatmul.mubr.msk.bf16.vlgmr.msra.gmra.mrb[12].mxu1 %vm822_vm3, %v5602_v29  ;;  %v2954_v29 = vsel %vm1153_vm4, %v2951_v26, %v2953_v57 }
  0xf5   : > { %4640 = vmatprep.mubr.msk.bf16.mxu1 %vm822_vm3, %v5610_v27  ;;  %v2956_v27 = vsel %vm1153_vm4, %v2953_v57, %v2955_v62 }
  0xf8   : > { %4741 = vmatmul.mubr.msk.bf16.gmra.mrb[12].mxu0 %vm822_vm3, %v2950_v16 }
  0xf9   : > { %4744 = vmatprep.mubr.msk.bf16.mxu0 %vm822_vm3, %v2952_v0 }
  0xfc   : > { %4641 = vmatmul.mubr.msk.bf16.gmra.mrb[16].mxu1 %vm822_vm3, %v5620_v47  ;;  %v5079_v47 = vmov 0.0  }
  0xfd   : > { %4644 = vmatprep.mubr.msk.bf16.mxu1 %vm822_vm3, %v5635_v55  ;;  %3765 = vst.msk [vmem:[%s5835_s20] sm:$0x1] %vm3764_vm5, %v5079_v47  ;;  %3766 = vst.msk [vmem:[%s5841_s23] sm:$0x1] %vm3764_vm5, %v5079_v47  ;;  %v4266_v42 = vsel %vm3619_vm6, 1.0, %v5079_v47  ;;  %v4265_v1 = vsel %vm3617_vm8, 1.0, %v5079_v47 }
  0xfe   : > { %v5908_v46 = vsel %vm5883_vm9, 1.0, %v5079_v47  ;;  %v5913_v25 = vsel %vm5887_vm10, 1.0, %v5079_v47  ;;  %v5918_v48 = vsel %vm5891_vm11, 1.0, %v5079_v47  ;;  %v5924_v6 = vsel %vm5896_vm13, 1.0, %v5079_v47 }
  0xff   : > { %v5929_v26 = vsel %vm5900_vm14, 1.0, %v5079_v47  ;;  %v5938_v57 = vsel %vm3629_vm15, 1.0, %v5079_v47  ;;  %v5949_v41 = vsel %vm3635_vm0, 1.0, %v5079_v47  ;;  %v5961_v12 = vsel %vm5941_vm1, 1.0, %v5079_v47 }
 0x100   : > { %4745 = vmatmul.mubr.msk.bf16.gmra.mrb[16].mxu0 %vm822_vm3, %v2954_v29 }
 0x101   : > { %4748 = vmatprep.mubr.msk.bf16.mxu0 %vm822_vm3, %v2956_v27 }
 0x104   : > { %4645 = vmatmul.mubr.msk.bf16.gmra.mrb[20].mxu1 %vm822_vm3, %v5642_v63 }
 0x108   : > { %4749 = vmatmul.mubr.msk.bf16.gmra.mrb[20].mxu0 %vm822_vm3, %v2958_v24  ;;  %vm3663_vm3 = vcmp.lt.s32.totalorder %v5964_v9, 188 }
 0x197   : > { %v4600_v55 = vpop.f32.mrb[0].mxu1 }
 0x198   : > { %v1537_v63 = vpop.f32.mrb[1].mxu1 }
 0x199   : > { %v4601_v49 = vpop.f32.mrb[2].mxu1 }
 0x19a   : > { %v1540_v52 = vpop.f32.mrb[3].mxu1 }
 0x19f   : > { %v5849_v7 = vpop.f32.mrb[4].mxu1 }
 0x1a0   : > { %v5851_v40 = vpop.f32.mrb[5].mxu1 }
 0x1a1   : > { %v5853_v5 = vpop.f32.mrb[6].mxu1 }
 0x1a2   : > { %v5855_v38 = vpop.f32.mrb[7].mxu1 }
 0x1a7   : > { %v5860_v2 = vpop.f32.mrb[8].mxu1 }
 0x1a8   : > { %v5862_v32 = vpop.f32.mrb[9].mxu1 }
 0x1a9   : > { %v5865_v53 = vpop.f32.mrb[10].mxu1 }
 0x1aa   : > { %v5870_v28 = vpop.f32.mrb[11].mxu1 }
 0x1b3   : > { %v4730_v35 = vpop.f32.mrb[0].mxu0 }
 0x1b4   : > { %v4754_v19 = vadd.f32 %v4730_v35, %v4600_v55  ;;  %v3032_v4 = vpop.f32.mrb[1].mxu0 }
 0x1b5   : > { %v4755_v61 = vadd.f32 %v3032_v4, %v1537_v63  ;;  %v4731_v56 = vpop.f32.mrb[2].mxu0 }
 0x1b6   : > { %v3160_v22 = vadd.f32 %v4754_v19, %v5880_v23  ;;  %v4756_v14 = vadd.f32 %v4731_v56, %v4601_v49  ;;  %v3035_v39 = vpop.f32.mrb[3].mxu0  ;;  %v3772_v45 = vsel %vm3768_vm7, %v4754_v19, 0.0 }
 0x1b7   : > { %v3158_v16 = vadd.f32 %v4755_v61, %v5880_v23  ;;  %v4757_v0 = vadd.f32 %v3035_v39, %v1540_v52  ;;  %v3826_v55 = vmul.f32 %v4755_v61, %v4755_v61  ;;  %v3828_v52 = vmul.f32 %v4754_v19, %v4754_v19 }
 0x1b8   : > { %v4310_v62 = vpack.c.bf16 %v3160_v22, %v3160_v22  ;;  %v3161_v29 = vadd.f32 %v4756_v14, %v5880_v23  ;;  %v3739_v27 = vmul.f32 %v4756_v14, %v4266_v42  ;;  %v3769_v17 = vsel %vm3768_vm7, %v4755_v61, 0.0 }
 0x1b9   : > { %v4308_v24 = vpack.c.bf16 %v3158_v16, %v3158_v16  ;;  %v3159_v63 = vadd.f32 %v4757_v0, %v5880_v23  ;;  %v3737_v49 = vmul.f32 %v4757_v0, %v4265_v1  ;;  %v3850_v20 = vsel %vm3768_vm7, %v3826_v55, 0.0 }
 0x1ba   : > { %3281 = vst.msk [vmem:[%s5934_s9 + $0x8] sm:$0xf] %vm3278_vm12, %v4310_v62  ;;  %v4311_v43 = vpack.c.bf16 %v3161_v29, %v3161_v29  ;;  %v3829_v34 = vmul.f32 %v4756_v14, %v3739_v27  ;;  %v3853_v37 = vsel %vm3768_vm7, %v3828_v52, 0.0  ;;  %v3774_v36 = vsel %vm3768_vm7, %v3739_v27, 0.0 }
 0x1bb   : > { %3279 = vst.msk [vmem:[%s5934_s9] sm:$0xf] %vm3278_vm12, %v4308_v24  ;;  %v4309_v21 = vpack.c.bf16 %v3159_v63, %v3159_v63  ;;  %v3770_v60 = vsel %vm3768_vm7, %v3737_v49, 0.0  ;;  %v3827_v33 = vmul.f32 %v4757_v0, %v3737_v49  ;;  %v4734_v10 = vpop.f32.mrb[4].mxu0  ;;  %v3493_v55 = vand.u32 15, %v5964_v9 }
 0x1bc   : > { %3282 = vst.msk [vmem:[%s5934_s9 + $0xc] sm:$0xf] %vm3278_vm12, %v4311_v43  ;;  %v3771_v3 = vadd.f32 %v3770_v60, %v3769_v17  ;;  %v4758_v44 = vadd.f32 %v4734_v10, %v5849_v7  ;;  %v3048_v13 = vpop.f32.mrb[5].mxu0  ;;  %v5972_v7 = vadd.s32 168, %v5857_v30  ;;  %v3855_v59 = vsel %vm3768_vm7, %v3829_v34, 0.0 }
 0x1bd   : > { %3280 = vst.msk [vmem:[%s5934_s9 + $0x4] sm:$0xf] %vm3278_vm12, %v4309_v21  ;;  %v3851_v18 = vsel %vm3768_vm7, %v3827_v33, 0.0  ;;  %v4759_v51 = vadd.f32 %v3048_v13, %v5851_v40  ;;  %v4735_v54 = vpop.f32.mrb[6].mxu0  ;;  %vm6022_vm2 = vcmp.lt.s32.totalorder %v3493_v55, 12 }
 0x1be   : > { %v3852_v42 = vadd.f32 %v3851_v18, %v3850_v20  ;;  %v3164_v50 = vadd.f32 %v4758_v44, %v5880_v23  ;;  %v3051_v58 = vpop.f32.mrb[7].mxu0  ;;  %v3773_v11 = vadd.f32 %v3772_v45, %v3771_v3  ;;  %v4760_v19 = vadd.f32 %v4735_v54, %v5853_v5  ;;  %vm3687_vm6 = vmand %vm6022_vm2, %vm3663_vm3 }
 0x1bf   : > { %v3162_v35 = vadd.f32 %v4759_v51, %v5880_v23  ;;  %v3830_v40 = vmul.f32 %v4759_v51, %v4759_v51  ;;  %v3832_v4 = vmul.f32 %v4758_v44, %v4758_v44  ;;  %v4761_v61 = vadd.f32 %v3051_v58, %v5855_v38 }
 0x1c0   : > { %v3854_v30 = vadd.f32 %v3853_v37, %v3852_v42  ;;  %v4314_v8 = vpack.c.bf16 %v3164_v50, %v3164_v50  ;;  %v3775_v31 = vadd.f32 %v3774_v36, %v3773_v11  ;;  %v3776_v56 = vsel %vm3768_vm7, %v4759_v51, 0.0 }
 0x1c1   : > { %v4312_v1 = vpack.c.bf16 %v3162_v35, %v3162_v35  ;;  %v3165_v14 = vadd.f32 %v4760_v19, %v5880_v23  ;;  %v3743_v39 = vmul.f32 %v4760_v19, %v5908_v46  ;;  %v3857_v5 = vsel %vm3768_vm7, %v3830_v40, 0.0 }
 0x1c2   : > { %3285 = vst.msk [vmem:[%s5934_s9 + $0x18] sm:$0xf] %vm3278_vm12, %v4314_v8  ;;  %v3856_v22 = vadd.f32 %v3855_v59, %v3854_v30  ;;  %v3777_v16 = vadd.f32 %v3776_v56, %v3775_v31  ;;  %v3163_v0 = vadd.f32 %v4761_v61, %v5880_v23  ;;  %v3741_v62 = vmul.f32 %v4761_v61, %v5913_v25 }
 0x1c3   : > { %3283 = vst.msk [vmem:[%s5934_s9 + $0x10] sm:$0xf] %vm3278_vm12, %v4312_v1  ;;  %v4738_v38 = vpop.f32.mrb[8].mxu0  ;;  %v4315_v27 = vpack.c.bf16 %v3165_v14, %v3165_v14  ;;  %v3833_v15 = vmul.f32 %v4760_v19, %v3743_v39  ;;  %v3479_v60 = vand.u32 15, %v5972_v7  ;;  %v3780_v33 = vsel %vm3768_vm7, %v4758_v44, 0.0 }
 0x1c4   : > { %v3858_v29 = vadd.f32 %v3857_v5, %v3856_v22  ;;  %v3064_v24 = vpop.f32.mrb[9].mxu0  ;;  %v4313_v63 = vpack.c.bf16 %v3163_v0, %v3163_v0  ;;  %v3778_v46 = vsel %vm3768_vm7, %v3741_v62, 0.0  ;;  %v3831_v49 = vmul.f32 %v4761_v61, %v3741_v62 }
 0x1c5   : > { %v4762_v52 = vadd.f32 %v4738_v38, %v5860_v2  ;;  %v4739_v43 = vpop.f32.mrb[10].mxu0  ;;  %3286 = vst.msk [vmem:[%s5934_s9 + $0x1c] sm:$0xf] %vm3278_vm12, %v4315_v27  ;;  %v3779_v34 = vadd.f32 %v3778_v46, %v3777_v16  ;;  %v4763_v25 = vadd.f32 %v3064_v24, %v5862_v32  ;;  %v3861_v10 = vsel %vm3768_vm7, %v3832_v4, 0.0 }
 0x1c6   : > { %v4764_v17 = vadd.f32 %v4739_v43, %v5865_v53  ;;  %v3067_v21 = vpop.f32.mrb[11].mxu0  ;;  %3284 = vst.msk [vmem:[%s5934_s9 + $0x14] sm:$0xf] %vm3278_vm12, %v4313_v63  ;;  %v3859_v3 = vsel %vm3768_vm7, %v3831_v49, 0.0  ;;  %v3782_v13 = vsel %vm3768_vm7, %v3743_v39, 0.0  ;;  %v3863_v51 = vsel %vm3768_vm7, %v3833_v15, 0.0 }
 0x1c7   : > { %v3168_v2 = vadd.f32 %v4762_v52, %v5880_v23  ;;  %v3860_v20 = vadd.f32 %v3859_v3, %v3858_v29  ;;  %v3166_v32 = vadd.f32 %v4763_v25, %v5880_v23  ;;  %v3781_v53 = vadd.f32 %v3780_v33, %v3779_v34  ;;  %v4638_v18 = vpop.f32.mrb[12].mxu1 }
 0x1c8   : > { %v3834_v44 = vmul.f32 %v4763_v25, %v4763_v25  ;;  %v3169_v7 = vadd.f32 %v4764_v17, %v5880_v23  ;;  %v1966_v45 = vpop.f32.mrb[13].mxu1  ;;  %v3747_v58 = vmul.f32 %v4764_v17, %v5918_v48  ;;  %v3836_v35 = vmul.f32 %v4762_v52, %v4762_v52 }
 0x1c9   : > { %v4318_v54 = vpack.c.bf16 %v3168_v2, %v3168_v2  ;;  %v3862_v37 = vadd.f32 %v3861_v10, %v3860_v20  ;;  %v4316_v42 = vpack.c.bf16 %v3166_v32, %v3166_v32  ;;  %v3783_v50 = vadd.f32 %v3782_v13, %v3781_v53  ;;  %v4639_v36 = vpop.f32.mrb[14].mxu1 }
 0x1ca   : > { %v3784_v11 = vsel %vm3768_vm7, %v4763_v25, 0.0  ;;  %v4319_v40 = vpack.c.bf16 %v3169_v7, %v3169_v7  ;;  %v4765_v59 = vadd.f32 %v3067_v21, %v5870_v28  ;;  %v1969_v8 = vpop.f32.mrb[15].mxu1  ;;  %v3865_v1 = vsel %vm3768_vm7, %v3834_v44, 0.0 }
 0x1cb   : > { %3289 = vst.msk [vmem:[%s5934_s9 + $0x28] sm:$0xf] %vm3278_vm12, %v4318_v54  ;;  %v4742_v30 = vpop.f32.mrb[12].mxu0  ;;  %3287 = vst.msk [vmem:[%s5934_s9 + $0x20] sm:$0xf] %vm3278_vm12, %v4316_v42  ;;  %v3785_v19 = vadd.f32 %v3784_v11, %v3783_v50  ;;  %v3864_v4 = vadd.f32 %v3863_v51, %v3862_v37  ;;  %v3837_v31 = vmul.f32 %v4764_v17, %v3747_v58  ;;  %vm6031_vm4 = vcmp.lt.s32.totalorder %v3479_v60, 12 }
 0x1cc   : > { %v3080_v61 = vpop.f32.mrb[13].mxu0  ;;  %3290 = vst.msk [vmem:[%s5934_s9 + $0x2c] sm:$0xf] %vm3278_vm12, %v4319_v40  ;;  %v3167_v48 = vadd.f32 %v4765_v59, %v5880_v23  ;;  %v3745_v56 = vmul.f32 %v4765_v59, %v5924_v6  ;;  %v4766_v22 = vadd.f32 %v4742_v30, %v4638_v18  ;;  %v3788_v6 = vsel %vm3768_vm7, %v4762_v52, 0.0 }
 0x1cd   : > { %v4767_v14 = vadd.f32 %v3080_v61, %v1966_v45  ;;  %v4743_v39 = vpop.f32.mrb[14].mxu0  ;;  %v3866_v28 = vadd.f32 %v3865_v1, %v3864_v4  ;;  %v3869_v46 = vsel %vm3768_vm7, %v3836_v35, 0.0  ;;  %v3790_v49 = vsel %vm3768_vm7, %v3747_v58, 0.0 }
 0x1ce   : > { %v4768_v16 = vadd.f32 %v4743_v39, %v4639_v36  ;;  %v3083_v5 = vpop.f32.mrb[15].mxu0  ;;  %v4317_v62 = vpack.c.bf16 %v3167_v48, %v3167_v48  ;;  %v3786_v38 = vsel %vm3768_vm7, %v3745_v56, 0.0  ;;  %v3835_v29 = vmul.f32 %v4765_v59, %v3745_v56 }
 0x1cf   : > { %v3172_v27 = vadd.f32 %v4766_v22, %v5880_v23  ;;  %v3787_v15 = vadd.f32 %v3786_v38, %v3785_v19  ;;  %v3170_v24 = vadd.f32 %v4767_v14, %v5880_v23  ;;  %v4642_v63 = vpop.f32.mrb[16].mxu1  ;;  %v3871_v25 = vsel %vm3768_vm7, %v3837_v31, 0.0 }
 0x1d0   : > { %3288 = vst.msk [vmem:[%s5934_s9 + $0x24] sm:$0xf] %vm3278_vm12, %v4317_v62  ;;  %v3867_v43 = vsel %vm3768_vm7, %v3835_v29, 0.0  ;;  %v1982_v52 = vpop.f32.mrb[17].mxu1  ;;  %v3838_v10 = vmul.f32 %v4767_v14, %v4767_v14  ;;  %v3173_v3 = vadd.f32 %v4768_v16, %v5880_v23  ;;  %v3751_v2 = vmul.f32 %v4768_v16, %v5929_v26 }
 0x1d1   : > { %v4322_v34 = vpack.c.bf16 %v3172_v27, %v3172_v27  ;;  %v3868_v17 = vadd.f32 %v3867_v43, %v3866_v28  ;;  %v4320_v21 = vpack.c.bf16 %v3170_v24, %v3170_v24  ;;  %v3789_v33 = vadd.f32 %v3788_v6, %v3787_v15  ;;  %v4643_v60 = vpop.f32.mrb[18].mxu1 }
 0x1d2   : > { %v4769_v13 = vadd.f32 %v3083_v5, %v1969_v8  ;;  %v1985_v32 = vpop.f32.mrb[19].mxu1  ;;  %v3840_v18 = vmul.f32 %v4766_v22, %v4766_v22  ;;  %v3792_v7 = vsel %vm3768_vm7, %v4767_v14, 0.0  ;;  %v4323_v26 = vpack.c.bf16 %v3173_v3, %v3173_v3 }
 0x1d3   : > { %3293 = vst.msk [vmem:[%s5934_s9 + $0x38] sm:$0xf] %vm3278_vm12, %v4322_v34  ;;  %v4746_v20 = vpop.f32.mrb[16].mxu0  ;;  %v3870_v53 = vadd.f32 %v3869_v46, %v3868_v17  ;;  %3291 = vst.msk [vmem:[%s5934_s9 + $0x30] sm:$0xf] %vm3278_vm12, %v4320_v21  ;;  %v3791_v51 = vadd.f32 %v3790_v49, %v3789_v33  ;;  %v3841_v45 = vmul.f32 %v4768_v16, %v3751_v2  ;;  %v3873_v9 = vsel %vm3768_vm7, %v3838_v10, 0.0 }
 0x1d4   : > { %v6047_v54 = vadd.f32 %v4746_v20, %v4642_v63  ;;  %v3096_v44 = vpop.f32.mrb[17].mxu0  ;;  %v3171_v37 = vadd.f32 %v4769_v13, %v5880_v23  ;;  %v3749_v36 = vmul.f32 %v4769_v13, %v5938_v57  ;;  %3294 = vst.msk [vmem:[%s5934_s9 + $0x3c] sm:$0xf] %vm3278_vm12, %v4323_v26  ;;  %v6062_v59 = vsel %vm3687_vm6, 1.0, %v5079_v47 }
 0x1d5   : > { %v4747_v42 = vpop.f32.mrb[18].mxu0  ;;  %v3793_v50 = vadd.f32 %v3792_v7, %v3791_v51  ;;  %v3872_v58 = vadd.f32 %v3871_v25, %v3870_v53  ;;  %v6067_v30 = vsel %vm6031_vm4, 1.0, %v5079_v47  ;;  %v3796_v31 = vsel %vm3768_vm7, %v4766_v22, 0.0 }
 0x1d6   : > { %v3176_v35 = vadd.f32 %v6047_v54, %v5880_v23  ;;  %v3099_v11 = vpop.f32.mrb[19].mxu0  ;;  %v4321_v40 = vpack.c.bf16 %v3171_v37, %v3171_v37  ;;  %v3794_v57 = vsel %vm3768_vm7, %v3749_v36, 0.0  ;;  %v3839_v19 = vmul.f32 %v4769_v13, %v3749_v36 }
 0x1d7   : > { %v3874_v8 = vadd.f32 %v3873_v9, %v3872_v58  ;;  %v4646_v1 = vpop.f32.mrb[20].mxu1  ;;  %v3795_v61 = vadd.f32 %v3794_v57, %v3793_v50  ;;  %v4771_v48 = vadd.f32 %v3096_v44, %v1982_v52  ;;  %v4772_v56 = vadd.f32 %v4747_v42, %v4643_v60 }
 0x1d8   : > { %v4326_v4 = vpack.c.bf16 %v3176_v35, %v3176_v35  ;;  %3292 = vst.msk [vmem:[%s5934_s9 + $0x34] sm:$0xf] %vm3278_vm12, %v4321_v40  ;;  %v1998_v14 = vpop.f32.mrb[21].mxu1  ;;  %v3877_v39 = vsel %vm3768_vm7, %v3840_v18, 0.0  ;;  %v3798_v28 = vsel %vm3768_vm7, %v3751_v2, 0.0  ;;  %v3875_v47 = vsel %vm3768_vm7, %v3839_v19, 0.0 }
 0x1d9   : > { %v4773_v16 = vadd.f32 %v3099_v11, %v1985_v32  ;;  %v4647_v5 = vpop.f32.mrb[22].mxu1  ;;  %v3879_v0 = vsel %vm3768_vm7, %v3841_v45, 0.0  ;;  %v3876_v62 = vadd.f32 %v3875_v47, %v3874_v8  ;;  %v3174_v22 = vadd.f32 %v4771_v48, %v5880_v23 }
 0x1da   : > { %3297 = vst.msk [vmem:[%s5934_s9 + $0x48] sm:$0xf] %vm3278_vm12, %v4326_v4  ;;  %v3797_v38 = vadd.f32 %v3796_v31, %v3795_v61  ;;  %v2001_v27 = vpop.f32.mrb[23].mxu1  ;;  %v3842_v6 = vmul.f32 %v4771_v48, %v4771_v48  ;;  %v3177_v15 = vadd.f32 %v4772_v56, %v5880_v23  ;;  %v3755_v24 = vmul.f32 %v4772_v56, %v5949_v41 }
 0x1db   : > { %v4750_v29 = vpop.f32.mrb[20].mxu0  ;;  %v3175_v63 = vadd.f32 %v4773_v16, %v5880_v23  ;;  %v3878_v46 = vadd.f32 %v3877_v39, %v3876_v62  ;;  %v4324_v49 = vpack.c.bf16 %v3174_v22, %v3174_v22  ;;  %v3753_v34 = vmul.f32 %v4773_v16, %v5961_v12 }
 0x1dc   : > { %v3112_v55 = vpop.f32.mrb[21].mxu0  ;;  %v3799_v43 = vadd.f32 %v3798_v28, %v3797_v38  ;;  %v3844_v25 = vmul.f32 %v6047_v54, %v6047_v54  ;;  %v3800_v17 = vsel %vm3768_vm7, %v4771_v48, 0.0  ;;  %v4327_v21 = vpack.c.bf16 %v3177_v15, %v3177_v15 }
 0x1dd   : > { %v4751_v52 = vpop.f32.mrb[22].mxu0  ;;  %v3845_v33 = vmul.f32 %v4772_v56, %v3755_v24  ;;  %3295 = vst.msk [vmem:[%s5934_s9 + $0x40] sm:$0xf] %vm3278_vm12, %v4324_v49  ;;  %v3880_v10 = vadd.f32 %v3879_v0, %v3878_v46  ;;  %v4325_v3 = vpack.c.bf16 %v3175_v63, %v3175_v63  ;;  %v3802_v2 = vsel %vm3768_vm7, %v3753_v34, 0.0 }
 0x1de   : > { %v3115_v60 = vpop.f32.mrb[23].mxu0  ;;  %v3801_v41 = vadd.f32 %v3800_v17, %v3799_v43  ;;  %v3881_v13 = vsel %vm3768_vm7, %v3842_v6, 0.0  ;;  %3298 = vst.msk [vmem:[%s5934_s9 + $0x4c] sm:$0xf] %vm3278_vm12, %v4327_v21  ;;  %v3843_v12 = vmul.f32 %v4773_v16, %v3753_v34  ;;  %v4774_v20 = vadd.f32 %v4750_v29, %v4646_v1  ;;  %v3767_v21 = vld [vmem:[%s5835_s20] sm:$0x1] }
 0x1df   : > { %v4775_v32 = vadd.f32 %v3112_v55, %v1998_v14  ;;  %v3882_v53 = vadd.f32 %v3881_v13, %v3880_v10  ;;  %3296 = vst.msk [vmem:[%s5934_s9 + $0x44] sm:$0xf] %vm3278_vm12, %v4325_v3  ;;  %v4776_v51 = vadd.f32 %v4751_v52, %v4647_v5  ;;  %v4777_v44 = vadd.f32 %v3115_v60, %v2001_v27 }
 0x1e0   : > { %v3803_v18 = vadd.f32 %v3802_v2, %v3801_v41  ;;  %v3804_v7 = vsel %vm3768_vm7, %v6047_v54, 0.0  ;;  %v3885_v26 = vsel %vm3768_vm7, %v3844_v25, 0.0  ;;  %v3883_v45 = vsel %vm3768_vm7, %v3843_v12, 0.0  ;;  %v3825_v41 = vld [vmem:[%s5841_s23] sm:$0x1] }
 0x1e1   : > { %v3180_v37 = vadd.f32 %v4774_v20, %v5880_v23  ;;  %v3806_v42 = vsel %vm3768_vm7, %v3755_v24, 0.0  ;;  %v3884_v50 = vadd.f32 %v3883_v45, %v3882_v53  ;;  %v3178_v58 = vadd.f32 %v4775_v32, %v5880_v23 }
 0x1e2   : > { %v3805_v36 = vadd.f32 %v3804_v7, %v3803_v18  ;;  %v3887_v35 = vsel %vm3768_vm7, %v3845_v33, 0.0  ;;  %v3846_v9 = vmul.f32 %v4775_v32, %v4775_v32  ;;  %v3181_v54 = vadd.f32 %v4776_v51, %v5880_v23 }
 0x1e3   : > { %v4330_v11 = vpack.c.bf16 %v3180_v37, %v3180_v37  ;;  %v3886_v40 = vadd.f32 %v3885_v26, %v3884_v50  ;;  %v4328_v8 = vpack.c.bf16 %v3178_v58, %v3178_v58  ;;  %v3759_v19 = vmul.f32 %v4776_v51, %v6062_v59 }
 0x1e4   : > { %v3807_v57 = vadd.f32 %v3806_v42, %v3805_v36  ;;  %v3808_v4 = vsel %vm3768_vm7, %v4775_v32, 0.0  ;;  %v4331_v1 = vpack.c.bf16 %v3181_v54, %v3181_v54  ;;  %v3179_v31 = vadd.f32 %v4777_v44, %v5880_v23 }
 0x1e5   : > { %3301 = vst.msk [vmem:[%s5934_s9 + $0x58] sm:$0xf] %vm3278_vm12, %v4330_v11  ;;  %v3757_v61 = vmul.f32 %v4777_v44, %v6067_v30  ;;  %v3848_v48 = vmul.f32 %v4774_v20, %v4774_v20  ;;  %3299 = vst.msk [vmem:[%s5934_s9 + $0x50] sm:$0xf] %vm3278_vm12, %v4328_v8  ;;  %v3888_v14 = vadd.f32 %v3887_v35, %v3886_v40  ;;  %v3889_v28 = vsel %vm3768_vm7, %v3846_v9, 0.0 }
 0x1e6   : > { %v3809_v56 = vadd.f32 %v3808_v4, %v3807_v57  ;;  %v3849_v39 = vmul.f32 %v4776_v51, %v3759_v19  ;;  %3302 = vst.msk [vmem:[%s5934_s9 + $0x5c] sm:$0xf] %vm3278_vm12, %v4331_v1  ;;  %v4329_v59 = vpack.c.bf16 %v3179_v31, %v3179_v31  ;;  %v3812_v23 = vsel %vm3768_vm7, %v4774_v20, 0.0 }
 0x1e7   : > { %v3810_v47 = vsel %vm3768_vm7, %v3757_v61, 0.0  ;;  %v3847_v16 = vmul.f32 %v4777_v44, %v3757_v61  ;;  %v3890_v5 = vadd.f32 %v3889_v28, %v3888_v14  ;;  %v3893_v38 = vsel %vm3768_vm7, %v3848_v48, 0.0 }
 0x1e8   : > { %v3811_v0 = vadd.f32 %v3810_v47, %v3809_v56  ;;  %3300 = vst.msk [vmem:[%s5934_s9 + $0x54] sm:$0xf] %vm3278_vm12, %v4329_v59  ;;  %v3814_v29 = vsel %vm3768_vm7, %v3759_v19, 0.0  ;;  %v3895_v15 = vsel %vm3768_vm7, %v3849_v39, 0.0 }
 0x1e9   : > { %v3891_v30 = vsel %vm3768_vm7, %v3847_v16, 0.0 }
 0x1ea   : > { %v3813_v62 = vadd.f32 %v3812_v23, %v3811_v0  ;;  %v3892_v22 = vadd.f32 %v3891_v30, %v3890_v5 }
 0x1ec   : > { %v3815_v27 = vadd.f32 %v3814_v29, %v3813_v62  ;;  %v3894_v6 = vadd.f32 %v3893_v38, %v3892_v22 }
 0x1ee   : > { %v3816_v24 = vrot.slane %v3815_v27, 4  ;;  %v3896_v63 = vadd.f32 %v3895_v15, %v3894_v6 }
 0x1f0   : > { %v3817_v55 = vadd.f32 %v3816_v24, %v3815_v27  ;;  %v3897_v46 = vrot.slane %v3896_v63, 4 }
 0x1f2   : > { %v3818_v49 = vrot.slane %v3817_v55, 2  ;;  %v3898_v43 = vadd.f32 %v3897_v46, %v3896_v63 }
 0x1f4   : > { %v3819_v34 = vadd.f32 %v3818_v49, %v3817_v55  ;;  %v3899_v52 = vrot.slane %v3898_v43, 2 }
 0x1f6   : > { %v3820_v25 = vrot.slane %v3819_v34, 1  ;;  %v3900_v17 = vadd.f32 %v3899_v52, %v3898_v43 }
 0x1f8   : > { %v3821_v33 = vadd.f32 %v3820_v25, %v3819_v34  ;;  %v3901_v60 = vrot.slane %v3900_v17, 1 }
 0x1fa   : > { %v3822_v10 = vadd.f32 %v3821_v33, %v3767_v21  ;;  %v3902_v3 = vadd.f32 %v3901_v60, %v3900_v17 }
 0x1fc   : > { %3824 = vst.msk [vmem:[%s5835_s20] sm:$0x1] %vm3764_vm5, %v3822_v10  ;;  %v3903_v2 = vadd.f32 %v3902_v3, %v3825_v41 }
 0x1fe   : > { %3904 = vst.msk [vmem:[%s5841_s23] sm:$0x1] %vm3764_vm5, %v3903_v2 }
 0x1ff PF: > { %s18_s26 = sadd.s32 1, %s5077_s26   ;;  %s6162_s24 = smov %s5073_s25 }
 0x200   : > { %p15_p5 = scmp.ge.s32.totalorder %s18_s26, 4   ;;  %s6163_s25 = smov %s6165_s27 }
 0x202   :  { %17 = sbr.rel (!%p15_p5) target bundleno = 2 (0x2), region = 98 }

// kernel: basic_conv2.3
= control target key start
LH: loop header
LB: loop body
LE: loop exit
PB: predicated region body
PF: predicated region fallthrough
CT: control target
= control target key end

     0   :  { %s5903_s18 = smov 0   ;;  %s5905_s19 = smov 0   ;;  %s7082_s0 = inlined_call_operand.vmem [shape: bf16[2,272,4], index: 0, kind: input, shape index: {}]   ;;  %s7083_s1 = inlined_call_operand.vmem [shape: bf16[36,2], index: 1, kind: input, shape index: {}]   ;;  %s7084_s2 = inlined_call_operand.vmem [shape: f32[1,2], index: 2, kind: input, shape index: {}]   ;;  %s7085_s3 = inlined_call_operand.vmem [shape: bf16[2,232,2], index: 3, kind: output, shape index: {0}]   ;;  %s7086_s4 = inlined_call_operand.vmem [shape: f32[2,1,2], index: 4, kind: output, shape index: {1}]   ;;  %s7087_s5 = inlined_call_operand.vmem [shape: f32[2,1,2], index: 5, kind: output, shape index: {2}]  }
   0x1   :  { %s5907_s20 = smov 0  }
   0x2 LB: > { %s28_s21 = sadd.s32 1, %s5865_s19  ;;  %p4287_p0 = scmp.ge.s32.totalorder %s5869_s20, 1  ;;  %s5869_s20 = sphi %s5907_s20, %s16_s20   ;;  %s5865_s19 = sphi %s5905_s19, %s7091_s19   ;;  %s5861_s18 = sphi %s5903_s18, %s7090_s18  }
   0x3   : > { %p30_p1 = scmp.ge.s32.totalorder %s28_s21, 2  ;;  %p210_p2 = scmp.lt.s32.totalorder %s5869_s20, 3 }
   0x5   : > { %s7093_s21 = smov (%p30_p1, %s28_s21), 0  ;;  %p211_p3 = pnand %p4287_p0, %p210_p2 }
   0x6   : > { %vm544_vm0 = vcmask (!%p211_p3), 1041408   ;;  %v1517_v0 = vld [vmem:[%s7083_s1 + $0x8] sm:$0x3] (!%p211_p3)  ;;  %v5871_v1 = vmov (!%p211_p3), 0.0   ;;  %p247_p4 = scmp.lt.s32.totalorder (!%p211_p3), %s5861_s18, 1  ;;  %vm5872_vm1 = vmmov (!%p211_p3), 0  }
   0x7   : > { %214 = sbr.rel (%p211_p3) target bundleno = 802 (0x322), region = 32  ;;  %4975 = vmatprep.subr.bf16.mxu0 (!%p211_p3), %v5871_v1  ;;  %4727 = vmatprep.subr.bf16.mxu1 (!%p211_p3), %v5871_v1  ;;  %v5927_v2 = vsel (!%p211_p3), %vm544_vm0, %v1517_v0, 0  ;;  %v5764_v3 = vld [vmem:[%s7083_s1] ss:$0 sps:$4 sm:$0xcc] (!%p211_p3)   ;;  %vm498_vm3 = vcmask (!%p211_p3), 31744  }
   0x8   : > { %4976 = vmatpush3.bf16.msra.mxu0 (!%p211_p3), %v5927_v2  ;;  %4729 = vmatprep.mubr.msk.bf16.mxu1 (!%p211_p3), %vm5872_vm1, %v5871_v1  ;;  %v497_v4 = vrot.slane (!%p211_p3), %v5764_v3, 2  ;;  %vm374_vm2 = vsmask.f32 (!%p211_p3), 7424  ;;  %v5769_v8 = vld [vmem:[%s7083_s1 + $0x8] ss:$0 sps:$4 sm:$0xcc] (!%p211_p3)  }
   0x9   : > { %4977 = vmatprep.mubr.msk.bf16.mxu0 (!%p211_p3), %vm5872_vm1, %v5871_v1  ;;  %5037 = vmatprep.subr.bf16.mxu0 (!%p211_p3), %v5871_v1  ;;  %v296_v18 = vld [vmem:[%s7083_s1] sm:$0x3] (!%p211_p3)  ;;  %v1978_v25 = vrot.slane (!%p211_p3), %v5769_v8, 2  ;;  %vm892_vm4 = vcmask (!%p211_p3), 1046528   ;;  %vm4000_vm5 = vcmask (!%p211_p3), 8192   ;;  %vm3414_vm7 = vcmask (!%p211_p3), 11264  }
   0xa   : > { %v546_v5 = vsel (!%p211_p3), %vm544_vm0, %v497_v4, 0  ;;  %v733_v32 = vsel (!%p211_p3), %vm544_vm0, %v296_v18, 0  ;;  %vm4004_vm8 = vcmask (!%p211_p3), 15360  }
   0xb   : > { %4728 = vmatpush3.bf16.msra.mxu1 (!%p211_p3), %v546_v5  ;;  %v2025_v37 = vsel (!%p211_p3), %vm544_vm0, %v1978_v25, 0 }
   0xc   : > { %4789 = vmatprep.subr.bf16.mxu1 (!%p211_p3), %v5871_v1 }
   0xe   : > { %s7095_s18 = smov (!%p247_p4, %s5861_s18), 1 }
   0xf   : > { %s5736_s26 = smul.u32 136, %s7095_s18  ;;  %s6845_s25 = scalar_lea.vmem %s7086_s4, %s7095_s18 }
  0x10   : > { %s6851_s28 = scalar_lea.vmem %s7087_s5, %s7095_s18  ;;  %4001 = vst.msk [vmem:[%s6845_s25] sm:$0x1] %vm4000_vm5, %v5871_v1 }
  0x11   : > { %s5945_s29 = scalar_lea.vmem %s7082_s0, %s5736_s26  ;;  %4002 = vst.msk [vmem:[%s6851_s28] sm:$0x1] %vm4000_vm5, %v5871_v1 }
  0x12   : > { %v267_v6 = vld [vmem:[%s5945_s29] sm:$0xf]  ;;  %v5950_v7 = vld [vmem:[%s5945_s29 + $0x4] sm:$0xf]  ;;  %v5959_v10 = vld [vmem:[%s5945_s29 + $0x8] sm:$0xff]  }
  0x13   : > { %v5956_v9 = vcombine.low %v267_v6, %v5950_v7  ;;  %v1487_v11 = vld [vmem:[%s5945_s29 + $0x8] sm:$0xf]  ;;  %v5963_v12 = vld [vmem:[%s5945_s29 + $0xc] sm:$0xf]  ;;  %v383_v15 = vshll.u32 %v5959_v10, 16  ;;  %v5970_v17 = vld [vmem:[%s5945_s29 + $0x10] sm:$0xff]  }
  0x14   : > { %v4384_v16 = vcombine.low %v1487_v11, %v5963_v12  ;;  %v5976_v19 = vld [vmem:[%s5945_s29 + $0x10] sm:$0xff]   ;;  %v1601_v24 = vshll.u32 %v5970_v17, 16  ;;  %v5980_v26 = vld [vmem:[%s5945_s29 + $0x18] sm:$0xff]   ;;  %v387_v29 = vshrl.u32 %v5959_v10, 16  ;;  %v1605_v35 = vshrl.u32 %v5970_v17, 16  ;;  %v6001_v44 = vld [vmem:[%s5945_s29 + $0x20] sm:$0xff]  }
  0x15   : > { %v376_v13 = vshrl.u32 %v5956_v9, 16  ;;  %v378_v14 = vshll.u32 %v5956_v9, 16  ;;  %v385_v21 = vrot.slane %v383_v15, 1  ;;  %v391_v30 = vshll.u32 %v5976_v19, 16  ;;  %v5994_v41 = vld [vmem:[%s5945_s29 + $0x18] sm:$0xff]   ;;  %v6014_v53 = vld [vmem:[%s5945_s29 + $0x20] sm:$0xff]  }
  0x16   : > { %v1594_v22 = vshrl.u32 %v4384_v16, 16  ;;  %v1596_v23 = vshll.u32 %v4384_v16, 16  ;;  %v1603_v31 = vrot.slane %v1601_v24, 1  ;;  %v1609_v36 = vshll.u32 %v5980_v26, 16  ;;  %v6018_v54 = vld [vmem:[%s5945_s29 + $0x48] sm:$0xff]   ;;  %v6053_v24 = vld [vmem:[%s5945_s29 + $0x30] sm:$0xff]  }
  0x17   : > { %v380_v20 = vrot.slane %v378_v14, 1  ;;  %v389_v39 = vor.u32 %v387_v29, %v385_v21  ;;  %v393_v40 = vrot.slane %v391_v30, 1  ;;  %v395_v46 = vshrl.u32 %v5976_v19, 16  ;;  %v5775_v57 = vld [vmem:[%s5945_s29 + $0x28] sm:$0xff]   ;;  %v6056_v25 = vld [vmem:[%s5945_s29 + $0x38] sm:$0xff]  }
  0x18   : > { %v1598_v28 = vrot.slane %v1596_v23, 1  ;;  %v1607_v42 = vor.u32 %v1605_v35, %v1603_v31  ;;  %v1611_v43 = vrot.slane %v1609_v36, 1  ;;  %v399_v47 = vshll.u32 %v5994_v41, 16  ;;  %v6029_v63 = vld [vmem:[%s5945_s29 + $0x28] sm:$0xff]   ;;  %v6070_v36 = vld [vmem:[%s5945_s29 + $0x38] sm:$0xff]  }
  0x19   : > { %v381_v27 = vor.u32 %v380_v20, %v376_v13  ;;  %v394_v45 = vsel %vm374_vm2, %v389_v39, %v393_v40  ;;  %v1613_v49 = vshrl.u32 %v5980_v26, 16  ;;  %v1617_v50 = vshll.u32 %v6001_v44, 16  ;;  %v1941_v3 = vld [vmem:[%s5945_s29 + $0x8] sm:$0xe] }
  0x1a   : > { %v1599_v34 = vor.u32 %v1598_v28, %v1594_v22  ;;  %v1612_v48 = vsel %vm374_vm2, %v1607_v42, %v1611_v43  ;;  %v397_v51 = vor.u32 %v395_v46, %v393_v40  ;;  %v401_v52 = vrot.slane %v399_v47, 1 }
  0x1b   : > { %v386_v33 = vsel %vm374_vm2, %v381_v27, %v385_v21  ;;  %v1615_v55 = vor.u32 %v1613_v49, %v1611_v43  ;;  %v1619_v56 = vrot.slane %v1617_v50, 1  ;;  %v403_v58 = vshrl.u32 %v5994_v41, 16  ;;  %v5781_v43 = vld [vmem:[%s5945_s29 + $0x40] sm:$0xff]  }
  0x1c   : > { %4730 = vmatmul.mubr.msk.bf16.vlgmr.msra.gmra.mrb[0].mxu1 %vm498_vm3, %v386_v33  ;;  %v1604_v38 = vsel %vm374_vm2, %v1599_v34, %v1603_v31  ;;  %v402_v59 = vsel %vm374_vm2, %v397_v51, %v401_v52  ;;  %v407_v60 = vshll.u32 %v6014_v53, 16  ;;  %v1621_v61 = vshrl.u32 %v6001_v44, 16 }
  0x1d   : > { %4733 = vmatprep.mubr.msk.bf16.mxu1 %vm5872_vm1, %v5871_v1  ;;  %4790 = vmatpush3.bf16.msra.mxu1 %v733_v32  ;;  %v1657_v62 = vshll.u32 %v6018_v54, 16  ;;  %v1661_v0 = vshrl.u32 %v6018_v54, 16  ;;  %v1620_v4 = vsel %vm374_vm2, %v1615_v55, %v1619_v56  ;;  %v1625_v5 = vshll.u32 %v5775_v57, 16 }
  0x1e   : > { %4978 = vmatmul.mubr.msk.bf16.vlgmr.msra.gmra.mrb[0].mxu0 %vm498_vm3, %v1604_v38  ;;  %4851 = vmatprep.subr.bf16.mxu1 %v5871_v1  ;;  %v4414_v8 = vcombine.low %v1941_v3, %v5963_v12  ;;  %v1947_v11 = vrot.slane %v5970_v17, 1  ;;  %v405_v13 = vor.u32 %v403_v58, %v401_v52  ;;  %v409_v14 = vrot.slane %v407_v60, 1  ;;  %v5777_v12 = vld [vmem:[%s5945_s29 + $0x30] sm:$0xff]  }
  0x1f   : > { %5038 = vmatpush3.bf16.msra.mxu0 %v2025_v37  ;;  %4981 = vmatprep.mubr.msk.bf16.mxu0 %vm5872_vm1, %v5871_v1  ;;  %v6034_v6 = vrot.slane %v1657_v62, 1  ;;  %v411_v16 = vshrl.u32 %v6014_v53, 16  ;;  %v415_v18 = vshll.u32 %v6029_v63, 16  ;;  %v1949_v17 = vrot.slane %v5980_v26, 1 }
  0x20   : > { %5099 = vmatprep.subr.bf16.mxu0 %v5871_v1  ;;  %v1946_v20 = vrot.slane %v4414_v8, 1  ;;  %v1623_v21 = vor.u32 %v1621_v61, %v1619_v56  ;;  %v1627_v22 = vrot.slane %v1625_v5, 1  ;;  %v1951_v23 = vrot.slane %v6001_v44, 1 }
  0x21   : > { %v6042_v15 = vor.u32 %v1661_v0, %v6034_v6  ;;  %v6062_v28 = vsel %vm892_vm4, %v1947_v11, %v1949_v17  ;;  %v410_v26 = vsel %vm374_vm2, %v405_v13, %v409_v14  ;;  %v1629_v29 = vshrl.u32 %v5775_v57, 16 }
  0x22   : > { %v6059_v27 = vsel %vm892_vm4, %v1946_v20, %v1947_v11  ;;  %v6066_v30 = vsel %vm892_vm4, %v1949_v17, %v1951_v23  ;;  %v1953_v31 = vrot.slane %v5775_v57, 1  ;;  %v417_v32 = vrot.slane %v415_v18, 1 }
  0x23   : > { %v1633_v33 = vshll.u32 %v5777_v12, 16  ;;  %v1628_v34 = vsel %vm374_vm2, %v1623_v21, %v1627_v22  ;;  %v413_v35 = vor.u32 %v411_v16, %v409_v14  ;;  %v1955_v38 = vrot.slane %v5777_v12, 1  ;;  %v6115_v14 = vld [vmem:[%s5945_s29 + $0x48] sm:$0xff]  }
  0x24   : > { %4734 = vmatmul.mubr.msk.bf16.gmra.mrb[4].mxu1 %vm498_vm3, %v394_v45  ;;  %v6073_v37 = vsel %vm892_vm4, %v1951_v23, %v1953_v31  ;;  %v419_v39 = vshrl.u32 %v6029_v63, 16  ;;  %v423_v40 = vshll.u32 %v6053_v24, 16  ;;  %v1641_v42 = vshll.u32 %v6056_v25, 16  ;;  %v6083_v45 = vld [vmem:[%s5945_s29 + $0x40] sm:$0xff]  }
  0x25   : > { %4737 = vmatprep.mubr.msk.bf16.mxu1 %vm5872_vm1, %v5871_v1  ;;  %v1631_v44 = vor.u32 %v1629_v29, %v1627_v22  ;;  %v6086_v46 = vsel %vm892_vm4, %v1953_v31, %v1955_v38  ;;  %v1957_v47 = vrot.slane %v6056_v25, 1  ;;  %v1637_v49 = vshrl.u32 %v5777_v12, 16 }
  0x26   : > { %4982 = vmatmul.mubr.msk.bf16.gmra.mrb[4].mxu0 %vm498_vm3, %v1612_v48  ;;  %v1635_v48 = vrot.slane %v1633_v33, 1  ;;  %v427_v50 = vshrl.u32 %v6053_v24, 16  ;;  %v1959_v51 = vrot.slane %v5781_v43, 1  ;;  %v418_v52 = vsel %vm374_vm2, %v413_v35, %v417_v32 }
  0x27   : > { %4985 = vmatprep.mubr.msk.bf16.mxu0 %vm5872_vm1, %v5871_v1  ;;  %v431_v55 = vshll.u32 %v6070_v36, 16  ;;  %v6096_v56 = vsel %vm892_vm4, %v1955_v38, %v1957_v47  ;;  %v1961_v57 = vrot.slane %v6018_v54, 1  ;;  %v425_v58 = vrot.slane %v423_v40, 1  ;;  %v6143_v38 = vld [vmem:[%s5945_s29 + $0x50] sm:$0xff]  }
  0x28   : > { %v1645_v60 = vshrl.u32 %v6056_v25, 16  ;;  %v6101_v61 = vsel %vm892_vm4, %v1957_v47, %v1959_v51  ;;  %v1649_v62 = vshll.u32 %v5781_v43, 16  ;;  %v435_v0 = vshrl.u32 %v6070_v36, 16 }
  0x29   : > { %v439_v3 = vshll.u32 %v6083_v45, 16  ;;  %v1636_v5 = vsel %vm374_vm2, %v1631_v44, %v1635_v48  ;;  %v433_v8 = vrot.slane %v431_v55, 1  ;;  %v1653_v11 = vshrl.u32 %v5781_v43, 16 }
  0x2a   : > { %v421_v13 = vor.u32 %v419_v39, %v417_v32  ;;  %v1639_v16 = vor.u32 %v1637_v49, %v1635_v48  ;;  %v1651_v12 = vrot.slane %v1649_v62, 1  ;;  %v443_v21 = vshrl.u32 %v6083_v45, 16  ;;  %v6161_v49 = vld [vmem:[%s5945_s29 + $0x58] sm:$0xff]  }
  0x2b   : > { %v441_v20 = vrot.slane %v439_v3, 1  ;;  %v447_v22 = vshll.u32 %v6115_v14, 16  ;;  %v429_v23 = vor.u32 %v427_v50, %v425_v58  ;;  %v437_v31 = vor.u32 %v435_v0, %v433_v8 }
  0x2c   : > { %4738 = vmatmul.mubr.msk.bf16.gmra.mrb[8].mxu1 %vm498_vm3, %v402_v59  ;;  %v1643_v59 = vrot.slane %v1641_v42, 1  ;;  %v426_v18 = vsel %vm374_vm2, %v421_v13, %v425_v58  ;;  %v1655_v32 = vor.u32 %v1653_v11, %v1651_v12  ;;  %v451_v42 = vshrl.u32 %v6115_v14, 16  ;;  %v6175_v58 = vld [vmem:[%s5945_s29 + $0x60] sm:$0xff]   ;;  %v6198_v13 = vld [vmem:[%s5945_s29 + $0x70] sm:$0xf] }
  0x2d   : > { %4741 = vmatprep.mubr.msk.bf16.mxu1 %vm5872_vm1, %v5871_v1  ;;  %v442_v33 = vsel %vm374_vm2, %v437_v31, %v441_v20  ;;  %v449_v35 = vrot.slane %v447_v22, 1  ;;  %v445_v39 = vor.u32 %v443_v21, %v441_v20  ;;  %v455_v43 = vshll.u32 %v6143_v38, 16 }
  0x2e   : > { %4986 = vmatmul.mubr.msk.bf16.gmra.mrb[8].mxu0 %vm498_vm3, %v1620_v4  ;;  %v6108_v4 = vsel %vm892_vm4, %v1959_v51, %v1961_v57  ;;  %v1644_v17 = vsel %vm374_vm2, %v1639_v16, %v1643_v59  ;;  %v1647_v25 = vor.u32 %v1645_v60, %v1643_v59  ;;  %v459_v51 = vshrl.u32 %v6143_v38, 16  ;;  %v297_v16 = vld [vmem:[%s5945_s29 + $0x74] sm:$0x1] }
  0x2f   : > { %4989 = vmatprep.mubr.msk.bf16.mxu0 %vm5872_vm1, %v5871_v1  ;;  %v450_v40 = vsel %vm374_vm2, %v445_v39, %v449_v35  ;;  %v453_v47 = vor.u32 %v451_v42, %v449_v35  ;;  %v457_v48 = vrot.slane %v455_v43, 1  ;;  %v467_v60 = vshrl.u32 %v6161_v49, 16  ;;  %v6306_v43 = vld [vmem:[%s5945_s29 + $0x78] sm:$0x1f]  }
  0x30   : > { %v1652_v29 = vsel %vm374_vm2, %v1647_v25, %v1651_v12  ;;  %v471_v62 = vshll.u32 %v6175_v58, 16 }
  0x31   : > { %v458_v50 = vsel %vm374_vm2, %v453_v47, %v457_v48  ;;  %v461_v55 = vor.u32 %v459_v51, %v457_v48  ;;  %v5798_v48 = vld [vmem:[%s7083_s1 + $0xc] ss:$0 sps:$4 sm:$0xcc]   ;;  %v5797_v51 = vld [vmem:[%s5945_s29 + $0x10] sm:$0xff]  }
  0x32   : > { %v473_v3 = vrot.slane %v471_v62, 1  ;;  %v5803_v62 = vld [vmem:[%s5945_s29 + $0x38] sm:$0xff]  }
  0x34   : > { %4742 = vmatmul.mubr.msk.bf16.gmra.mrb[12].mxu1 %vm498_vm3, %v410_v26  ;;  %v434_v26 = vsel %vm374_vm2, %v429_v23, %v433_v8  ;;  %v475_v8 = vshrl.u32 %v6175_v58, 16 }
  0x35   : > { %4745 = vmatprep.mubr.msk.bf16.mxu1 %vm5872_vm1, %v5871_v1 }
  0x36   : > { %4990 = vmatmul.mubr.msk.bf16.gmra.mrb[12].mxu0 %vm498_vm3, %v1628_v34  ;;  %v1660_v34 = vsel %vm374_vm2, %v1655_v32, %v6034_v6  ;;  %v2237_v6 = vld [vmem:[%s7083_s1 + $0xc] sm:$0x3]  ;;  %v6270_v32 = vld [vmem:[%s5945_s29 + $0x60] sm:$0xff]  }
  0x37   : > { %4993 = vmatprep.mubr.msk.bf16.mxu0 %vm5872_vm1, %v5871_v1  ;;  %v2357_v44 = vsel %vm544_vm0, %v2237_v6, 0 }
  0x3c   : > { %4746 = vmatmul.mubr.msk.bf16.gmra.mrb[16].mxu1 %vm498_vm3, %v418_v52  ;;  %v463_v52 = vshll.u32 %v6161_v49, 16 }
  0x3d   : > { %4749 = vmatprep.mubr.msk.bf16.mxu1 %vm5872_vm1, %v5871_v1 }
  0x3e   : > { %4994 = vmatmul.mubr.msk.bf16.gmra.mrb[16].mxu0 %vm498_vm3, %v1636_v5  ;;  %v6188_v5 = vld [vmem:[%s5945_s29 + $0x68] sm:$0xff]  }
  0x3f   : > { %4997 = vmatprep.mubr.msk.bf16.mxu0 %vm5872_vm1, %v5871_v1  ;;  %v479_v11 = vshll.u32 %v6188_v5, 16 }
  0x41   : > { %v481_v12 = vrot.slane %v479_v11, 1  ;;  %v5808_v11 = vld [vmem:[%s7083_s1 + $0x4] ss:$0 sps:$4 sm:$0xcc]  }
  0x44   : > { %4750 = vmatmul.mubr.msk.bf16.gmra.mrb[20].mxu1 %vm498_vm3, %v426_v18  ;;  %v477_v18 = vor.u32 %v475_v8, %v473_v3  ;;  %v5805_v8 = vld [vmem:[%s5945_s29 + $0x40] sm:$0xff]  }
  0x45   : > { %4753 = vmatprep.mubr.msk.bf16.mxu1 %vm5872_vm1, %v5871_v1 }
  0x46   : > { %4998 = vmatmul.mubr.msk.bf16.gmra.mrb[20].mxu0 %vm498_vm3, %v1644_v17  ;;  %v482_v20 = vsel %vm374_vm2, %v477_v18, %v481_v12  ;;  %v483_v17 = vshrl.u32 %v6188_v5, 16  ;;  %v894_v18 = vrot.slane %v5959_v10, 1 }
  0x47   : > { %5001 = vmatprep.mubr.msk.bf16.mxu0 %vm5872_vm1, %v5871_v1 }
  0x48   : > { %v485_v22 = vor.u32 %v483_v17, %v481_v12  ;;  %v1257_v12 = vrot.slane %v5808_v11, 2  ;;  %v896_v17 = vrot.slane %v5976_v19, 1 }
  0x4c   : > { %4754 = vmatmul.mubr.msk.bf16.gmra.mrb[24].mxu1 %vm498_vm3, %v434_v26 }
  0x4d   : > { %4757 = vmatprep.mubr.msk.bf16.mxu1 %vm5872_vm1, %v5871_v1 }
  0x4e   : > { %5002 = vmatmul.mubr.msk.bf16.gmra.mrb[24].mxu0 %vm498_vm3, %v1652_v29  ;;  %v6242_v29 = vld [vmem:[%s5945_s29 + $0x50] sm:$0xff]  }
  0x4f   : > { %5005 = vmatprep.mubr.msk.bf16.mxu0 %vm5872_vm1, %v5871_v1 }
  0x54   : > { %4758 = vmatmul.mubr.msk.bf16.gmra.mrb[28].mxu1 %vm498_vm3, %v442_v33 }
  0x55   : > { %4761 = vmatprep.mubr.msk.bf16.mxu1 %vm5872_vm1, %v5871_v1 }
  0x56   : > { %5006 = vmatmul.mubr.msk.bf16.gmra.mrb[28].mxu0 %vm498_vm3, %v1660_v34  ;;  %v6282_v34 = vld [vmem:[%s5945_s29 + $0x68] sm:$0xff]  }
  0x57   : > { %5039 = vmatprep.mubr.msk.bf16.mxu0 %vm5872_vm1, %v5871_v1  ;;  %v1969_v35 = vrot.slane %v6282_v34, 1 }
  0x5c   : > { %4762 = vmatmul.mubr.msk.bf16.gmra.mrb[32].mxu1 %vm498_vm3, %v450_v40  ;;  %v6294_v40 = vld [vmem:[%s5945_s29 + $0x70] sm:$0xff]  }
  0x5d   : > { %4765 = vmatprep.mubr.msk.bf16.mxu1 %vm5872_vm1, %v5871_v1  ;;  %v1971_v6 = vrot.slane %v6294_v40, 1 }
  0x5e   : > { %5040 = vmatmul.mubr.msk.bf16.vlgmr.msra.gmra.mrb[0].mxu0 %vm498_vm3, %v6059_v27  ;;  %v465_v27 = vrot.slane %v463_v52, 1 }
  0x5f   : > { %5100 = vmatpush3.bf16.msra.mxu0 %v2357_v44  ;;  %5043 = vmatprep.mubr.msk.bf16.mxu0 %vm5872_vm1, %v5871_v1  ;;  %v1972_v42 = vsel %vm892_vm4, %v1969_v35, %v1971_v6  ;;  %v1973_v44 = vrot.slane %v6306_v43, 1 }
  0x60   : > { %5161 = vmatprep.subr.bf16.mxu0 %v5871_v1  ;;  %v466_v59 = vsel %vm374_vm2, %v461_v55, %v465_v27  ;;  %v469_v0 = vor.u32 %v467_v60, %v465_v27  ;;  %v5799_v55 = vld [vmem:[%s5945_s29 + $0x18] sm:$0xff]   ;;  %v5800_v27 = vld [vmem:[%s5945_s29 + $0x20] sm:$0xff]   ;;  %v5802_v60 = vld [vmem:[%s5945_s29 + $0x30] sm:$0xff]  }
  0x61   : > { %v1974_v47 = vsel %vm892_vm4, %v1971_v6, %v1973_v44 }
  0x64   : > { %4766 = vmatmul.mubr.msk.bf16.gmra.mrb[36].mxu1 %vm498_vm3, %v458_v50  ;;  %v2768_v50 = vrot.slane %v5798_v48, 2 }
  0x65   : > { %4769 = vmatprep.mubr.msk.bf16.mxu1 %vm5872_vm1, %v5871_v1 }
  0x66   : > { %5044 = vmatmul.mubr.msk.bf16.gmra.mrb[4].mxu0 %vm498_vm3, %v6062_v28  ;;  %v474_v28 = vsel %vm374_vm2, %v469_v0, %v473_v3  ;;  %v2815_v52 = vsel %vm544_vm0, %v2768_v50, 0  ;;  %v887_v0 = vld [vmem:[%s5945_s29] sm:$0xe]  ;;  %v4321_v3 = vcombine.low %v6198_v13, %v6198_v13 }
  0x67   : > { %5047 = vmatprep.mubr.msk.bf16.mxu0 %vm5872_vm1, %v5871_v1 }
  0x6c   : > { %4770 = vmatmul.mubr.msk.bf16.gmra.mrb[40].mxu1 %vm498_vm3, %v466_v59  ;;  %v5801_v59 = vld [vmem:[%s5945_s29 + $0x28] sm:$0xff]  }
  0x6d   : > { %4773 = vmatprep.mubr.msk.bf16.mxu1 %vm5872_vm1, %v5871_v1 }
  0x6e   : > { %5048 = vmatmul.mubr.msk.bf16.gmra.mrb[8].mxu0 %vm498_vm3, %v6066_v30  ;;  %v6205_v30 = vcombine.low %v6198_v13, %v297_v16  ;;  %v5807_v13 = vld [vmem:[%s5945_s29 + $0x48] sm:$0xff]  }
  0x6f   : > { %5051 = vmatprep.mubr.msk.bf16.mxu0 %vm5872_vm1, %v5871_v1 }
  0x70   : > { %v487_v21 = vshll.u32 %v6205_v30, 16  ;;  %v491_v25 = vshrl.u32 %v6205_v30, 16 }
  0x72   : > { %v489_v23 = vrot.slane %v487_v21, 1  ;;  %v5809_v21 = vld [vmem:[%s5945_s29 + $0x50] sm:$0xff]  }
  0x74   : > { %4774 = vmatmul.mubr.msk.bf16.gmra.mrb[44].mxu1 %vm498_vm3, %v474_v28  ;;  %v493_v26 = vor.u32 %v491_v25, %v489_v23  ;;  %v4337_v28 = vcombine.low %v887_v0, %v5950_v7  ;;  %v5811_v25 = vld [vmem:[%s5945_s29 + $0x60] sm:$0xff]   ;;  %v912_v0 = vrot.slane %v6143_v38, 1 }
  0x75   : > { %4777 = vmatprep.mubr.msk.bf16.mxu1 %vm5872_vm1, %v5871_v1 }
  0x76   : > { %5052 = vmatmul.mubr.msk.bf16.gmra.mrb[12].mxu0 %vm498_vm3, %v6073_v37  ;;  %v490_v37 = vsel %vm374_vm2, %v485_v22, %v489_v23  ;;  %v893_v16 = vrot.slane %v4337_v28, 1  ;;  %v898_v22 = vrot.slane %v5994_v41, 1  ;;  %v5810_v23 = vld [vmem:[%s5945_s29 + $0x58] sm:$0xff]  }
  0x77   : > { %5055 = vmatprep.mubr.msk.bf16.mxu0 %vm5872_vm1, %v5871_v1 }
  0x78   : > { %v895_v7 = vsel %vm892_vm4, %v893_v16, %v894_v18 }
  0x7c   : > { %4778 = vmatmul.mubr.msk.bf16.gmra.mrb[48].mxu1 %vm498_vm3, %v482_v20  ;;  %v1304_v20 = vsel %vm544_vm0, %v1257_v12, 0 }
  0x7d   : > { %4781 = vmatprep.mubr.msk.bf16.mxu1 %vm5872_vm1, %v5871_v1 }
  0x7e   : > { %5056 = vmatmul.mubr.msk.bf16.gmra.mrb[16].mxu0 %vm498_vm3, %v6086_v46  ;;  %v888_v46 = vld [vmem:[%s7083_s1 + $0x4] sm:$0x3] }
  0x7f   : > { %5059 = vmatprep.mubr.msk.bf16.mxu0 %vm5872_vm1, %v5871_v1 }
  0x84   : > { %4782 = vmatmul.mubr.msk.bf16.gmra.mrb[52].mxu1 %vm498_vm3, %v490_v37  ;;  %v900_v37 = vrot.slane %v6014_v53, 1 }
  0x85   : > { %4785 = vmatprep.mubr.msk.bf16.mxu1 %vm5872_vm1, %v5871_v1 }
  0x86   : > { %5060 = vmatmul.mubr.msk.bf16.gmra.mrb[20].mxu0 %vm498_vm3, %v6096_v56  ;;  %v968_v56 = vsel %vm544_vm0, %v888_v46, 0  ;;  %v5812_v46 = vld [vmem:[%s5945_s29 + $0x68] sm:$0xff]  }
  0x87   : > { %5063 = vmatprep.mubr.msk.bf16.mxu0 %vm5872_vm1, %v5871_v1 }
  0x8c   : > { %4786 = vmatmul.mubr.msk.bf16.gmra.mrb[56].mxu1 %vm498_vm3, %v493_v26  ;;  %v902_v26 = vrot.slane %v6029_v63, 1 }
  0x8d   : > { %4791 = vmatprep.mubr.msk.bf16.mxu1 %vm5872_vm1, %v5871_v1 }
  0x8e   : > { %5064 = vmatmul.mubr.msk.bf16.gmra.mrb[24].mxu0 %vm498_vm3, %v6101_v61  ;;  %v1963_v61 = vrot.slane %v6242_v29, 1 }
  0x8f   : > { %5067 = vmatprep.mubr.msk.bf16.mxu0 %vm5872_vm1, %v5871_v1 }
  0x90   : > { %v1964_v31 = vsel %vm892_vm4, %v1961_v57, %v1963_v61  ;;  %v1967_v57 = vrot.slane %v6270_v32, 1 }
  0x92   : > { %v1970_v39 = vsel %vm892_vm4, %v1967_v57, %v1969_v35  ;;  %v6470_v35 = vld [vmem:[%s5945_s29 + $0x18] sm:$0xff]  }
  0x93   : > { %v2654_v48 = vshll.u32 %v6470_v35, 16 }
  0x94   : > { %4792 = vmatmul.mubr.msk.bf16.vlgmr.msra.gmra.mrb[0].mxu1 %vm498_vm3, %v5956_v9  ;;  %v6258_v9 = vld [vmem:[%s5945_s29 + $0x58] sm:$0xff]  }
  0x95   : > { %4795 = vmatprep.mubr.msk.bf16.mxu1 %vm5872_vm1, %v5871_v1  ;;  %4852 = vmatpush3.bf16.msra.mxu1 %v968_v56  ;;  %v904_v56 = vrot.slane %v6053_v24, 1 }
  0x96   : > { %5068 = vmatmul.mubr.msk.bf16.gmra.mrb[28].mxu0 %vm498_vm3, %v6108_v4  ;;  %4913 = vmatprep.subr.bf16.mxu1 %v5871_v1  ;;  %v1965_v4 = vrot.slane %v6258_v9, 1 }
  0x97   : > { %5071 = vmatprep.mubr.msk.bf16.mxu0 %vm5872_vm1, %v5871_v1 }
  0x98   : > { %v1966_v54 = vsel %vm892_vm4, %v1963_v61, %v1965_v4  ;;  %v1968_v33 = vsel %vm892_vm4, %v1965_v4, %v1967_v57  ;;  %v5813_v61 = vld [vmem:[%s5945_s29 + $0x70] sm:$0xff]   ;;  %v5814_v57 = vld [vmem:[%s5945_s29 + $0x78] sm:$0xff]  }
  0x99   : > { %v6457_v4 = vld [vmem:[%s5945_s29 + $0x14] sm:$0xf] }
  0x9c   : > { %4796 = vmatmul.mubr.msk.bf16.gmra.mrb[4].mxu1 %vm498_vm3, %v5959_v10  ;;  %v897_v10 = vsel %vm892_vm4, %v894_v18, %v896_v17 }
  0x9d   : > { %4799 = vmatprep.mubr.msk.bf16.mxu1 %vm5872_vm1, %v5871_v1 }
  0x9e   : > { %5072 = vmatmul.mubr.msk.bf16.gmra.mrb[32].mxu0 %vm498_vm3, %v1964_v31  ;;  %v906_v31 = vrot.slane %v6070_v36, 1 }
  0x9f   : > { %5075 = vmatprep.mubr.msk.bf16.mxu0 %vm5872_vm1, %v5871_v1 }
  0xa4   : > { %4800 = vmatmul.mubr.msk.bf16.gmra.mrb[8].mxu1 %vm498_vm3, %v5976_v19  ;;  %v899_v19 = vsel %vm892_vm4, %v896_v17, %v898_v22 }
  0xa5   : > { %4803 = vmatprep.mubr.msk.bf16.mxu1 %vm5872_vm1, %v5871_v1 }
  0xa6   : > { %5076 = vmatmul.mubr.msk.bf16.gmra.mrb[36].mxu0 %vm498_vm3, %v1966_v54  ;;  %v907_v54 = vsel %vm892_vm4, %v904_v56, %v906_v31 }
  0xa7   : > { %5079 = vmatprep.mubr.msk.bf16.mxu0 %vm5872_vm1, %v5871_v1 }
  0xac   : > { %4804 = vmatmul.mubr.msk.bf16.gmra.mrb[12].mxu1 %vm498_vm3, %v5994_v41  ;;  %v901_v41 = vsel %vm892_vm4, %v898_v22, %v900_v37 }
  0xad   : > { %4807 = vmatprep.mubr.msk.bf16.mxu1 %vm5872_vm1, %v5871_v1 }
  0xae   : > { %5080 = vmatmul.mubr.msk.bf16.gmra.mrb[40].mxu0 %vm498_vm3, %v1968_v33 }
  0xaf   : > { %5083 = vmatprep.mubr.msk.bf16.mxu0 %vm5872_vm1, %v5871_v1 }
  0xb4   : > { %4808 = vmatmul.mubr.msk.bf16.gmra.mrb[16].mxu1 %vm498_vm3, %v6014_v53  ;;  %v903_v53 = vsel %vm892_vm4, %v900_v37, %v902_v26  ;;  %v6529_v37 = vld [vmem:[%s5945_s29 + $0x38] sm:$0xff]  }
  0xb5   : > { %4811 = vmatprep.mubr.msk.bf16.mxu1 %vm5872_vm1, %v5871_v1 }
  0xb6   : > { %5084 = vmatmul.mubr.msk.bf16.gmra.mrb[44].mxu0 %vm498_vm3, %v1970_v39 }
  0xb7   : > { %5087 = vmatprep.mubr.msk.bf16.mxu0 %vm5872_vm1, %v5871_v1 }
  0xbc   : > { %4812 = vmatmul.mubr.msk.bf16.gmra.mrb[20].mxu1 %vm498_vm3, %v6029_v63  ;;  %v905_v63 = vsel %vm892_vm4, %v902_v26, %v904_v56 }
  0xbd   : > { %4815 = vmatprep.mubr.msk.bf16.mxu1 %vm5872_vm1, %v5871_v1 }
  0xbe   : > { %5088 = vmatmul.mubr.msk.bf16.gmra.mrb[48].mxu0 %vm498_vm3, %v1972_v42  ;;  %v5815_v42 = vld [vmem:[%s5945_s29 + $0x80] ss:$0 sps:$4 sm:$0xff]  }
  0xbf   : > { %5091 = vmatprep.mubr.msk.bf16.mxu0 %vm5872_vm1, %v5871_v1 }
  0xc4   : > { %4816 = vmatmul.mubr.msk.bf16.gmra.mrb[24].mxu1 %vm498_vm3, %v6053_v24  ;;  %v2540_v24 = vld [vmem:[%s5945_s29 + $0x10] sm:$0xf] }
  0xc5   : > { %4819 = vmatprep.mubr.msk.bf16.mxu1 %vm5872_vm1, %v5871_v1  ;;  %v4461_v33 = vcombine.low %v2540_v24, %v6457_v4  ;;  %v2690_v24 = vshrl.u32 %v6529_v37, 16 }
  0xc6   : > { %5092 = vmatmul.mubr.msk.bf16.gmra.mrb[52].mxu0 %vm498_vm3, %v1974_v47 }
  0xc7   : > { %5095 = vmatprep.mubr.msk.bf16.mxu0 %vm5872_vm1, %v5871_v1  ;;  %v2649_v39 = vshll.u32 %v4461_v33, 16 }
  0xc9   : > { %v2651_v47 = vrot.slane %v2649_v39, 1 }
  0xcc   : > { %4820 = vmatmul.mubr.msk.bf16.gmra.mrb[28].mxu1 %vm498_vm3, %v6070_v36  ;;  %v908_v36 = vrot.slane %v6083_v45, 1 }
  0xcd   : > { %4823 = vmatprep.mubr.msk.bf16.mxu1 %vm5872_vm1, %v5871_v1 }
  0xce   : > { %5096 = vmatmul.mubr.msk.bf16.gmra.mrb[56].mxu0 %vm498_vm3, %v1973_v44  ;;  %v909_v6 = vsel %vm892_vm4, %v906_v31, %v908_v36  ;;  %v2647_v44 = vshrl.u32 %v4461_v33, 16 }
  0xcf   : > { %5101 = vmatprep.mubr.msk.bf16.mxu0 %vm5872_vm1, %v5871_v1 }
  0xd0   : > { %v2652_v50 = vor.u32 %v2651_v47, %v2647_v44 }
  0xd4   : > { %4824 = vmatmul.mubr.msk.bf16.gmra.mrb[32].mxu1 %vm498_vm3, %v6083_v45  ;;  %v910_v45 = vrot.slane %v6115_v14, 1 }
  0xd5   : > { %4827 = vmatprep.mubr.msk.bf16.mxu1 %vm5872_vm1, %v5871_v1 }
  0xd6   : > { %5102 = vmatmul.mubr.msk.bf16.vlgmr.msra.gmra.mrb[0].mxu0 %vm498_vm3, %v5797_v51  ;;  %v2656_v51 = vrot.slane %v2654_v48, 1  ;;  %v913_v11 = vsel %vm892_vm4, %v910_v45, %v912_v0  ;;  %v6570_v48 = vld [vmem:[%s5945_s29 + $0x50] sm:$0xff]  }
  0xd7   : > { %5162 = vmatpush3.bf16.msra.mxu0 %v2815_v52  ;;  %5105 = vmatprep.mubr.msk.bf16.mxu0 %vm5872_vm1, %v5871_v1  ;;  %v6483_v52 = vld [vmem:[%s5945_s29 + $0x20] sm:$0xff]  }
  0xd8   : > { %5223 = vmatprep.subr.bf16.mxu0 %v5871_v1  ;;  %v2666_v18 = vshrl.u32 %v6483_v52, 16 }
  0xdc   : > { %4828 = vmatmul.mubr.msk.bf16.gmra.mrb[36].mxu1 %vm498_vm3, %v6115_v14  ;;  %v2658_v14 = vshrl.u32 %v6470_v35, 16 }
  0xdd   : > { %4831 = vmatprep.mubr.msk.bf16.mxu1 %vm5872_vm1, %v5871_v1 }
  0xde   : > { %5106 = vmatmul.mubr.msk.bf16.gmra.mrb[4].mxu0 %vm498_vm3, %v5799_v55  ;;  %v911_v55 = vsel %vm892_vm4, %v908_v36, %v910_v45  ;;  %v6557_v36 = vld [vmem:[%s5945_s29 + $0x48] sm:$0xff]  }
  0xdf   : > { %5109 = vmatprep.mubr.msk.bf16.mxu0 %vm5872_vm1, %v5871_v1  ;;  %v2702_v44 = vshll.u32 %v6557_v36, 16 }
  0xe1   : > { %v2704_v47 = vrot.slane %v2702_v44, 1 }
  0xe4   : > { %4832 = vmatmul.mubr.msk.bf16.gmra.mrb[40].mxu1 %vm498_vm3, %v6143_v38  ;;  %v914_v38 = vrot.slane %v6161_v49, 1 }
  0xe5   : > { %4835 = vmatprep.mubr.msk.bf16.mxu1 %vm5872_vm1, %v5871_v1 }
  0xe6   : > { %5110 = vmatmul.mubr.msk.bf16.gmra.mrb[8].mxu0 %vm498_vm3, %v5800_v27  ;;  %v2999_v27 = vld [vmem:[%s7083_s1 + $0x10] sm:$0x3]  ;;  %v915_v17 = vsel %vm892_vm4, %v912_v0, %v914_v38 }
  0xe7   : > { %5113 = vmatprep.mubr.msk.bf16.mxu0 %vm5872_vm1, %v5871_v1 }
  0xec   : > { %4836 = vmatmul.mubr.msk.bf16.gmra.mrb[44].mxu1 %vm498_vm3, %v6161_v49  ;;  %v916_v49 = vrot.slane %v6175_v58, 1 }
  0xed   : > { %4839 = vmatprep.mubr.msk.bf16.mxu1 %vm5872_vm1, %v5871_v1 }
  0xee   : > { %5114 = vmatmul.mubr.msk.bf16.gmra.mrb[12].mxu0 %vm498_vm3, %v5801_v59  ;;  %v2657_v59 = vsel %vm374_vm2, %v2652_v50, %v2656_v51  ;;  %v2706_v50 = vshrl.u32 %v6557_v36, 16 }
  0xef   : > { %5117 = vmatprep.mubr.msk.bf16.mxu0 %vm5872_vm1, %v5871_v1 }
  0xf4   : > { %4840 = vmatmul.mubr.msk.bf16.gmra.mrb[48].mxu1 %vm498_vm3, %v6175_v58  ;;  %v918_v58 = vrot.slane %v6188_v5, 1 }
  0xf5   : > { %4843 = vmatprep.mubr.msk.bf16.mxu1 %vm5872_vm1, %v5871_v1 }
  0xf6   : > { %5118 = vmatmul.mubr.msk.bf16.gmra.mrb[16].mxu0 %vm498_vm3, %v5802_v60  ;;  %v2662_v60 = vshll.u32 %v6483_v52, 16 }
  0xf7   : > { %5121 = vmatprep.mubr.msk.bf16.mxu0 %vm5872_vm1, %v5871_v1 }
  0xf8   : > { %v2664_v28 = vrot.slane %v2662_v60, 1 }
  0xfc   : > { %4844 = vmatmul.mubr.msk.bf16.gmra.mrb[52].mxu1 %vm498_vm3, %v6188_v5  ;;  %v920_v5 = vrot.slane %v6205_v30, 1 }
  0xfd   : > { %4847 = vmatprep.mubr.msk.bf16.mxu1 %vm5872_vm1, %v5871_v1 }
  0xfe   : > { %5122 = vmatmul.mubr.msk.bf16.gmra.mrb[20].mxu0 %vm498_vm3, %v5803_v62  ;;  %v3078_v62 = vsel %vm544_vm0, %v2999_v27, 0  ;;  %v921_v39 = vsel %vm892_vm4, %v918_v58, %v920_v5 }
  0xff   : > { %5125 = vmatprep.mubr.msk.bf16.mxu0 %vm5872_vm1, %v5871_v1 }
 0x104   : > { %4848 = vmatmul.mubr.msk.bf16.gmra.mrb[56].mxu1 %vm498_vm3, %v4321_v3  ;;  %v2660_v3 = vor.u32 %v2658_v14, %v2656_v51  ;;  %v2710_v51 = vshll.u32 %v6570_v48, 16  ;;  %v5824_v14 = vld [vmem:[%s5945_s29 + $0x8] sm:$0xff]  }
 0x105   : > { %4853 = vmatprep.mubr.msk.bf16.mxu1 %vm5872_vm1, %v5871_v1 }
 0x106   : > { %5126 = vmatmul.mubr.msk.bf16.gmra.mrb[24].mxu0 %vm498_vm3, %v5805_v8  ;;  %v6501_v8 = vld [vmem:[%s5945_s29 + $0x28] sm:$0xff]   ;;  %v2665_v16 = vsel %vm374_vm2, %v2660_v3, %v2664_v28  ;;  %v2712_v27 = vrot.slane %v2710_v51, 1 }
 0x107   : > { %5129 = vmatprep.mubr.msk.bf16.mxu0 %vm5872_vm1, %v5871_v1  ;;  %v2670_v12 = vshll.u32 %v6501_v8, 16 }
 0x10c   : > { %4854 = vmatmul.mubr.msk.bf16.vlgmr.msra.gmra.mrb[0].mxu1 %vm498_vm3, %v895_v7  ;;  %v2668_v7 = vor.u32 %v2666_v18, %v2664_v28 }
 0x10d   : > { %4857 = vmatprep.mubr.msk.bf16.mxu1 %vm5872_vm1, %v5871_v1  ;;  %4914 = vmatpush3.bf16.msra.mxu1 %v1304_v20  ;;  %v6515_v20 = vld [vmem:[%s5945_s29 + $0x30] sm:$0xff]  }
 0x10e   : > { %5130 = vmatmul.mubr.msk.bf16.gmra.mrb[28].mxu0 %vm498_vm3, %v5807_v13  ;;  %5285 = vmatprep.subr.bf16.mxu1 %v5871_v1  ;;  %v2672_v13 = vrot.slane %v2670_v12, 1  ;;  %v2678_v22 = vshll.u32 %v6515_v20, 16  ;;  %v2682_v26 = vshrl.u32 %v6515_v20, 16 }
 0x10f   : > { %5133 = vmatprep.mubr.msk.bf16.mxu0 %vm5872_vm1, %v5871_v1 }
 0x114   : > { %4858 = vmatmul.mubr.msk.bf16.gmra.mrb[4].mxu1 %vm498_vm3, %v897_v10  ;;  %v2673_v10 = vsel %vm374_vm2, %v2668_v7, %v2672_v13 }
 0x115   : > { %4861 = vmatprep.mubr.msk.bf16.mxu1 %vm5872_vm1, %v5871_v1 }
 0x116   : > { %5134 = vmatmul.mubr.msk.bf16.gmra.mrb[32].mxu0 %vm498_vm3, %v5809_v21  ;;  %v2674_v21 = vshrl.u32 %v6501_v8, 16 }
 0x117   : > { %5137 = vmatprep.mubr.msk.bf16.mxu0 %vm5872_vm1, %v5871_v1 }
 0x11c   : > { %4862 = vmatmul.mubr.msk.bf16.gmra.mrb[8].mxu1 %vm498_vm3, %v899_v19  ;;  %v2676_v19 = vor.u32 %v2674_v21, %v2672_v13  ;;  %v6609_v13 = vld [vmem:[%s5945_s29 + $0x68] sm:$0xff]  }
 0x11d   : > { %4865 = vmatprep.mubr.msk.bf16.mxu1 %vm5872_vm1, %v5871_v1 }
 0x11e   : > { %5138 = vmatmul.mubr.msk.bf16.gmra.mrb[36].mxu0 %vm498_vm3, %v5810_v23  ;;  %v2680_v23 = vrot.slane %v2678_v22, 1  ;;  %v2734_v22 = vshll.u32 %v6609_v13, 16 }
 0x11f   : > { %5141 = vmatprep.mubr.msk.bf16.mxu0 %vm5872_vm1, %v5871_v1 }
 0x124   : > { %4866 = vmatmul.mubr.msk.bf16.gmra.mrb[12].mxu1 %vm498_vm3, %v901_v41  ;;  %v917_v41 = vsel %vm892_vm4, %v914_v38, %v916_v49 }
 0x125   : > { %4869 = vmatprep.mubr.msk.bf16.mxu1 %vm5872_vm1, %v5871_v1 }
 0x126   : > { %5142 = vmatmul.mubr.msk.bf16.gmra.mrb[40].mxu0 %vm498_vm3, %v5811_v25  ;;  %v2681_v25 = vsel %vm374_vm2, %v2676_v19, %v2680_v23  ;;  %v2736_v19 = vrot.slane %v2734_v22, 1 }
 0x127   : > { %5145 = vmatprep.mubr.msk.bf16.mxu0 %vm5872_vm1, %v5871_v1 }
 0x12c   : > { %4870 = vmatmul.mubr.msk.bf16.gmra.mrb[16].mxu1 %vm498_vm3, %v903_v53  ;;  %v2686_v53 = vshll.u32 %v6529_v37, 16 }
 0x12d   : > { %4873 = vmatprep.mubr.msk.bf16.mxu1 %vm5872_vm1, %v5871_v1 }
 0x12e   : > { %5146 = vmatmul.mubr.msk.bf16.gmra.mrb[44].mxu0 %vm498_vm3, %v5812_v46  ;;  %v2684_v46 = vor.u32 %v2682_v26, %v2680_v23  ;;  %v2688_v56 = vrot.slane %v2686_v53, 1  ;;  %v6622_v23 = vld [vmem:[%s5945_s29 + $0x70] sm:$0xff]   ;;  %v2738_v26 = vshrl.u32 %v6609_v13, 16 }
 0x12f   : > { %5149 = vmatprep.mubr.msk.bf16.mxu0 %vm5872_vm1, %v5871_v1  ;;  %v2742_v53 = vshll.u32 %v6622_v23, 16 }
 0x130   : > { %v2689_v31 = vsel %vm374_vm2, %v2684_v46, %v2688_v56 }
 0x131   : > { %v2744_v46 = vrot.slane %v2742_v53, 1  ;;  %v1673_v53 = vshll.u32 %v6258_v9, 16 }
 0x134   : > { %4874 = vmatmul.mubr.msk.bf16.gmra.mrb[20].mxu1 %vm498_vm3, %v905_v63  ;;  %v6543_v63 = vld [vmem:[%s5945_s29 + $0x40] sm:$0xff]  }
 0x135   : > { %4877 = vmatprep.mubr.msk.bf16.mxu1 %vm5872_vm1, %v5871_v1 }
 0x136   : > { %5150 = vmatmul.mubr.msk.bf16.gmra.mrb[48].mxu0 %vm498_vm3, %v5813_v61  ;;  %v919_v61 = vsel %vm892_vm4, %v916_v49, %v918_v58  ;;  %v2740_v58 = vor.u32 %v2738_v26, %v2736_v19  ;;  %v1669_v26 = vshrl.u32 %v6242_v29, 16 }
 0x137   : > { %5153 = vmatprep.mubr.msk.bf16.mxu0 %vm5872_vm1, %v5871_v1 }
 0x13c   : > { %4878 = vmatmul.mubr.msk.bf16.gmra.mrb[24].mxu1 %vm498_vm3, %v907_v54  ;;  %v2694_v54 = vshll.u32 %v6543_v63, 16 }
 0x13d   : > { %4881 = vmatprep.mubr.msk.bf16.mxu1 %vm5872_vm1, %v5871_v1 }
 0x13e   : > { %5154 = vmatmul.mubr.msk.bf16.gmra.mrb[52].mxu0 %vm498_vm3, %v5814_v57  ;;  %v2692_v57 = vor.u32 %v2690_v24, %v2688_v56  ;;  %v2696_v33 = vrot.slane %v2694_v54, 1  ;;  %v6635_v56 = vld [vmem:[%s5945_s29 + $0x78] sm:$0xff]   ;;  %v2746_v24 = vshrl.u32 %v6622_v23, 16 }
 0x13f   : > { %5157 = vmatprep.mubr.msk.bf16.mxu0 %vm5872_vm1, %v5871_v1  ;;  %v2750_v54 = vshll.u32 %v6635_v56, 16 }
 0x144   : > { %4882 = vmatmul.mubr.msk.bf16.gmra.mrb[28].mxu1 %vm498_vm3, %v909_v6  ;;  %v2697_v6 = vsel %vm374_vm2, %v2692_v57, %v2696_v33  ;;  %v2752_v57 = vrot.slane %v2750_v54, 1 }
 0x145   : > { %4885 = vmatprep.mubr.msk.bf16.mxu1 %vm5872_vm1, %v5871_v1 }
 0x146   : > { %5158 = vmatmul.mubr.msk.bf16.gmra.mrb[56].mxu0 %vm498_vm3, %v5815_v42  ;;  %v2698_v42 = vshrl.u32 %v6543_v63, 16 }
 0x147   : > { %5163 = vmatprep.mubr.msk.bf16.mxu0 %vm5872_vm1, %v5871_v1 }
 0x148   : > { %v2700_v30 = vor.u32 %v2698_v42, %v2696_v33  ;;  %v6648_v33 = vld [vmem:[%s5945_s29 + $0x80] sm:$0x1f]   ;;  %v2754_v42 = vshrl.u32 %v6635_v56, 16 }
 0x149   : > { %v2758_v44 = vshll.u32 %v6648_v33, 16  ;;  %v2762_v51 = vshrl.u32 %v6648_v33, 16 }
 0x14a   : > { %v2705_v45 = vsel %vm374_vm2, %v2700_v30, %v2704_v47  ;;  %v2756_v30 = vor.u32 %v2754_v42, %v2752_v57 }
 0x14c   : > { %4886 = vmatmul.mubr.msk.bf16.gmra.mrb[32].mxu1 %vm498_vm3, %v911_v55  ;;  %v2708_v55 = vor.u32 %v2706_v50, %v2704_v47  ;;  %v2760_v47 = vrot.slane %v2758_v44, 1 }
 0x14d   : > { %4889 = vmatprep.mubr.msk.bf16.mxu1 %vm5872_vm1, %v5871_v1 }
 0x14e   : > { %5164 = vmatmul.mubr.msk.bf16.vlgmr.msra.gmra.mrb[0].mxu0 %vm498_vm3, %v2657_v59  ;;  %v6582_v59 = vld [vmem:[%s5945_s29 + $0x58] sm:$0xff]   ;;  %v2713_v60 = vsel %vm374_vm2, %v2708_v55, %v2712_v27  ;;  %v2761_v50 = vsel %vm374_vm2, %v2756_v30, %v2760_v47  ;;  %v5838_v55 = vld [vmem:[%s5945_s29 + $0x40] sm:$0xff]   ;;  %v1693_v30 = vshrl.u32 %v6282_v34, 16 }
 0x14f   : > { %5224 = vmatpush3.bf16.msra.mxu0 %v3078_v62  ;;  %5167 = vmatprep.mubr.msk.bf16.mxu0 %vm5872_vm1, %v5871_v1  ;;  %v2714_v62 = vshrl.u32 %v6570_v48, 16  ;;  %v2718_v0 = vshll.u32 %v6582_v59, 16  ;;  %v2722_v12 = vshrl.u32 %v6582_v59, 16 }
 0x151   : > { %v2716_v3 = vor.u32 %v2714_v62, %v2712_v27  ;;  %v2720_v28 = vrot.slane %v2718_v0, 1  ;;  %v2998_v27 = vld [vmem:[%s5945_s29 + $0x10] sm:$0xe]  ;;  %v3004_v0 = vrot.slane %v6470_v35, 1  ;;  %v3008_v35 = vrot.slane %v6501_v8, 1 }
 0x152   : > { %v3012_v8 = vrot.slane %v6529_v37, 1  ;;  %v3016_v37 = vrot.slane %v6557_v36, 1 }
 0x153   : > { %v2721_v18 = vsel %vm374_vm2, %v2716_v3, %v2720_v28  ;;  %v5839_v3 = vld [vmem:[%s5945_s29 + $0x48] sm:$0xff]  }
 0x154   : > { %4890 = vmatmul.mubr.msk.bf16.gmra.mrb[36].mxu1 %vm498_vm3, %v913_v11  ;;  %v6596_v11 = vld [vmem:[%s5945_s29 + $0x60] sm:$0xff]  }
 0x155   : > { %4893 = vmatprep.mubr.msk.bf16.mxu1 %vm5872_vm1, %v5871_v1  ;;  %v2726_v38 = vshll.u32 %v6596_v11, 16  ;;  %v2730_v21 = vshrl.u32 %v6596_v11, 16 }
 0x156   : > { %5168 = vmatmul.mubr.msk.bf16.gmra.mrb[4].mxu0 %vm498_vm3, %v2665_v16  ;;  %v5826_v16 = vld [vmem:[%s5945_s29 + $0x10] sm:$0xff]  }
 0x157   : > { %5171 = vmatprep.mubr.msk.bf16.mxu0 %vm5872_vm1, %v5871_v1  ;;  %v2728_v7 = vrot.slane %v2726_v38, 1 }
 0x159   : > { %v2732_v49 = vor.u32 %v2730_v21, %v2728_v7  ;;  %v5845_v21 = vld [vmem:[%s5945_s29 + $0x70] sm:$0xff]  }
 0x15c   : > { %4894 = vmatmul.mubr.msk.bf16.gmra.mrb[40].mxu1 %vm498_vm3, %v915_v17  ;;  %v5828_v17 = vld [vmem:[%s5945_s29 + $0x18] sm:$0xff]  }
 0x15d   : > { %4897 = vmatprep.mubr.msk.bf16.mxu1 %vm5872_vm1, %v5871_v1 }
 0x15e   : > { %5172 = vmatmul.mubr.msk.bf16.gmra.mrb[8].mxu0 %vm498_vm3, %v2673_v10 }
 0x15f   : > { %5175 = vmatprep.mubr.msk.bf16.mxu0 %vm5872_vm1, %v5871_v1 }
 0x164   : > { %4898 = vmatmul.mubr.msk.bf16.gmra.mrb[44].mxu1 %vm498_vm3, %v917_v41  ;;  %v5830_v41 = vld [vmem:[%s5945_s29 + $0x20] sm:$0xff]  }
 0x165   : > { %4901 = vmatprep.mubr.msk.bf16.mxu1 %vm5872_vm1, %v5871_v1 }
 0x166   : > { %5176 = vmatmul.mubr.msk.bf16.gmra.mrb[12].mxu0 %vm498_vm3, %v2681_v25  ;;  %v2737_v25 = vsel %vm374_vm2, %v2732_v49, %v2736_v19  ;;  %v5846_v49 = vld [vmem:[%s5945_s29 + $0x78] ss:$0 sps:$4 sm:$0xff]   ;;  %v1665_v19 = vshll.u32 %v6242_v29, 16 }
 0x167   : > { %5179 = vmatprep.mubr.msk.bf16.mxu0 %vm5872_vm1, %v5871_v1 }
 0x16c   : > { %4902 = vmatmul.mubr.msk.bf16.gmra.mrb[48].mxu1 %vm498_vm3, %v919_v61  ;;  %v5832_v61 = vld [vmem:[%s5945_s29 + $0x28] sm:$0xff]  }
 0x16d   : > { %4905 = vmatprep.mubr.msk.bf16.mxu1 %vm5872_vm1, %v5871_v1 }
 0x16e   : > { %5180 = vmatmul.mubr.msk.bf16.gmra.mrb[16].mxu0 %vm498_vm3, %v2689_v31  ;;  %v2745_v31 = vsel %vm374_vm2, %v2740_v58, %v2744_v46 }
 0x16f   : > { %5183 = vmatprep.mubr.msk.bf16.mxu0 %vm5872_vm1, %v5871_v1 }
 0x174   : > { %4906 = vmatmul.mubr.msk.bf16.gmra.mrb[52].mxu1 %vm498_vm3, %v921_v39  ;;  %v5834_v39 = vld [vmem:[%s5945_s29 + $0x30] sm:$0xff]  }
 0x175   : > { %4909 = vmatprep.mubr.msk.bf16.mxu1 %vm5872_vm1, %v5871_v1 }
 0x176   : > { %5184 = vmatmul.mubr.msk.bf16.gmra.mrb[20].mxu0 %vm498_vm3, %v2697_v6 }
 0x177   : > { %5187 = vmatprep.mubr.msk.bf16.mxu0 %vm5872_vm1, %v5871_v1 }
 0x17c   : > { %4910 = vmatmul.mubr.msk.bf16.gmra.mrb[56].mxu1 %vm498_vm3, %v920_v5  ;;  %v2748_v5 = vor.u32 %v2746_v24, %v2744_v46 }
 0x17d   : > { %4915 = vmatprep.mubr.msk.bf16.mxu1 %vm5872_vm1, %v5871_v1 }
 0x17e   : > { %5188 = vmatmul.mubr.msk.bf16.gmra.mrb[24].mxu0 %vm498_vm3, %v2705_v45  ;;  %v2753_v6 = vsel %vm374_vm2, %v2748_v5, %v2752_v57  ;;  %v5836_v45 = vld [vmem:[%s5945_s29 + $0x38] sm:$0xff]   ;;  %v1685_v57 = vshrl.u32 %v6270_v32, 16 }
 0x17f   : > { %5191 = vmatprep.mubr.msk.bf16.mxu0 %vm5872_vm1, %v5871_v1 }
 0x184   : > { %4916 = vmatmul.mubr.msk.bf16.vlgmr.msra.gmra.mrb[0].mxu1 %vm498_vm3, %v5824_v14  ;;  %v2764_v14 = vor.u32 %v2762_v51, %v2760_v47  ;;  %v1697_v47 = vshll.u32 %v6294_v40, 16 }
 0x185   : > { %4919 = vmatprep.mubr.msk.bf16.mxu1 %vm5872_vm1, %v5871_v1  ;;  %5286 = vmatpush3.bf16.msra.mxu1 %v5927_v2  ;;  %v2724_v2 = vor.u32 %v2722_v12, %v2720_v28  ;;  %v5842_v12 = vld [vmem:[%s5945_s29 + $0x58] sm:$0xff]  }
 0x186   : > { %5192 = vmatmul.mubr.msk.bf16.gmra.mrb[28].mxu0 %vm498_vm3, %v2713_v60  ;;  %v4492_v60 = vcombine.low %v2998_v27, %v6457_v4  ;;  %v3006_v4 = vrot.slane %v6483_v52, 1  ;;  %v3010_v52 = vrot.slane %v6515_v20, 1  ;;  %v3014_v20 = vrot.slane %v6543_v63, 1 }
 0x187   : > { %5195 = vmatprep.mubr.msk.bf16.mxu0 %vm5872_vm1, %v5871_v1  ;;  %v2729_v10 = vsel %vm374_vm2, %v2724_v2, %v2728_v7  ;;  %v5843_v2 = vld [vmem:[%s5945_s29 + $0x60] sm:$0xff]   ;;  %v1699_v51 = vrot.slane %v1697_v47, 1  ;;  %v1705_v27 = vshll.u32 %v6306_v43, 16 }
 0x188   : > { %v3003_v62 = vrot.slane %v4492_v60, 1  ;;  %v3009_v38 = vsel %vm892_vm4, %v3006_v4, %v3008_v35  ;;  %v3011_v7 = vsel %vm892_vm4, %v3008_v35, %v3010_v52  ;;  %v3015_v22 = vsel %vm892_vm4, %v3012_v8, %v3014_v20 }
 0x189   : > { %v3017_v63 = vsel %vm892_vm4, %v3014_v20, %v3016_v37 }
 0x18a   : > { %v3005_v28 = vsel %vm892_vm4, %v3003_v62, %v3004_v0  ;;  %v1707_v62 = vrot.slane %v1705_v27, 1 }
 0x18c   : > { %4920 = vmatmul.mubr.msk.bf16.gmra.mrb[4].mxu1 %vm498_vm3, %v5826_v16  ;;  %v5841_v16 = vld [vmem:[%s5945_s29 + $0x50] sm:$0xff]  }
 0x18d   : > { %4923 = vmatprep.mubr.msk.bf16.mxu1 %vm5872_vm1, %v5871_v1 }
 0x18e   : > { %5196 = vmatmul.mubr.msk.bf16.gmra.mrb[32].mxu0 %vm498_vm3, %v2721_v18  ;;  %v3007_v18 = vsel %vm892_vm4, %v3004_v0, %v3006_v4 }
 0x18f   : > { %5199 = vmatprep.mubr.msk.bf16.mxu0 %vm5872_vm1, %v5871_v1 }
 0x194   : > { %4924 = vmatmul.mubr.msk.bf16.gmra.mrb[8].mxu1 %vm498_vm3, %v5828_v17  ;;  %v5844_v17 = vld [vmem:[%s5945_s29 + $0x68] sm:$0xff]   ;;  %s5737_s29 = smul.u32 116, %s7095_s18 }
 0x195   : > { %4927 = vmatprep.mubr.msk.bf16.mxu1 %vm5872_vm1, %v5871_v1 }
 0x196   : > { %5200 = vmatmul.mubr.msk.bf16.gmra.mrb[36].mxu0 %vm498_vm3, %v2729_v10  ;;  %v3013_v10 = vsel %vm892_vm4, %v3010_v52, %v3012_v8  ;;  %s6876_s18 = scalar_lea.vmem %s7085_s3, %s5737_s29 }
 0x197   : > { %5203 = vmatprep.mubr.msk.bf16.mxu0 %vm5872_vm1, %v5871_v1 }
 0x19c   : > { %4928 = vmatmul.mubr.msk.bf16.gmra.mrb[12].mxu1 %vm498_vm3, %v5830_v41  ;;  %v1667_v41 = vrot.slane %v1665_v19, 1 }
 0x19d   : > { %4931 = vmatprep.mubr.msk.bf16.mxu1 %vm5872_vm1, %v5871_v1 }
 0x19e   : > { %5204 = vmatmul.mubr.msk.bf16.gmra.mrb[40].mxu0 %vm498_vm3, %v2737_v25  ;;  %v3018_v25 = vrot.slane %v6570_v48, 1  ;;  %v1668_v36 = vsel %vm374_vm2, %v6042_v15, %v1667_v41  ;;  %v1671_v46 = vor.u32 %v1669_v26, %v1667_v41  ;;  %v3020_v15 = vrot.slane %v6582_v59, 1 }
 0x19f   : > { %5207 = vmatprep.mubr.msk.bf16.mxu0 %vm5872_vm1, %v5871_v1  ;;  %v1677_v48 = vshrl.u32 %v6258_v9, 16  ;;  %v3022_v59 = vrot.slane %v6596_v11, 1  ;;  %v3024_v11 = vrot.slane %v6609_v13, 1  ;;  %v3026_v13 = vrot.slane %v6622_v23, 1 }
 0x1a0   : > { %v3019_v58 = vsel %vm892_vm4, %v3016_v37, %v3018_v25  ;;  %v3021_v24 = vsel %vm892_vm4, %v3018_v25, %v3020_v15  ;;  %v3028_v23 = vrot.slane %v6635_v56, 1 }
 0x1a2   : > { %v3029_v0 = vsel %vm892_vm4, %v3026_v13, %v3028_v23 }
 0x1a4   : > { %4932 = vmatmul.mubr.msk.bf16.gmra.mrb[16].mxu1 %vm498_vm3, %v5832_v61  ;;  %v1675_v61 = vrot.slane %v1673_v53, 1 }
 0x1a5   : > { %4935 = vmatprep.mubr.msk.bf16.mxu1 %vm5872_vm1, %v5871_v1 }
 0x1a6   : > { %5208 = vmatmul.mubr.msk.bf16.gmra.mrb[44].mxu0 %vm498_vm3, %v2745_v31  ;;  %v1676_v29 = vsel %vm374_vm2, %v1671_v46, %v1675_v61  ;;  %v1681_v31 = vshll.u32 %v6270_v32, 16  ;;  %v1679_v54 = vor.u32 %v1677_v48, %v1675_v61  ;;  %v3444_v46 = vlaneseq }
 0x1a7   : > { %5211 = vmatprep.mubr.msk.bf16.mxu0 %vm5872_vm1, %v5871_v1 }
 0x1a8   : > { %v1683_v5 = vrot.slane %v1681_v31, 1 }
 0x1aa   : > { %v1684_v9 = vsel %vm374_vm2, %v1679_v54, %v1683_v5  ;;  %v1687_v42 = vor.u32 %v1685_v57, %v1683_v5 }
 0x1ac   : > { %4936 = vmatmul.mubr.msk.bf16.gmra.mrb[20].mxu1 %vm498_vm3, %v5834_v39  ;;  %v1689_v39 = vshll.u32 %v6282_v34, 16 }
 0x1ad   : > { %4939 = vmatprep.mubr.msk.bf16.mxu1 %vm5872_vm1, %v5871_v1 }
 0x1ae   : > { %5212 = vmatmul.mubr.msk.bf16.gmra.mrb[48].mxu0 %vm498_vm3, %v2753_v6  ;;  %v3023_v6 = vsel %vm892_vm4, %v3020_v15, %v3022_v59  ;;  %v1691_v44 = vrot.slane %v1689_v39, 1  ;;  %v6869_v39 = vld [vmem:[%s7084_s2] ss:$0 sm:$0xff] }
 0x1af   : > { %5215 = vmatprep.mubr.msk.bf16.mxu0 %vm5872_vm1, %v5871_v1 }
 0x1b0   : > { %v1692_v32 = vsel %vm374_vm2, %v1687_v42, %v1691_v44 }
 0x1b4   : > { %4940 = vmatmul.mubr.msk.bf16.gmra.mrb[24].mxu1 %vm498_vm3, %v5836_v45  ;;  %v3025_v45 = vsel %vm892_vm4, %v3022_v59, %v3024_v11 }
 0x1b5   : > { %4943 = vmatprep.mubr.msk.bf16.mxu1 %vm5872_vm1, %v5871_v1 }
 0x1b6   : > { %5216 = vmatmul.mubr.msk.bf16.gmra.mrb[52].mxu0 %vm498_vm3, %v2761_v50  ;;  %v1695_v50 = vor.u32 %v1693_v30, %v1691_v44 }
 0x1b7   : > { %5219 = vmatprep.mubr.msk.bf16.mxu0 %vm5872_vm1, %v5871_v1 }
 0x1b8   : > { %v1700_v34 = vsel %vm374_vm2, %v1695_v50, %v1699_v51 }
 0x1bc   : > { %4944 = vmatmul.mubr.msk.bf16.gmra.mrb[28].mxu1 %vm498_vm3, %v5838_v55  ;;  %v1701_v55 = vshrl.u32 %v6294_v40, 16 }
 0x1bd   : > { %4947 = vmatprep.mubr.msk.bf16.mxu1 %vm5872_vm1, %v5871_v1 }
 0x1be   : > { %5220 = vmatmul.mubr.msk.bf16.gmra.mrb[56].mxu0 %vm498_vm3, %v2764_v14  ;;  %v3027_v14 = vsel %vm892_vm4, %v3024_v11, %v3026_v13  ;;  %v1703_v60 = vor.u32 %v1701_v55, %v1699_v51 }
 0x1bf   : > { %5225 = vmatprep.mubr.msk.bf16.mxu0 %vm5872_vm1, %v5871_v1 }
 0x1c0   : > { %v1708_v40 = vsel %vm374_vm2, %v1703_v60, %v1707_v62 }
 0x1c4   : > { %4948 = vmatmul.mubr.msk.bf16.gmra.mrb[32].mxu1 %vm498_vm3, %v5839_v3  ;;  %v1709_v3 = vshrl.u32 %v6306_v43, 16 }
 0x1c5   : > { %4951 = vmatprep.mubr.msk.bf16.mxu1 %vm5872_vm1, %v5871_v1 }
 0x1c6   : > { %5226 = vmatmul.mubr.msk.bf16.vlgmr.msra.gmra.mrb[0].mxu0 %vm498_vm3, %v3005_v28  ;;  %v3030_v28 = vrot.slane %v6648_v33, 1  ;;  %v1711_v4 = vor.u32 %v1709_v3, %v1707_v62 }
 0x1c7   : > { %5229 = vmatprep.mubr.msk.bf16.mxu0 %vm5872_vm1, %v5871_v1 }
 0x1c8   : > { %v3031_v56 = vsel %vm892_vm4, %v3028_v23, %v3030_v28 }
 0x1cc   : > { %4952 = vmatmul.mubr.msk.bf16.gmra.mrb[36].mxu1 %vm498_vm3, %v5841_v16 }
 0x1cd   : > { %4955 = vmatprep.mubr.msk.bf16.mxu1 %vm5872_vm1, %v5871_v1 }
 0x1ce   : > { %5230 = vmatmul.mubr.msk.bf16.gmra.mrb[4].mxu0 %vm498_vm3, %v3007_v18 }
 0x1cf   : > { %5233 = vmatprep.mubr.msk.bf16.mxu0 %vm5872_vm1, %v5871_v1 }
 0x1d4   : > { %4956 = vmatmul.mubr.msk.bf16.gmra.mrb[40].mxu1 %vm498_vm3, %v5842_v12 }
 0x1d5   : > { %4959 = vmatprep.mubr.msk.bf16.mxu1 %vm5872_vm1, %v5871_v1 }
 0x1d6   : > { %5234 = vmatmul.mubr.msk.bf16.gmra.mrb[8].mxu0 %vm498_vm3, %v3009_v38 }
 0x1d7   : > { %5237 = vmatprep.mubr.msk.bf16.mxu0 %vm5872_vm1, %v5871_v1 }
 0x1dc   : > { %4960 = vmatmul.mubr.msk.bf16.gmra.mrb[44].mxu1 %vm498_vm3, %v5843_v2 }
 0x1dd   : > { %4963 = vmatprep.mubr.msk.bf16.mxu1 %vm5872_vm1, %v5871_v1 }
 0x1de   : > { %5238 = vmatmul.mubr.msk.bf16.gmra.mrb[12].mxu0 %vm498_vm3, %v3011_v7 }
 0x1df   : > { %5241 = vmatprep.mubr.msk.bf16.mxu0 %vm5872_vm1, %v5871_v1 }
 0x1e4   : > { %4964 = vmatmul.mubr.msk.bf16.gmra.mrb[48].mxu1 %vm498_vm3, %v5844_v17 }
 0x1e5   : > { %4967 = vmatprep.mubr.msk.bf16.mxu1 %vm5872_vm1, %v5871_v1 }
 0x1e6   : > { %5242 = vmatmul.mubr.msk.bf16.gmra.mrb[16].mxu0 %vm498_vm3, %v3013_v10 }
 0x1e7   : > { %5245 = vmatprep.mubr.msk.bf16.mxu0 %vm5872_vm1, %v5871_v1 }
 0x1ec   : > { %4968 = vmatmul.mubr.msk.bf16.gmra.mrb[52].mxu1 %vm498_vm3, %v5845_v21 }
 0x1ed   : > { %4971 = vmatprep.mubr.msk.bf16.mxu1 %vm5872_vm1, %v5871_v1 }
 0x1ee   : > { %5246 = vmatmul.mubr.msk.bf16.gmra.mrb[20].mxu0 %vm498_vm3, %v3015_v22 }
 0x1ef   : > { %5249 = vmatprep.mubr.msk.bf16.mxu0 %vm5872_vm1, %v5871_v1 }
 0x1f4   : > { %4972 = vmatmul.mubr.msk.bf16.gmra.mrb[56].mxu1 %vm498_vm3, %v5846_v49 }
 0x1f5   : > { %5009 = vmatprep.mubr.msk.bf16.mxu1 %vm5872_vm1, %v5871_v1 }
 0x1f6   : > { %5250 = vmatmul.mubr.msk.bf16.gmra.mrb[24].mxu0 %vm498_vm3, %v3017_v63 }
 0x1f7   : > { %5253 = vmatprep.mubr.msk.bf16.mxu0 %vm5872_vm1, %v5871_v1 }
 0x1fc   : > { %5010 = vmatmul.mubr.msk.bf16.vlgmr.msra.gmra.mrb[32].mxu1 %vm498_vm3, %v1668_v36 }
 0x1fd   : > { %5013 = vmatprep.mubr.msk.bf16.mxu1 %vm5872_vm1, %v5871_v1 }
 0x1fe   : > { %5254 = vmatmul.mubr.msk.bf16.gmra.mrb[28].mxu0 %vm498_vm3, %v3019_v58 }
 0x1ff   : > { %5257 = vmatprep.mubr.msk.bf16.mxu0 %vm5872_vm1, %v5871_v1 }
 0x204   : > { %5014 = vmatmul.mubr.msk.bf16.gmra.mrb[36].mxu1 %vm498_vm3, %v1676_v29  ;;  %v6839_v29 = vshrl.u32 %v3444_v46, 7 }
 0x205   : > { %5017 = vmatprep.mubr.msk.bf16.mxu1 %vm5872_vm1, %v5871_v1 }
 0x206   : > { %5258 = vmatmul.mubr.msk.bf16.gmra.mrb[32].mxu0 %vm498_vm3, %v3021_v24  ;;  %v3446_v24 = vadd.s32 8, %v6839_v29  ;;  %v3450_v27 = vadd.s32 40, %v6839_v29 }
 0x207   : > { %5261 = vmatprep.mubr.msk.bf16.mxu0 %vm5872_vm1, %v5871_v1 }
 0x208   : > { %v3485_v59 = vand.u32 15, %v3446_v24 }
 0x20a   : > { %vm3823_vm6 = vcmp.lt.s32.totalorder %v3485_v59, 14 }
 0x20b   : > { %v4538_v11 = vsel %vm3823_vm6, 1.0, %v5871_v1 }
 0x20c   : > { %5018 = vmatmul.mubr.msk.bf16.gmra.mrb[40].mxu1 %vm498_vm3, %v1684_v9  ;;  %v3448_v9 = vadd.s32 24, %v6839_v29 }
 0x20d   : > { %5021 = vmatprep.mubr.msk.bf16.mxu1 %vm5872_vm1, %v5871_v1 }
 0x20e   : > { %5262 = vmatmul.mubr.msk.bf16.gmra.mrb[36].mxu0 %vm498_vm3, %v3023_v6 }
 0x20f   : > { %5265 = vmatprep.mubr.msk.bf16.mxu0 %vm5872_vm1, %v5871_v1 }
 0x214   : > { %5022 = vmatmul.mubr.msk.bf16.gmra.mrb[44].mxu1 %vm498_vm3, %v1692_v32  ;;  %v3499_v32 = vand.u32 15, %v3448_v9 }
 0x215   : > { %5025 = vmatprep.mubr.msk.bf16.mxu1 %vm5872_vm1, %v5871_v1 }
 0x216   : > { %5266 = vmatmul.mubr.msk.bf16.gmra.mrb[40].mxu0 %vm498_vm3, %v3025_v45  ;;  %vm6879_vm9 = vcmp.lt.s32.totalorder %v3499_v32, 14 }
 0x217   : > { %5269 = vmatprep.mubr.msk.bf16.mxu0 %vm5872_vm1, %v5871_v1 }
 0x21c   : > { %5026 = vmatmul.mubr.msk.bf16.gmra.mrb[48].mxu1 %vm498_vm3, %v1700_v34 }
 0x21d   : > { %5029 = vmatprep.mubr.msk.bf16.mxu1 %vm5872_vm1, %v5871_v1 }
 0x21e   : > { %5270 = vmatmul.mubr.msk.bf16.gmra.mrb[44].mxu0 %vm498_vm3, %v3027_v14 }
 0x21f   : > { %5273 = vmatprep.mubr.msk.bf16.mxu0 %vm5872_vm1, %v5871_v1 }
 0x224   : > { %5030 = vmatmul.mubr.msk.bf16.gmra.mrb[52].mxu1 %vm498_vm3, %v1708_v40 }
 0x225   : > { %5033 = vmatprep.mubr.msk.bf16.mxu1 %vm5872_vm1, %v5871_v1 }
 0x226   : > { %5274 = vmatmul.mubr.msk.bf16.gmra.mrb[48].mxu0 %vm498_vm3, %v3029_v0 }
 0x227   : > { %5277 = vmatprep.mubr.msk.bf16.mxu0 %vm5872_vm1, %v5871_v1 }
 0x22c   : > { %5034 = vmatmul.mubr.msk.bf16.gmra.mrb[56].mxu1 %vm498_vm3, %v1711_v4 }
 0x22e   : > { %5278 = vmatmul.mubr.msk.bf16.gmra.mrb[52].mxu0 %vm498_vm3, %v3031_v56 }
 0x22f   : > { %5281 = vmatprep.mubr.msk.bf16.mxu0 %vm5872_vm1, %v5871_v1 }
 0x236   : > { %5282 = vmatmul.mubr.msk.bf16.gmra.mrb[56].mxu0 %vm498_vm3, %v3030_v28 }
 0x257   : > { %v1340_v43 = vpop.f32.mrb[0].mxu1 }
 0x258   : > { %v4917_v16 = vpop.f32.mrb[1].mxu1 }
 0x259   : > { %v1343_v18 = vpop.f32.mrb[2].mxu1 }
 0x25a   : > { %v4918_v35 = vpop.f32.mrb[3].mxu1 }
 0x25b   : > { %v3513_v35 = vand.u32 15, %v3450_v27  ;;  %v3454_v27 = vadd.s32 72, %v6839_v29 }
 0x25d   : > { %vm3827_vm10 = vcmp.lt.s32.totalorder %v3513_v35, 14 }
 0x25f   : > { %v6815_v12 = vpop.f32.mrb[4].mxu1 }
 0x260   : > { %v4921_v38 = vpop.f32.mrb[5].mxu1 }
 0x261   : > { %v6817_v33 = vpop.f32.mrb[6].mxu1 }
 0x262   : > { %v4922_v52 = vpop.f32.mrb[7].mxu1 }
 0x267   : > { %v6819_v2 = vpop.f32.mrb[8].mxu1 }
 0x268   : > { %v4925_v7 = vpop.f32.mrb[9].mxu1 }
 0x269   : > { %v6821_v8 = vpop.f32.mrb[10].mxu1 }
 0x26a   : > { %v4926_v17 = vpop.f32.mrb[11].mxu1 }
 0x26f   : > { %v6823_v10 = vpop.f32.mrb[12].mxu1 }
 0x270   : > { %v4929_v20 = vpop.f32.mrb[13].mxu1 }
 0x271   : > { %v6825_v21 = vpop.f32.mrb[14].mxu1 }
 0x272   : > { %v4930_v22 = vpop.f32.mrb[15].mxu1 }
 0x277   : > { %v6827_v37 = vpop.f32.mrb[16].mxu1 }
 0x278   : > { %v4933_v49 = vpop.f32.mrb[17].mxu1 }
 0x279   : > { %v6829_v19 = vpop.f32.mrb[18].mxu1 }
 0x27a   : > { %v4934_v63 = vpop.f32.mrb[19].mxu1 }
 0x27f   : > { %v6831_v41 = vpop.f32.mrb[20].mxu1 }
 0x280   : > { %v4937_v25 = vpop.f32.mrb[21].mxu1 }
 0x281   : > { %v6833_v36 = vpop.f32.mrb[22].mxu1 }
 0x282   : > { %v4938_v26 = vpop.f32.mrb[23].mxu1 }
 0x287   : > { %v6835_v53 = vpop.f32.mrb[24].mxu1 }
 0x288   : > { %v4941_v58 = vpop.f32.mrb[25].mxu1 }
 0x289   : > { %v6837_v61 = vpop.f32.mrb[26].mxu1  ;;  %v3452_v58 = vadd.s32 56, %v6839_v29 }
 0x28a   : > { %v4942_v15 = vpop.f32.mrb[27].mxu1 }
 0x28f   : > { %v6853_v48 = vpop.f32.mrb[28].mxu1 }
 0x290   : > { %v4945_v31 = vpop.f32.mrb[29].mxu1 }
 0x291   : > { %v6856_v54 = vpop.f32.mrb[30].mxu1 }
 0x292   : > { %v4946_v5 = vpop.f32.mrb[31].mxu1 }
 0x299   : > { %v3114_v57 = vpop.f32.mrb[0].mxu0 }
 0x29a   : > { %v5287_v6 = vadd.f32 %v3114_v57, %v1340_v43  ;;  %v5227_v42 = vpop.f32.mrb[1].mxu0 }
 0x29b   : > { %v3117_v44 = vpop.f32.mrb[2].mxu0  ;;  %v4540_v42 = vsel %vm3827_vm10, 1.0, %v5871_v1 }
 0x29c   : > { %v3268_v30 = vadd.f32 %v5287_v6, %v6869_v39  ;;  %v5288_v47 = vadd.f32 %v3117_v44, %v1343_v18  ;;  %v5228_v45 = vpop.f32.mrb[3].mxu0  ;;  %v4072_v51 = vmul.f32 %v5287_v6, %v5287_v6  ;;  %v4005_v14 = vsel %vm4004_vm8, %v5287_v6, 0.0 }
 0x29d   : > { %v4539_v18 = vsel %vm6879_vm9, 1.0, %v5871_v1  ;;  %v3527_v44 = vand.u32 15, %v3452_v58 }
 0x29e   : > { %v4554_v50 = vpack.c.bf16 %v3268_v30, %v3268_v30  ;;  %v3269_v13 = vadd.f32 %v5288_v47, %v6869_v39  ;;  %v3968_v34 = vmul.f32 %v5288_v47, %v4538_v11  ;;  %v4101_v3 = vsel %vm4004_vm8, %v4072_v51, 0.0 }
 0x29f   : > { %vm3829_vm11 = vcmp.lt.s32.totalorder %v3527_v44, 14 }
 0x2a0   : > { %3415 = vst.msk [vmem:[%s6876_s18] sm:$0xf] %vm3414_vm7, %v4554_v50  ;;  %v4555_v60 = vpack.c.bf16 %v3269_v13, %v3269_v13  ;;  %v4006_v62 = vsel %vm4004_vm8, %v3968_v34, 0.0  ;;  %v4073_v23 = vmul.f32 %v5288_v47, %v3968_v34 }
 0x2a1   : > { %v3122_v40 = vpop.f32.mrb[4].mxu0  ;;  %v4007_v0 = vadd.f32 %v4006_v62, %v4005_v14 }
 0x2a2   : > { %3416 = vst.msk [vmem:[%s6876_s18 + $0x4] sm:$0xf] %vm3414_vm7, %v4555_v60  ;;  %v4102_v28 = vsel %vm4004_vm8, %v4073_v23, 0.0  ;;  %v5289_v4 = vadd.f32 %v3122_v40, %v6815_v12  ;;  %v5231_v56 = vpop.f32.mrb[5].mxu0 }
 0x2a3   : > { %v4103_v43 = vadd.f32 %v4102_v28, %v4101_v3  ;;  %v3125_v16 = vpop.f32.mrb[6].mxu0  ;;  %v4541_v56 = vsel %vm3829_vm11, 1.0, %v5871_v1 }
 0x2a4   : > { %v3270_v38 = vadd.f32 %v5289_v4, %v6869_v39  ;;  %v4008_v52 = vsel %vm4004_vm8, %v5289_v4, 0.0  ;;  %v4074_v7 = vmul.f32 %v5289_v4, %v5289_v4  ;;  %v5290_v17 = vadd.f32 %v3125_v16, %v6817_v33  ;;  %v5232_v20 = vpop.f32.mrb[7].mxu0 }
 0x2a5   : > { %v4009_v22 = vadd.f32 %v4008_v52, %v4007_v0 }
 0x2a6   : > { %v4556_v12 = vpack.c.bf16 %v3270_v38, %v3270_v38  ;;  %v4104_v49 = vsel %vm4004_vm8, %v4074_v7, 0.0  ;;  %v3271_v63 = vadd.f32 %v5290_v17, %v6869_v39  ;;  %v3970_v25 = vmul.f32 %v5290_v17, %v4539_v18 }
 0x2a7   : > { %v4105_v26 = vadd.f32 %v4104_v49, %v4103_v43  ;;  %v3541_v43 = vand.u32 15, %v3454_v27  ;;  %v3456_v49 = vadd.s32 88, %v6839_v29 }
 0x2a8   : > { %3417 = vst.msk [vmem:[%s6876_s18 + $0x8] sm:$0xf] %vm3414_vm7, %v4556_v12  ;;  %v4557_v46 = vpack.c.bf16 %v3271_v63, %v3271_v63  ;;  %v4010_v15 = vsel %vm4004_vm8, %v3970_v25, 0.0  ;;  %v4075_v31 = vmul.f32 %v5290_v17, %v3970_v25 }
 0x2a9   : > { %v3130_v33 = vpop.f32.mrb[8].mxu0  ;;  %v4011_v24 = vadd.f32 %v4010_v15, %v4009_v22  ;;  %vm3831_vm12 = vcmp.lt.s32.totalorder %v3541_v43, 14 }
 0x2aa   : > { %3418 = vst.msk [vmem:[%s6876_s18 + $0xc] sm:$0xf] %vm3414_vm7, %v4557_v46  ;;  %v4106_v5 = vsel %vm4004_vm8, %v4075_v31, 0.0  ;;  %v5291_v59 = vadd.f32 %v3130_v33, %v6819_v2  ;;  %v5235_v9 = vpop.f32.mrb[9].mxu0 }
 0x2ab   : > { %v4107_v57 = vadd.f32 %v4106_v5, %v4105_v26  ;;  %v3133_v6 = vpop.f32.mrb[10].mxu0  ;;  %v4542_v5 = vsel %vm3831_vm12, 1.0, %v5871_v1 }
 0x2ac   : > { %v3272_v11 = vadd.f32 %v5291_v59, %v6869_v39  ;;  %v4012_v32 = vsel %vm4004_vm8, %v5291_v59, 0.0  ;;  %v4076_v30 = vmul.f32 %v5291_v59, %v5291_v59  ;;  %v5292_v47 = vadd.f32 %v3133_v6, %v6821_v8  ;;  %v5236_v45 = vpop.f32.mrb[11].mxu0 }
 0x2ad   : > { %v4013_v50 = vadd.f32 %v4012_v32, %v4011_v24  ;;  %v3555_v59 = vand.u32 15, %v3456_v49 }
 0x2ae   : > { %v4558_v51 = vpack.c.bf16 %v3272_v11, %v3272_v11  ;;  %v4108_v2 = vsel %vm4004_vm8, %v4076_v30, 0.0  ;;  %v3273_v13 = vadd.f32 %v5292_v47, %v6869_v39  ;;  %v3972_v34 = vmul.f32 %v5292_v47, %v4540_v42 }
 0x2af   : > { %v4109_v55 = vadd.f32 %v4108_v2, %v4107_v57  ;;  %vm3833_vm13 = vcmp.lt.s32.totalorder %v3555_v59, 14 }
 0x2b0   : > { %3419 = vst.msk [vmem:[%s6876_s18 + $0x10] sm:$0xf] %vm3414_vm7, %v4558_v51  ;;  %v4559_v14 = vpack.c.bf16 %v3273_v13, %v3273_v13  ;;  %v4014_v60 = vsel %vm4004_vm8, %v3972_v34, 0.0  ;;  %v4077_v62 = vmul.f32 %v5292_v47, %v3972_v34 }
 0x2b1   : > { %v3138_v8 = vpop.f32.mrb[12].mxu0  ;;  %v4015_v23 = vadd.f32 %v4014_v60, %v4013_v50  ;;  %v3458_v50 = vadd.s32 104, %v6839_v29 }
 0x2b2   : > { %3420 = vst.msk [vmem:[%s6876_s18 + $0x14] sm:$0xf] %vm3414_vm7, %v4559_v14  ;;  %v4110_v40 = vsel %vm4004_vm8, %v4077_v62, 0.0  ;;  %v5293_v0 = vadd.f32 %v3138_v8, %v6823_v10  ;;  %v5239_v3 = vpop.f32.mrb[13].mxu0  ;;  %v4543_v8 = vsel %vm3833_vm13, 1.0, %v5871_v1 }
 0x2b3   : > { %v4111_v28 = vadd.f32 %v4110_v40, %v4109_v55  ;;  %v3141_v4 = vpop.f32.mrb[14].mxu0 }
 0x2b4   : > { %v3274_v16 = vadd.f32 %v5293_v0, %v6869_v39  ;;  %v4016_v18 = vsel %vm4004_vm8, %v5293_v0, 0.0  ;;  %v4078_v35 = vmul.f32 %v5293_v0, %v5293_v0  ;;  %v5294_v38 = vadd.f32 %v3141_v4, %v6825_v21  ;;  %v5240_v52 = vpop.f32.mrb[15].mxu0 }
 0x2b5   : > { %v4017_v7 = vadd.f32 %v4016_v18, %v4015_v23  ;;  %v3569_v23 = vand.u32 15, %v3458_v50 }
 0x2b6   : > { %v4560_v17 = vpack.c.bf16 %v3274_v16, %v3274_v16  ;;  %v4112_v10 = vsel %vm4004_vm8, %v4078_v35, 0.0  ;;  %v3275_v20 = vadd.f32 %v5294_v38, %v6869_v39  ;;  %v3974_v22 = vmul.f32 %v5294_v38, %v4541_v56 }
 0x2b7   : > { %v4113_v12 = vadd.f32 %v4112_v10, %v4111_v28  ;;  %vm3835_vm14 = vcmp.lt.s32.totalorder %v3569_v23, 14 }
 0x2b8   : > { %3421 = vst.msk [vmem:[%s6876_s18 + $0x18] sm:$0xf] %vm3414_vm7, %v4560_v17  ;;  %v4561_v63 = vpack.c.bf16 %v3275_v20, %v3275_v20  ;;  %v4018_v25 = vsel %vm4004_vm8, %v3974_v22, 0.0  ;;  %v4079_v26 = vmul.f32 %v5294_v38, %v3974_v22  ;;  %v3460_v38 = vadd.s32 120, %v6839_v29 }
 0x2b9   : > { %v3146_v21 = vpop.f32.mrb[16].mxu0  ;;  %v4019_v58 = vadd.f32 %v4018_v25, %v4017_v7  ;;  %v4544_v25 = vsel %vm3835_vm14, 1.0, %v5871_v1 }
 0x2ba   : > { %3422 = vst.msk [vmem:[%s6876_s18 + $0x1c] sm:$0xf] %vm3414_vm7, %v4561_v63  ;;  %v4114_v46 = vsel %vm4004_vm8, %v4079_v26, 0.0  ;;  %v5295_v15 = vadd.f32 %v3146_v21, %v6827_v37  ;;  %v5243_v31 = vpop.f32.mrb[17].mxu0  ;;  %v3583_v26 = vand.u32 15, %v3460_v38 }
 0x2bb   : > { %v4115_v33 = vadd.f32 %v4114_v46, %v4113_v12  ;;  %v3149_v24 = vpop.f32.mrb[18].mxu0 }
 0x2bc   : > { %v3276_v9 = vadd.f32 %v5295_v15, %v6869_v39  ;;  %v4020_v57 = vsel %vm4004_vm8, %v5295_v15, 0.0  ;;  %v4080_v6 = vmul.f32 %v5295_v15, %v5295_v15  ;;  %v5296_v42 = vadd.f32 %v3149_v24, %v6829_v19  ;;  %v5244_v44 = vpop.f32.mrb[19].mxu0 }
 0x2bd   : > { %v4021_v11 = vadd.f32 %v4020_v57, %v4019_v58  ;;  %vm3837_vm15 = vcmp.lt.s32.totalorder %v3583_v26, 14 }
 0x2be   : > { %v4562_v32 = vpack.c.bf16 %v3276_v9, %v3276_v9  ;;  %v4116_v37 = vsel %vm4004_vm8, %v4080_v6, 0.0  ;;  %v3277_v30 = vadd.f32 %v5296_v42, %v6869_v39  ;;  %v3976_v47 = vmul.f32 %v5296_v42, %v4542_v5 }
 0x2bf   : > { %v4117_v45 = vadd.f32 %v4116_v37, %v4115_v33  ;;  %v3462_v6 = vadd.s32 136, %v6839_v29 }
 0x2c0   : > { %3423 = vst.msk [vmem:[%s6876_s18 + $0x20] sm:$0xf] %vm3414_vm7, %v4562_v32  ;;  %v4563_v51 = vpack.c.bf16 %v3277_v30, %v3277_v30  ;;  %v4022_v2 = vsel %vm4004_vm8, %v3976_v47, 0.0  ;;  %v4081_v13 = vmul.f32 %v5296_v42, %v3976_v47 }
 0x2c1   : > { %v3154_v19 = vpop.f32.mrb[20].mxu0  ;;  %v4023_v34 = vadd.f32 %v4022_v2, %v4021_v11 }
 0x2c2   : > { %3424 = vst.msk [vmem:[%s6876_s18 + $0x24] sm:$0xf] %vm3414_vm7, %v4563_v51  ;;  %v4118_v55 = vsel %vm4004_vm8, %v4081_v13, 0.0  ;;  %v5297_v27 = vadd.f32 %v3154_v19, %v6831_v41  ;;  %v5247_v14 = vpop.f32.mrb[21].mxu0  ;;  %v4545_v19 = vsel %vm3837_vm15, 1.0, %v5871_v1 }
 0x2c3   : > { %v4119_v60 = vadd.f32 %v4118_v55, %v4117_v45  ;;  %v3157_v62 = vpop.f32.mrb[22].mxu0 }
 0x2c4   : > { %v3278_v40 = vadd.f32 %v5297_v27, %v6869_v39  ;;  %v4024_v0 = vsel %vm4004_vm8, %v5297_v27, 0.0  ;;  %v4082_v3 = vmul.f32 %v5297_v27, %v5297_v27  ;;  %v5298_v28 = vadd.f32 %v3157_v62, %v6833_v36  ;;  %v5248_v4 = vpop.f32.mrb[23].mxu0 }
 0x2c5   : > { %v4025_v56 = vadd.f32 %v4024_v0, %v4023_v34  ;;  %v3597_v34 = vand.u32 15, %v3462_v6  ;;  %v3464_v4 = vadd.s32 152, %v6839_v29 }
 0x2c6   : > { %v4564_v43 = vpack.c.bf16 %v3278_v40, %v3278_v40  ;;  %v4120_v41 = vsel %vm4004_vm8, %v4082_v3, 0.0  ;;  %v3279_v16 = vadd.f32 %v5298_v28, %v6869_v39  ;;  %v3978_v18 = vmul.f32 %v5298_v28, %v4543_v8 }
 0x2c7   : > { %v4121_v35 = vadd.f32 %v4120_v41, %v4119_v60  ;;  %vm3839_vm0 = vcmp.lt.s32.totalorder %v3597_v34, 14 }
 0x2c8   : > { %3425 = vst.msk [vmem:[%s6876_s18 + $0x28] sm:$0xf] %vm3414_vm7, %v4564_v43  ;;  %v4565_v52 = vpack.c.bf16 %v3279_v16, %v3279_v16  ;;  %v4026_v7 = vsel %vm4004_vm8, %v3978_v18, 0.0  ;;  %v4083_v17 = vmul.f32 %v5298_v28, %v3978_v18 }
 0x2c9   : > { %v3162_v36 = vpop.f32.mrb[24].mxu0  ;;  %v4027_v10 = vadd.f32 %v4026_v7, %v4025_v56 }
 0x2ca   : > { %3426 = vst.msk [vmem:[%s6876_s18 + $0x2c] sm:$0xf] %vm3414_vm7, %v4565_v52  ;;  %v4122_v20 = vsel %vm4004_vm8, %v4083_v17, 0.0  ;;  %v5299_v22 = vadd.f32 %v3162_v36, %v6835_v53  ;;  %v5251_v12 = vpop.f32.mrb[25].mxu0 }
 0x2cb   : > { %v4123_v49 = vadd.f32 %v4122_v20, %v4121_v35  ;;  %v3165_v63 = vpop.f32.mrb[26].mxu0  ;;  %v4546_v20 = vsel %vm3839_vm0, 1.0, %v5871_v1 }
 0x2cc   : > { %v3280_v21 = vadd.f32 %v5299_v22, %v6869_v39  ;;  %v4028_v58 = vsel %vm4004_vm8, %v5299_v22, 0.0  ;;  %v4084_v46 = vmul.f32 %v5299_v22, %v5299_v22  ;;  %v5300_v15 = vadd.f32 %v3165_v63, %v6837_v61  ;;  %v5252_v31 = vpop.f32.mrb[27].mxu0 }
 0x2cd   : > { %v4029_v33 = vadd.f32 %v4028_v58, %v4027_v10  ;;  %v3611_v22 = vand.u32 15, %v3464_v4 }
 0x2ce   : > { %v4566_v24 = vpack.c.bf16 %v3280_v21, %v3280_v21  ;;  %v4124_v53 = vsel %vm4004_vm8, %v4084_v46, 0.0  ;;  %v3281_v5 = vadd.f32 %v5300_v15, %v6869_v39  ;;  %v3980_v59 = vmul.f32 %v5300_v15, %v4544_v25 }
 0x2cf   : > { %v4125_v9 = vadd.f32 %v4124_v53, %v4123_v49  ;;  %v1858_v57 = vpop.f32.mrb[32].mxu1  ;;  %v3466_v53 = vadd.s32 168, %v6839_v29  ;;  %vm3841_vm1 = vcmp.lt.s32.totalorder %v3611_v22, 14 }
 0x2d0   : > { %3427 = vst.msk [vmem:[%s6876_s18 + $0x30] sm:$0xf] %vm3414_vm7, %v4566_v24  ;;  %v4567_v42 = vpack.c.bf16 %v3281_v5, %v3281_v5  ;;  %v4030_v44 = vsel %vm4004_vm8, %v3980_v59, 0.0  ;;  %v4085_v11 = vmul.f32 %v5300_v15, %v3980_v59  ;;  %v5011_v61 = vpop.f32.mrb[33].mxu1 }
 0x2d1   : > { %v3170_v32 = vpop.f32.mrb[28].mxu0  ;;  %v4031_v37 = vadd.f32 %v4030_v44, %v4029_v33  ;;  %v1861_v30 = vpop.f32.mrb[34].mxu1 }
 0x2d2   : > { %3428 = vst.msk [vmem:[%s6876_s18 + $0x34] sm:$0xf] %vm3414_vm7, %v4567_v42  ;;  %v4126_v47 = vsel %vm4004_vm8, %v4085_v11, 0.0  ;;  %v5301_v45 = vadd.f32 %v3170_v32, %v6853_v48  ;;  %v5255_v50 = vpop.f32.mrb[29].mxu0  ;;  %v5012_v51 = vpop.f32.mrb[35].mxu1 }
 0x2d3   : > { %v4127_v2 = vadd.f32 %v4126_v47, %v4125_v9  ;;  %v3173_v13 = vpop.f32.mrb[30].mxu0  ;;  %v3625_v50 = vand.u32 15, %v3466_v53 }
 0x2d4   : > { %v3282_v55 = vadd.f32 %v5301_v45, %v6869_v39  ;;  %v4032_v27 = vsel %vm4004_vm8, %v5301_v45, 0.0  ;;  %v4086_v14 = vmul.f32 %v5301_v45, %v5301_v45  ;;  %v5302_v60 = vadd.f32 %v3173_v13, %v6856_v54  ;;  %v5256_v62 = vpop.f32.mrb[31].mxu0 }
 0x2d5   : > { %v4033_v8 = vadd.f32 %v4032_v27, %v4031_v37  ;;  %v4547_v45 = vsel %vm3841_vm1, 1.0, %v5871_v1  ;;  %vm3843_vm2 = vcmp.lt.s32.totalorder %v3625_v50, 14 }
 0x2d6   : > { %v4568_v23 = vpack.c.bf16 %v3282_v55, %v3282_v55  ;;  %v4128_v48 = vsel %vm4004_vm8, %v4086_v14, 0.0  ;;  %v3283_v40 = vadd.f32 %v5302_v60, %v6869_v39  ;;  %v3982_v0 = vmul.f32 %v5302_v60, %v4545_v19 }
 0x2d7   : > { %v4129_v3 = vadd.f32 %v4128_v48, %v4127_v2  ;;  %v1866_v28 = vpop.f32.mrb[36].mxu1  ;;  %v3468_v48 = vadd.s32 184, %v6839_v29 }
 0x2d8   : > { %3429 = vst.msk [vmem:[%s6876_s18 + $0x38] sm:$0xf] %vm3414_vm7, %v4568_v23  ;;  %v4569_v56 = vpack.c.bf16 %v3283_v40, %v3283_v40  ;;  %v4034_v43 = vsel %vm4004_vm8, %v3982_v0, 0.0  ;;  %v4087_v41 = vmul.f32 %v5302_v60, %v3982_v0  ;;  %v5015_v54 = vpop.f32.mrb[37].mxu1 }
 0x2d9   : > { %v3178_v16 = vpop.f32.mrb[32].mxu0  ;;  %v4035_v18 = vadd.f32 %v4034_v43, %v4033_v8  ;;  %v1869_v35 = vpop.f32.mrb[38].mxu1 }
 0x2da   : > { %3430 = vst.msk [vmem:[%s6876_s18 + $0x3c] sm:$0xf] %vm3414_vm7, %v4569_v56  ;;  %v4130_v38 = vsel %vm4004_vm8, %v4087_v41, 0.0  ;;  %v5303_v52 = vadd.f32 %v3178_v16, %v1858_v57  ;;  %v5259_v7 = vpop.f32.mrb[33].mxu0  ;;  %v5016_v17 = vpop.f32.mrb[39].mxu1 }
 0x2db   : > { %v4131_v36 = vadd.f32 %v4130_v38, %v4129_v3  ;;  %v3181_v10 = vpop.f32.mrb[34].mxu0  ;;  %v3639_v7 = vand.u32 15, %v3468_v48 }
 0x2dc   : > { %v3284_v12 = vadd.f32 %v5303_v52, %v6869_v39  ;;  %v4036_v49 = vsel %vm4004_vm8, %v5303_v52, 0.0  ;;  %v4088_v63 = vmul.f32 %v5303_v52, %v5303_v52  ;;  %v5304_v25 = vadd.f32 %v3181_v10, %v1861_v30  ;;  %v5260_v26 = vpop.f32.mrb[35].mxu0 }
 0x2dd   : > { %v4037_v21 = vadd.f32 %v4036_v49, %v4035_v18  ;;  %v4548_v52 = vsel %vm3843_vm2, 1.0, %v5871_v1  ;;  %vm3845_vm3 = vcmp.lt.s32.totalorder %v3639_v7, 14 }
 0x2de   : > { %v4570_v58 = vpack.c.bf16 %v3284_v12, %v3284_v12  ;;  %v4132_v46 = vsel %vm4004_vm8, %v4088_v63, 0.0  ;;  %v3285_v15 = vadd.f32 %v5304_v25, %v6869_v39  ;;  %v3984_v31 = vmul.f32 %v5304_v25, %v4546_v20 }
 0x2df   : > { %v4133_v33 = vadd.f32 %v4132_v46, %v4131_v36  ;;  %v1874_v24 = vpop.f32.mrb[40].mxu1  ;;  %v3470_v46 = vadd.s32 200, %v6839_v29 }
 0x2e0   : > { %3431 = vst.msk [vmem:[%s6876_s18 + $0x40] sm:$0xf] %vm3414_vm7, %v4570_v58  ;;  %v4571_v5 = vpack.c.bf16 %v3285_v15, %v3285_v15  ;;  %v4038_v59 = vsel %vm4004_vm8, %v3984_v31, 0.0  ;;  %v4089_v9 = vmul.f32 %v5304_v25, %v3984_v31  ;;  %v5019_v57 = vpop.f32.mrb[41].mxu1 }
 0x2e1   : > { %v3186_v6 = vpop.f32.mrb[36].mxu0  ;;  %v4039_v42 = vadd.f32 %v4038_v59, %v4037_v21  ;;  %v1877_v44 = vpop.f32.mrb[42].mxu1 }
 0x2e2   : > { %3432 = vst.msk [vmem:[%s6876_s18 + $0x44] sm:$0xf] %vm3414_vm7, %v4571_v5  ;;  %v4134_v11 = vsel %vm4004_vm8, %v4089_v9, 0.0  ;;  %v5305_v61 = vadd.f32 %v3186_v6, %v1866_v28  ;;  %v5263_v32 = vpop.f32.mrb[37].mxu0  ;;  %v5020_v37 = vpop.f32.mrb[43].mxu1 }
 0x2e3   : > { %v4135_v30 = vadd.f32 %v4134_v11, %v4133_v33  ;;  %v3189_v47 = vpop.f32.mrb[38].mxu0  ;;  %v3653_v32 = vand.u32 15, %v3470_v46 }
 0x2e4   : > { %v3286_v51 = vadd.f32 %v5305_v61, %v6869_v39  ;;  %v4040_v2 = vsel %vm4004_vm8, %v5305_v61, 0.0  ;;  %v4090_v13 = vmul.f32 %v5305_v61, %v5305_v61  ;;  %v5306_v19 = vadd.f32 %v3189_v47, %v1869_v35  ;;  %v5264_v34 = vpop.f32.mrb[39].mxu0 }
 0x2e5   : > { %v4041_v55 = vadd.f32 %v4040_v2, %v4039_v42  ;;  %v4549_v61 = vsel %vm3845_vm3, 1.0, %v5871_v1  ;;  %v3472_v2 = vadd.s32 216, %v6839_v29  ;;  %vm3847_vm4 = vcmp.lt.s32.totalorder %v3653_v32, 14 }
 0x2e6   : > { %v4572_v27 = vpack.c.bf16 %v3286_v51, %v3286_v51  ;;  %v4136_v14 = vsel %vm4004_vm8, %v4090_v13, 0.0  ;;  %v3287_v60 = vadd.f32 %v5306_v19, %v6869_v39  ;;  %v3986_v62 = vmul.f32 %v5306_v19, %v4547_v45 }
 0x2e7   : > { %v4137_v8 = vadd.f32 %v4136_v14, %v4135_v30  ;;  %v1882_v23 = vpop.f32.mrb[44].mxu1  ;;  %vm3878_vm9 = vcmp.lt.s32.totalorder %v3472_v2, 222 }
 0x2e8   : > { %3433 = vst.msk [vmem:[%s6876_s18 + $0x48] sm:$0xf] %vm3414_vm7, %v4572_v27  ;;  %v4573_v40 = vpack.c.bf16 %v3287_v60, %v3287_v60  ;;  %v4042_v0 = vsel %vm4004_vm8, %v3986_v62, 0.0  ;;  %v4091_v3 = vmul.f32 %v5306_v19, %v3986_v62  ;;  %v5023_v28 = vpop.f32.mrb[45].mxu1 }
 0x2e9   : > { %v3194_v4 = vpop.f32.mrb[40].mxu0  ;;  %v4043_v56 = vadd.f32 %v4042_v0, %v4041_v55  ;;  %v1885_v43 = vpop.f32.mrb[46].mxu1  ;;  %v3667_v0 = vand.u32 15, %v3472_v2 }
 0x2ea   : > { %3434 = vst.msk [vmem:[%s6876_s18 + $0x4c] sm:$0xf] %vm3414_vm7, %v4573_v40  ;;  %v4138_v41 = vsel %vm4004_vm8, %v4091_v3, 0.0  ;;  %v5307_v54 = vadd.f32 %v3194_v4, %v1874_v24  ;;  %v5267_v16 = vpop.f32.mrb[41].mxu0  ;;  %v5024_v18 = vpop.f32.mrb[47].mxu1 }
 0x2eb   : > { %v4139_v35 = vadd.f32 %v4138_v41, %v4137_v8  ;;  %v3197_v38 = vpop.f32.mrb[42].mxu0  ;;  %vm3849_vm6 = vcmp.lt.s32.totalorder %v3667_v0, 14 }
 0x2ec   : > { %v3288_v17 = vadd.f32 %v5307_v54, %v6869_v39  ;;  %v4044_v36 = vsel %vm4004_vm8, %v5307_v54, 0.0  ;;  %v4092_v10 = vmul.f32 %v5307_v54, %v5307_v54  ;;  %v5308_v20 = vadd.f32 %v3197_v38, %v1877_v44  ;;  %v5268_v22 = vpop.f32.mrb[43].mxu0  ;;  %vm3907_vm10 = vmand %vm3849_vm6, %vm3878_vm9 }
 0x2ed   : > { %v4045_v12 = vadd.f32 %v4044_v36, %v4043_v56  ;;  %v4550_v54 = vsel %vm3847_vm4, 1.0, %v5871_v1 }
 0x2ee   : > { %v4574_v49 = vpack.c.bf16 %v3288_v17, %v3288_v17  ;;  %v4140_v63 = vsel %vm4004_vm8, %v4092_v10, 0.0  ;;  %v3289_v25 = vadd.f32 %v5308_v20, %v6869_v39  ;;  %v3988_v26 = vmul.f32 %v5308_v20, %v4548_v52 }
 0x2ef   : > { %v4141_v21 = vadd.f32 %v4140_v63, %v4139_v35  ;;  %v1890_v58 = vpop.f32.mrb[48].mxu1 }
 0x2f0   : > { %3435 = vst.msk [vmem:[%s6876_s18 + $0x50] sm:$0xf] %vm3414_vm7, %v4574_v49  ;;  %v4575_v15 = vpack.c.bf16 %v3289_v25, %v3289_v25  ;;  %v4046_v31 = vsel %vm4004_vm8, %v3988_v26, 0.0  ;;  %v4093_v33 = vmul.f32 %v5308_v20, %v3988_v26  ;;  %v5027_v24 = vpop.f32.mrb[49].mxu1 }
 0x2f1   : > { %v3202_v53 = vpop.f32.mrb[44].mxu0  ;;  %v4047_v5 = vadd.f32 %v4046_v31, %v4045_v12  ;;  %v1893_v59 = vpop.f32.mrb[50].mxu1 }
 0x2f2   : > { %3436 = vst.msk [vmem:[%s6876_s18 + $0x54] sm:$0xf] %vm3414_vm7, %v4575_v15  ;;  %v4142_v9 = vsel %vm4004_vm8, %v4093_v33, 0.0  ;;  %v5309_v57 = vadd.f32 %v3202_v53, %v1882_v23  ;;  %v5271_v6 = vpop.f32.mrb[45].mxu0  ;;  %v5028_v42 = vpop.f32.mrb[51].mxu1 }
 0x2f3   : > { %v4143_v44 = vadd.f32 %v4142_v9, %v4141_v21  ;;  %v3205_v11 = vpop.f32.mrb[46].mxu0 }
 0x2f4   : > { %v3290_v37 = vadd.f32 %v5309_v57, %v6869_v39  ;;  %v4048_v30 = vsel %vm4004_vm8, %v5309_v57, 0.0  ;;  %v4094_v47 = vmul.f32 %v5309_v57, %v5309_v57  ;;  %v5310_v45 = vadd.f32 %v3205_v11, %v1885_v43  ;;  %v5272_v50 = vpop.f32.mrb[47].mxu0 }
 0x2f5   : > { %v4049_v51 = vadd.f32 %v4048_v30, %v4047_v5 }
 0x2f6   : > { %v4576_v13 = vpack.c.bf16 %v3290_v37, %v3290_v37  ;;  %v4144_v19 = vsel %vm4004_vm8, %v4094_v47, 0.0  ;;  %v3291_v34 = vadd.f32 %v5310_v45, %v6869_v39  ;;  %v3990_v55 = vmul.f32 %v5310_v45, %v4549_v61 }
 0x2f7   : > { %v4145_v27 = vadd.f32 %v4144_v19, %v4143_v44  ;;  %v1898_v14 = vpop.f32.mrb[52].mxu1 }
 0x2f8   : > { %3437 = vst.msk [vmem:[%s6876_s18 + $0x58] sm:$0xf] %vm3414_vm7, %v4576_v13  ;;  %v4577_v60 = vpack.c.bf16 %v3291_v34, %v3291_v34  ;;  %v4050_v62 = vsel %vm4004_vm8, %v3990_v55, 0.0  ;;  %v4095_v8 = vmul.f32 %v5310_v45, %v3990_v55  ;;  %v5031_v23 = vpop.f32.mrb[53].mxu1 }
 0x2f9   : > { %v3210_v48 = vpop.f32.mrb[48].mxu0  ;;  %v4051_v40 = vadd.f32 %v4050_v62, %v4049_v51  ;;  %v1901_v29 = vpop.f32.mrb[54].mxu1 }
 0x2fa   : > { %3438 = vst.msk [vmem:[%s6876_s18 + $0x5c] sm:$0xf] %vm3414_vm7, %v4577_v60  ;;  %v4146_v3 = vsel %vm4004_vm8, %v4095_v8, 0.0  ;;  %v5311_v28 = vadd.f32 %v3210_v48, %v1890_v58  ;;  %v5275_v4 = vpop.f32.mrb[49].mxu0  ;;  %v5032_v56 = vpop.f32.mrb[55].mxu1 }
 0x2fb   : > { %v4147_v43 = vadd.f32 %v4146_v3, %v4145_v27  ;;  %v3213_v41 = vpop.f32.mrb[50].mxu0 }
 0x2fc   : > { %v3292_v16 = vadd.f32 %v5311_v28, %v6869_v39  ;;  %v4052_v18 = vsel %vm4004_vm8, %v5311_v28, 0.0  ;;  %v4096_v35 = vmul.f32 %v5311_v28, %v5311_v28  ;;  %v5312_v38 = vadd.f32 %v3213_v41, %v1893_v59  ;;  %v5276_v52 = vpop.f32.mrb[51].mxu0 }
 0x2fd   : > { %v4053_v7 = vadd.f32 %v4052_v18, %v4051_v40  ;;  %v4551_v59 = vsel %vm3907_vm10, 1.0, %v5871_v1  ;;  %v4003_v18 = vld [vmem:[%s6845_s25] sm:$0x1] }
 0x2fe   : > { %v4578_v17 = vpack.c.bf16 %v3292_v16, %v3292_v16  ;;  %v4148_v36 = vsel %vm4004_vm8, %v4096_v35, 0.0  ;;  %v3293_v10 = vadd.f32 %v5312_v38, %v6869_v39  ;;  %v3992_v20 = vmul.f32 %v5312_v38, %v4550_v54  ;;  %v4071_v52 = vld [vmem:[%s6851_s28] sm:$0x1] }
 0x2ff   : > { %v4149_v22 = vadd.f32 %v4148_v36, %v4147_v43  ;;  %v1906_v12 = vpop.f32.mrb[56].mxu1 }
 0x300   : > { %3439 = vst.msk [vmem:[%s6876_s18 + $0x60] sm:$0xf] %vm3414_vm7, %v4578_v17  ;;  %v4579_v49 = vpack.c.bf16 %v3293_v10, %v3293_v10  ;;  %v4054_v63 = vsel %vm4004_vm8, %v3992_v20, 0.0  ;;  %v4097_v25 = vmul.f32 %v5312_v38, %v3992_v20  ;;  %v5035_v26 = vpop.f32.mrb[57].mxu1 }
 0x301   : > { %v3218_v21 = vpop.f32.mrb[52].mxu0  ;;  %v4055_v58 = vadd.f32 %v4054_v63, %v4053_v7  ;;  %v1909_v46 = vpop.f32.mrb[58].mxu1 }
 0x302   : > { %3440 = vst.msk [vmem:[%s6876_s18 + $0x64] sm:$0xf] %vm3414_vm7, %v4579_v49  ;;  %v4150_v15 = vsel %vm4004_vm8, %v4097_v25, 0.0  ;;  %v5313_v31 = vadd.f32 %v3218_v21, %v1898_v14  ;;  %v5279_v33 = vpop.f32.mrb[53].mxu0  ;;  %v5036_v24 = vpop.f32.mrb[59].mxu1 }
 0x303   : > { %v4151_v53 = vadd.f32 %v4150_v15, %v4149_v22  ;;  %v3221_v5 = vpop.f32.mrb[54].mxu0 }
 0x304   : > { %v3294_v9 = vadd.f32 %v5313_v31, %v6869_v39  ;;  %v4056_v57 = vsel %vm4004_vm8, %v5313_v31, 0.0  ;;  %v4098_v6 = vmul.f32 %v5313_v31, %v5313_v31  ;;  %v5314_v42 = vadd.f32 %v3221_v5, %v1901_v29  ;;  %v5280_v44 = vpop.f32.mrb[55].mxu0 }
 0x305   : > { %v4057_v11 = vadd.f32 %v4056_v57, %v4055_v58 }
 0x306   : > { %v4580_v61 = vpack.c.bf16 %v3294_v9, %v3294_v9  ;;  %v4152_v32 = vsel %vm4004_vm8, %v4098_v6, 0.0  ;;  %v3295_v37 = vadd.f32 %v5314_v42, %v6869_v39  ;;  %v3994_v30 = vmul.f32 %v5314_v42, %v4551_v59 }
 0x307   : > { %v4153_v47 = vadd.f32 %v4152_v32, %v4151_v53 }
 0x308   : > { %3441 = vst.msk [vmem:[%s6876_s18 + $0x68] sm:$0xf] %vm3414_vm7, %v4580_v61  ;;  %v4581_v45 = vpack.c.bf16 %v3295_v37, %v3295_v37  ;;  %v4058_v1 = vsel %vm4004_vm8, %v3994_v30, 0.0  ;;  %v4099_v50 = vmul.f32 %v5314_v42, %v3994_v30 }
 0x309   : > { %v4059_v51 = vadd.f32 %v4058_v1, %v4057_v11  ;;  %v3226_v2 = vpop.f32.mrb[56].mxu0 }
 0x30a   : > { %3442 = vst.msk [vmem:[%s6876_s18 + $0x6c] sm:$0xf] %vm3414_vm7, %v4581_v45  ;;  %v4154_v13 = vsel %vm4004_vm8, %v4099_v50, 0.0  ;;  %v5315_v19 = vadd.f32 %v3226_v2, %v1906_v12  ;;  %v5283_v34 = vpop.f32.mrb[57].mxu0 }
 0x30b   : > { %v4155_v55 = vadd.f32 %v4154_v13, %v4153_v47  ;;  %v3229_v27 = vpop.f32.mrb[58].mxu0 }
 0x30c   : > { %v3296_v14 = vadd.f32 %v5315_v19, %v6869_v39  ;;  %v3995_v60 = vmul.f32 0.0, %v5315_v19  ;;  %v5284_v62 = vpop.f32.mrb[59].mxu0 }
 0x30e   : > { %v4582_v8 = vpack.c.bf16 %v3296_v14, %v3296_v14  ;;  %v4060_v23 = vsel %vm4004_vm8, %v3995_v60, 0.0  ;;  %v4100_v48 = vmul.f32 %v5315_v19, %v3995_v60 }
 0x30f   : > { %v4061_v40 = vadd.f32 %v4060_v23, %v4059_v51 }
 0x310   : > { %3443 = vst.msk [vmem:[%s6876_s18 + $0x70] sm:$0xf] %vm3414_vm7, %v4582_v8  ;;  %v4156_v29 = vsel %vm4004_vm8, %v4100_v48, 0.0 }
 0x311   : > { %v4062_v0 = vrot.slane %v4061_v40, 4  ;;  %v4157_v3 = vadd.f32 %v4156_v29, %v4155_v55 }
 0x313   : > { %v4063_v28 = vadd.f32 %v4062_v0, %v4061_v40  ;;  %v4158_v4 = vrot.slane %v4157_v3, 4 }
 0x315   : > { %v4064_v39 = vrot.slane %v4063_v28, 2  ;;  %v4159_v56 = vadd.f32 %v4158_v4, %v4157_v3 }
 0x317   : > { %v4065_v43 = vadd.f32 %v4064_v39, %v4063_v28  ;;  %v4160_v41 = vrot.slane %v4159_v56, 2 }
 0x319   : > { %v4066_v54 = vrot.slane %v4065_v43, 1  ;;  %v4161_v16 = vadd.f32 %v4160_v41, %v4159_v56 }
 0x31b   : > { %v4067_v35 = vadd.f32 %v4066_v54, %v4065_v43  ;;  %v4162_v38 = vrot.slane %v4161_v16, 1 }
 0x31d   : > { %v4068_v7 = vadd.f32 %v4067_v35, %v4003_v18  ;;  %v4163_v17 = vadd.f32 %v4162_v38, %v4161_v16 }
 0x31f   : > { %4070 = vst.msk [vmem:[%s6845_s25] sm:$0x1] %vm4000_vm5, %v4068_v7  ;;  %v4164_v36 = vadd.f32 %v4163_v17, %v4071_v52 }
 0x321   : > { %4165 = vst.msk [vmem:[%s6851_s28] sm:$0x1] %vm4000_vm5, %v4164_v36 }
 0x322 PF: > { %s16_s20 = sadd.s32 1, %s5869_s20   ;;  %s7090_s18 = smov %s5865_s19 }
 0x323   : > { %p13_p5 = scmp.ge.s32.totalorder %s16_s20, 4   ;;  %s7091_s19 = smov %s7093_s21 }
 0x325   :  { %15 = sbr.rel (!%p13_p5) target bundleno = 2 (0x2), region = 90 }

</bundles_post_ra>
